<compile_context>
chip_gen: v6e
topology: v6e:2x2x1
jax: 0.10.0
libtpu: 0.0.40
codegen_flags: <defaults>
</compile_context>

<pallas_src>
import functools

import jax
import jax.numpy as jnp
from jax.experimental import pallas as pl
from jax.experimental.pallas import tpu as pltpu


def _rpn_head_kernel(x_ref, wconv_ref, bconv_ref, whead_ref, bhead_ref,
                     out_ref, xp_scr, *, H, W):
    """One grid step processes one batch element.

    x_ref    : (1, H, W, Cin)     input feature map (NHWC, bf16)
    wconv_ref: (9, Cin, Cin)      3x3 conv weight, one (Cin, Cin) tile per tap (bf16)
    bconv_ref: (1, Cin)           conv bias (f32)
    whead_ref: (Cin, NP)          fused [obj | deltas] 1x1 weights, zero-padded
                                  to NP (multiple of 128) lanes (bf16)
    bhead_ref: (1, NP)            fused head bias, zero in padded lanes (f32)
    out_ref  : (1, H*W, NP)       lane-dense fused output slab (bf16)
    xp_scr   : (H+2, W+2, Cin)    bf16 VMEM scratch (zero-padded input)
    """
    C = x_ref.shape[3]

    # ---- "same" padding: zero only the 1-pixel halo (no full-buffer memset;
    # the interior is fully overwritten just below). ----
    zrow = jnp.zeros((1, W + 2, C), xp_scr.dtype)
    xp_scr[0:1, :, :] = zrow
    xp_scr[H + 1:H + 2, :, :] = zrow
    zcol = jnp.zeros((H, 1, C), xp_scr.dtype)
    xp_scr[1:H + 1, 0:1, :] = zcol
    xp_scr[1:H + 1, W + 1:W + 2, :] = zcol

    # Interior copy (single bf16 pass; x is already bf16).
    # TODO(synk): DMA x HBM->xp_scr[1:H+1, 1:W+1, :] directly (memory_space=pl.ANY
    # + double-buffered make_async_copy) to remove this remaining VMEM->VMEM pass.
    xp_scr[1:H + 1, 1:W + 1, :] = x_ref[0]

    # ---- 3x3 conv as 9 accumulating K=Cin MXU matmuls (f32 accumulator),
    # replacing the im2col buffer + single K=9*Cin matmul. ----
    acc = None
    for dy in range(3):
        for dx in range(3):
            tap = dy * 3 + dx
            v = xp_scr[dy:dy + H, dx:dx + W, :].reshape(H * W, C)
            p = jnp.dot(v, wconv_ref[tap], preferred_element_type=jnp.float32)
            acc = p if acc is None else acc + p

    # Bias + ReLU in f32 (v5e-safe: no bf16 elementwise math).
    t = jnp.maximum(acc + bconv_ref[...], 0.0)

    # ---- fused 1x1 heads: one lane-dense (H*W, NP) matmul (f32 accumulate). ----
    out = jnp.dot(t.astype(whead_ref.dtype), whead_ref[...],
                  preferred_element_type=jnp.float32) + bhead_ref[...]
    out_ref[0] = out.astype(out_ref.dtype)


def init_rpn_head_params(key, in_channels, num_anchors, box_dim=4,
                         dtype=jnp.float32):
    """Matches the module init: normal(std=0.01) weights, zero bias."""
    k1, k2, k3 = jax.random.split(key, 3)
    std = 0.01
    w_conv = std * jax.random.normal(k1, (3, 3, in_channels, in_channels), dtype)
    b_conv = jnp.zeros((1, in_channels), dtype)
    w_obj = std * jax.random.normal(k2, (in_channels, num_anchors), dtype)
    b_obj = jnp.zeros((1, num_anchors), dtype)
    w_del = std * jax.random.normal(k3, (in_channels, num_anchors * box_dim), dtype)
    b_del = jnp.zeros((1, num_anchors * box_dim), dtype)
    return dict(w_conv=w_conv, b_conv=b_conv, w_obj=w_obj, b_obj=b_obj,
                w_del=w_del, b_del=b_del)


def _round_up(n, m):
    return m * pl.cdiv(n, m)


@jax.jit
def rpn_head_forward(x_nchw, params):
    """x_nchw: (B, Cin, H, W) float32. Returns (logits, deltas) in NCHW, f32."""
    B, C, H, W = x_nchw.shape
    A = params["w_obj"].shape[1]
    AD = params["w_del"].shape[1]
    NOUT = A + AD
    NP = _round_up(NOUT, 128)          # lane-dense padded head width

    # Fold params: conv weight as (9, Cin, Cin) tap tiles; fuse the two 1x1
    # heads into a single zero-padded (Cin, NP) weight. Weights -> bf16 MXU
    # operands, biases stay f32.
    w_conv = params["w_conv"].reshape(9, C, C).astype(jnp.bfloat16)
    b_conv = params["b_conv"].reshape(1, C).astype(jnp.float32)
    w_head = jnp.concatenate([params["w_obj"], params["w_del"]], axis=1)
    w_head = jnp.pad(w_head, ((0, 0), (0, NP - NOUT))).astype(jnp.bfloat16)
    b_head = jnp.concatenate([params["b_obj"], params["b_del"]], axis=1)
    b_head = jnp.pad(b_head, ((0, 0), (0, NP - NOUT))).astype(jnp.float32)

    # NCHW -> NHWC + bf16 cast in one fused XLA pass (layout plumbing).
    # TODO(synk): read NCHW / emit NCHW directly in-kernel to remove these transposes.
    x = jnp.transpose(x_nchw, (0, 2, 3, 1)).astype(jnp.bfloat16)

    kernel = functools.partial(_rpn_head_kernel, H=H, W=W)

    # VMEM budget: double-buffered x/out blocks + weights + padded scratch,
    # with headroom; capped at 64 MiB so it stays legal on v7x.
    vmem_bytes = (2 * H * W * C * 2                     # x block (bf16), 2 bufs
                  + 2 * H * W * NP * 2                  # out block (bf16), 2 bufs
                  + (H + 2) * (W + 2) * C * 2           # padded scratch (bf16)
                  + 2 * (9 * C * C + C * NP) * 2        # weights (bf16), 2 bufs
                  + 2 * (C + NP) * 4)                   # biases (f32), 2 bufs
    vmem_limit = int(min(64 * 1024 * 1024, max(32 * 1024 * 1024, 3 * vmem_bytes)))

    # TODO(synk): add a halo'd row-strip grid axis (manual DMA for the 1-row
    # halos) for large FPN levels on v7x (64 MiB VMEM) and 2-TC sharding of
    # single-image inference; whole-image-per-batch blocks are fine here.
    out = pl.pallas_call(
        kernel,
        out_shape=jax.ShapeDtypeStruct((B, H * W, NP), jnp.bfloat16),
        grid_spec=pltpu.PrefetchScalarGridSpec(
            num_scalar_prefetch=0,
            grid=(B,),
            in_specs=[
                pl.BlockSpec((1, H, W, C), lambda b: (b, 0, 0, 0)),
                pl.BlockSpec((9, C, C), lambda b: (0, 0, 0)),
                pl.BlockSpec((1, C), lambda b: (0, 0)),
                pl.BlockSpec((C, NP), lambda b: (0, 0)),
                pl.BlockSpec((1, NP), lambda b: (0, 0)),
            ],
            out_specs=pl.BlockSpec((1, H * W, NP), lambda b: (b, 0, 0)),
            scratch_shapes=[
                pltpu.VMEM((H + 2, W + 2, C), jnp.bfloat16),
            ],
        ),
        compiler_params=pltpu.CompilerParams(
            dimension_semantics=("parallel",),
            vmem_limit_bytes=vmem_limit,
        ),
    )(x, w_conv, b_conv, w_head, b_head)

    # Drop lane padding, split fused heads, back to NCHW f32 (layout plumbing).
    out = out[:, :, :NOUT].astype(jnp.float32).reshape(B, H, W, NOUT)
    logits = jnp.transpose(out[..., :A], (0, 3, 1, 2))
    deltas = jnp.transpose(out[..., A:], (0, 3, 1, 2))
    return logits, deltas


def _reference_forward(x_nchw, params):
    """Pure-JAX f32 reference (lax.conv) for correctness checking."""
    t = jax.lax.conv_general_dilated(
        x_nchw, params["w_conv"],
        window_strides=(1, 1), padding="SAME",
        dimension_numbers=("NCHW", "HWIO", "NCHW"))
    t = jax.nn.relu(t + params["b_conv"].reshape(1, -1, 1, 1))
    obj = jnp.einsum("bchw,ca->bahw", t, params["w_obj"]) \
        + params["b_obj"].reshape(1, -1, 1, 1)
    dl = jnp.einsum("bchw,cd->bdhw", t, params["w_del"]) \
        + params["b_del"].reshape(1, -1, 1, 1)
    return obj, dl


if __name__ == "__main__":
    key = jax.random.PRNGKey(0)
    kx, kp = jax.random.split(key)

    B, Cin, H, W = 2, 16, 16, 16
    num_anchors, box_dim = 3, 4

    x = jax.random.normal(kx, (B, Cin, H, W), jnp.float32)
    params = init_rpn_head_params(kp, Cin, num_anchors, box_dim)

    logits, deltas = rpn_head_forward(x, params)
    jax.block_until_ready((logits, deltas))

    # Sanity check against the pure-f32 reference; tolerance reflects bf16 MXU
    # operands / bf16 output slab with f32 accumulation.
    ref_logits, ref_deltas = _reference_forward(x, params)
    assert logits.shape == (B, num_anchors, H, W)
    assert deltas.shape == (B, num_anchors * box_dim, H, W)
    assert jnp.allclose(logits, ref_logits, atol=1e-3, rtol=2e-2)
    assert jnp.allclose(deltas, ref_deltas, atol=1e-3, rtol=2e-2)

    print("KERNEL_OK")
</pallas_src>

<mosaic_0001>
module attributes {stable_mosaic.version = 11 : i64} {
  func.func @_rpn_head_kernel(%arg0: i32, %arg1: memref<1x16x16x16xbf16, #tpu.memory_space<vmem>>, %arg2: memref<9x16x16xbf16, #tpu.memory_space<vmem>>, %arg3: memref<1x16xf32, #tpu.memory_space<vmem>>, %arg4: memref<16x128xbf16, #tpu.memory_space<vmem>>, %arg5: memref<1x128xf32, #tpu.memory_space<vmem>>, %arg6: memref<1x256x128xbf16, #tpu.memory_space<vmem>>, %arg7: memref<18x18x16xbf16, #tpu.memory_space<vmem>>) attributes {dimension_semantics = [#tpu.dimension_semantics<parallel>], iteration_bounds = array<i64: 2>, scalar_prefetch = 0 : i64, scratch_operands = 1 : i64, tpu.core_type = #tpu.core_type<tc>, window_params = [{transform_indices = @transform_0, window_bounds = array<i64: 1, 16, 16, 16>}, {pipeline_mode = #tpu.pipeline_mode<synchronous>, transform_indices = @transform_1, window_bounds = array<i64: 9, 16, 16>}, {pipeline_mode = #tpu.pipeline_mode<synchronous>, transform_indices = @transform_2, window_bounds = array<i64: 1, 16>}, {pipeline_mode = #tpu.pipeline_mode<synchronous>, transform_indices = @transform_3, window_bounds = array<i64: 16, 128>}, {pipeline_mode = #tpu.pipeline_mode<synchronous>, transform_indices = @transform_4, window_bounds = array<i64: 1, 128>}, {transform_indices = @transform_5, window_bounds = array<i64: 1, 256, 128>}]} {
    %cst = arith.constant 0.000000e+00 : bf16
    %0 = vector.broadcast %cst : bf16 to vector<1x18x16xbf16>
    %c0 = arith.constant 0 : index
    %c0_0 = arith.constant 0 : index
    %c0_1 = arith.constant 0 : index
    %1 = vector.load %arg7[%c0, %c0_0, %c0_1] : memref<18x18x16xbf16, #tpu.memory_space<vmem>>, vector<1x18x16xbf16>
    tpu.vector_store %arg7[%c0, %c0_0, %c0_1], %0 {strides = array<i32>} : memref<18x18x16xbf16, #tpu.memory_space<vmem>>, vector<1x18x16xbf16>,
    %c17 = arith.constant 17 : index
    %c0_2 = arith.constant 0 : index
    %c0_3 = arith.constant 0 : index
    %2 = vector.load %arg7[%c17, %c0_2, %c0_3] : memref<18x18x16xbf16, #tpu.memory_space<vmem>>, vector<1x18x16xbf16>
    tpu.vector_store %arg7[%c17, %c0_2, %c0_3], %0 {strides = array<i32>} : memref<18x18x16xbf16, #tpu.memory_space<vmem>>, vector<1x18x16xbf16>,
    %cst_4 = arith.constant 0.000000e+00 : bf16
    %3 = vector.broadcast %cst_4 : bf16 to vector<16x1x16xbf16>
    %c1 = arith.constant 1 : index
    %c0_5 = arith.constant 0 : index
    %c0_6 = arith.constant 0 : index
    %4 = vector.load %arg7[%c1, %c0_5, %c0_6] : memref<18x18x16xbf16, #tpu.memory_space<vmem>>, vector<16x1x16xbf16>
    tpu.vector_store %arg7[%c1, %c0_5, %c0_6], %3 {strides = array<i32>} : memref<18x18x16xbf16, #tpu.memory_space<vmem>>, vector<16x1x16xbf16>,
    %c1_7 = arith.constant 1 : index
    %c17_8 = arith.constant 17 : index
    %c0_9 = arith.constant 0 : index
    %5 = vector.load %arg7[%c1_7, %c17_8, %c0_9] : memref<18x18x16xbf16, #tpu.memory_space<vmem>>, vector<16x1x16xbf16>
    tpu.vector_store %arg7[%c1_7, %c17_8, %c0_9], %3 {strides = array<i32>} : memref<18x18x16xbf16, #tpu.memory_space<vmem>>, vector<16x1x16xbf16>,
    %c0_10 = arith.constant 0 : index
    %c0_11 = arith.constant 0 : index
    %c0_12 = arith.constant 0 : index
    %c0_13 = arith.constant 0 : index
    %6 = vector.load %arg1[%c0_10, %c0_11, %c0_12, %c0_13] : memref<1x16x16x16xbf16, #tpu.memory_space<vmem>>, vector<1x16x16x16xbf16>
    %7 = vector.shape_cast %6 : vector<1x16x16x16xbf16> to vector<16x16x16xbf16>
    %c1_14 = arith.constant 1 : index
    %c1_15 = arith.constant 1 : index
    %c0_16 = arith.constant 0 : index
    %8 = vector.load %arg7[%c1_14, %c1_15, %c0_16] : memref<18x18x16xbf16, #tpu.memory_space<vmem>>, vector<16x16x16xbf16>
    tpu.vector_store %arg7[%c1_14, %c1_15, %c0_16], %7 {strides = array<i32>} : memref<18x18x16xbf16, #tpu.memory_space<vmem>>, vector<16x16x16xbf16>,
    %c0_17 = arith.constant 0 : index
    %c0_18 = arith.constant 0 : index
    %c0_19 = arith.constant 0 : index
    %9 = vector.load %arg7[%c0_17, %c0_18, %c0_19] : memref<18x18x16xbf16, #tpu.memory_space<vmem>>, vector<16x16x16xbf16>
    %10 = vector.shape_cast %9 : vector<16x16x16xbf16> to vector<256x16xbf16>
    %c0_20 = arith.constant 0 : index
    %c0_21 = arith.constant 0 : index
    %c0_22 = arith.constant 0 : index
    %11 = vector.load %arg2[%c0_20, %c0_21, %c0_22] : memref<9x16x16xbf16, #tpu.memory_space<vmem>>, vector<1x16x16xbf16>
    %12 = vector.shape_cast %11 : vector<1x16x16xbf16> to vector<16x16xbf16>
    %cst_23 = arith.constant dense<0.000000e+00> : vector<256x16xf32>
    %13 = tpu.matmul %10, %12, %cst_23 {dimension_numbers = #tpu.dot_dimension_numbers<[1], [0], [0], [1], [0, 0, 1, 1], [], []>} : vector<256x16xbf16>, vector<16x16xbf16>, vector<256x16xf32> -> vector<256x16xf32>
    %c0_24 = arith.constant 0 : index
    %c1_25 = arith.constant 1 : index
    %c0_26 = arith.constant 0 : index
    %14 = vector.load %arg7[%c0_24, %c1_25, %c0_26] : memref<18x18x16xbf16, #tpu.memory_space<vmem>>, vector<16x16x16xbf16>
    %15 = vector.shape_cast %14 : vector<16x16x16xbf16> to vector<256x16xbf16>
    %c1_27 = arith.constant 1 : index
    %c0_28 = arith.constant 0 : index
    %c0_29 = arith.constant 0 : index
    %16 = vector.load %arg2[%c1_27, %c0_28, %c0_29] : memref<9x16x16xbf16, #tpu.memory_space<vmem>>, vector<1x16x16xbf16>
    %17 = vector.shape_cast %16 : vector<1x16x16xbf16> to vector<16x16xbf16>
    %cst_30 = arith.constant dense<0.000000e+00> : vector<256x16xf32>
    %18 = tpu.matmul %15, %17, %cst_30 {dimension_numbers = #tpu.dot_dimension_numbers<[1], [0], [0], [1], [0, 0, 1, 1], [], []>} : vector<256x16xbf16>, vector<16x16xbf16>, vector<256x16xf32> -> vector<256x16xf32>
    %19 = arith.addf %13, %18 : vector<256x16xf32>
    %c0_31 = arith.constant 0 : index
    %c2 = arith.constant 2 : index
    %c0_32 = arith.constant 0 : index
    %20 = vector.load %arg7[%c0_31, %c2, %c0_32] : memref<18x18x16xbf16, #tpu.memory_space<vmem>>, vector<16x16x16xbf16>
    %21 = vector.shape_cast %20 : vector<16x16x16xbf16> to vector<256x16xbf16>
    %c2_33 = arith.constant 2 : index
    %c0_34 = arith.constant 0 : index
    %c0_35 = arith.constant 0 : index
    %22 = vector.load %arg2[%c2_33, %c0_34, %c0_35] : memref<9x16x16xbf16, #tpu.memory_space<vmem>>, vector<1x16x16xbf16>
    %23 = vector.shape_cast %22 : vector<1x16x16xbf16> to vector<16x16xbf16>
    %cst_36 = arith.constant dense<0.000000e+00> : vector<256x16xf32>
    %24 = tpu.matmul %21, %23, %cst_36 {dimension_numbers = #tpu.dot_dimension_numbers<[1], [0], [0], [1], [0, 0, 1, 1], [], []>} : vector<256x16xbf16>, vector<16x16xbf16>, vector<256x16xf32> -> vector<256x16xf32>
    %25 = arith.addf %19, %24 : vector<256x16xf32>
    %c1_37 = arith.constant 1 : index
    %c0_38 = arith.constant 0 : index
    %c0_39 = arith.constant 0 : index
    %26 = vector.load %arg7[%c1_37, %c0_38, %c0_39] : memref<18x18x16xbf16, #tpu.memory_space<vmem>>, vector<16x16x16xbf16>
    %27 = vector.shape_cast %26 : vector<16x16x16xbf16> to vector<256x16xbf16>
    %c3 = arith.constant 3 : index
    %c0_40 = arith.constant 0 : index
    %c0_41 = arith.constant 0 : index
    %28 = vector.load %arg2[%c3, %c0_40, %c0_41] : memref<9x16x16xbf16, #tpu.memory_space<vmem>>, vector<1x16x16xbf16>
    %29 = vector.shape_cast %28 : vector<1x16x16xbf16> to vector<16x16xbf16>
    %cst_42 = arith.constant dense<0.000000e+00> : vector<256x16xf32>
    %30 = tpu.matmul %27, %29, %cst_42 {dimension_numbers = #tpu.dot_dimension_numbers<[1], [0], [0], [1], [0, 0, 1, 1], [], []>} : vector<256x16xbf16>, vector<16x16xbf16>, vector<256x16xf32> -> vector<256x16xf32>
    %31 = arith.addf %25, %30 : vector<256x16xf32>
    %c1_43 = arith.constant 1 : index
    %c1_44 = arith.constant 1 : index
    %c0_45 = arith.constant 0 : index
    %32 = vector.load %arg7[%c1_43, %c1_44, %c0_45] : memref<18x18x16xbf16, #tpu.memory_space<vmem>>, vector<16x16x16xbf16>
    %33 = vector.shape_cast %32 : vector<16x16x16xbf16> to vector<256x16xbf16>
    %c4 = arith.constant 4 : index
    %c0_46 = arith.constant 0 : index
    %c0_47 = arith.constant 0 : index
    %34 = vector.load %arg2[%c4, %c0_46, %c0_47] : memref<9x16x16xbf16, #tpu.memory_space<vmem>>, vector<1x16x16xbf16>
    %35 = vector.shape_cast %34 : vector<1x16x16xbf16> to vector<16x16xbf16>
    %cst_48 = arith.constant dense<0.000000e+00> : vector<256x16xf32>
    %36 = tpu.matmul %33, %35, %cst_48 {dimension_numbers = #tpu.dot_dimension_numbers<[1], [0], [0], [1], [0, 0, 1, 1], [], []>} : vector<256x16xbf16>, vector<16x16xbf16>, vector<256x16xf32> -> vector<256x16xf32>
    %37 = arith.addf %31, %36 : vector<256x16xf32>
    %c1_49 = arith.constant 1 : index
    %c2_50 = arith.constant 2 : index
    %c0_51 = arith.constant 0 : index
    %38 = vector.load %arg7[%c1_49, %c2_50, %c0_51] : memref<18x18x16xbf16, #tpu.memory_space<vmem>>, vector<16x16x16xbf16>
    %39 = vector.shape_cast %38 : vector<16x16x16xbf16> to vector<256x16xbf16>
    %c5 = arith.constant 5 : index
    %c0_52 = arith.constant 0 : index
    %c0_53 = arith.constant 0 : index
    %40 = vector.load %arg2[%c5, %c0_52, %c0_53] : memref<9x16x16xbf16, #tpu.memory_space<vmem>>, vector<1x16x16xbf16>
    %41 = vector.shape_cast %40 : vector<1x16x16xbf16> to vector<16x16xbf16>
    %cst_54 = arith.constant dense<0.000000e+00> : vector<256x16xf32>
    %42 = tpu.matmul %39, %41, %cst_54 {dimension_numbers = #tpu.dot_dimension_numbers<[1], [0], [0], [1], [0, 0, 1, 1], [], []>} : vector<256x16xbf16>, vector<16x16xbf16>, vector<256x16xf32> -> vector<256x16xf32>
    %43 = arith.addf %37, %42 : vector<256x16xf32>
    %c2_55 = arith.constant 2 : index
    %c0_56 = arith.constant 0 : index
    %c0_57 = arith.constant 0 : index
    %44 = vector.load %arg7[%c2_55, %c0_56, %c0_57] : memref<18x18x16xbf16, #tpu.memory_space<vmem>>, vector<16x16x16xbf16>
    %45 = vector.shape_cast %44 : vector<16x16x16xbf16> to vector<256x16xbf16>
    %c6 = arith.constant 6 : index
    %c0_58 = arith.constant 0 : index
    %c0_59 = arith.constant 0 : index
    %46 = vector.load %arg2[%c6, %c0_58, %c0_59] : memref<9x16x16xbf16, #tpu.memory_space<vmem>>, vector<1x16x16xbf16>
    %47 = vector.shape_cast %46 : vector<1x16x16xbf16> to vector<16x16xbf16>
    %cst_60 = arith.constant dense<0.000000e+00> : vector<256x16xf32>
    %48 = tpu.matmul %45, %47, %cst_60 {dimension_numbers = #tpu.dot_dimension_numbers<[1], [0], [0], [1], [0, 0, 1, 1], [], []>} : vector<256x16xbf16>, vector<16x16xbf16>, vector<256x16xf32> -> vector<256x16xf32>
    %49 = arith.addf %43, %48 : vector<256x16xf32>
    %c2_61 = arith.constant 2 : index
    %c1_62 = arith.constant 1 : index
    %c0_63 = arith.constant 0 : index
    %50 = vector.load %arg7[%c2_61, %c1_62, %c0_63] : memref<18x18x16xbf16, #tpu.memory_space<vmem>>, vector<16x16x16xbf16>
    %51 = vector.shape_cast %50 : vector<16x16x16xbf16> to vector<256x16xbf16>
    %c7 = arith.constant 7 : index
    %c0_64 = arith.constant 0 : index
    %c0_65 = arith.constant 0 : index
    %52 = vector.load %arg2[%c7, %c0_64, %c0_65] : memref<9x16x16xbf16, #tpu.memory_space<vmem>>, vector<1x16x16xbf16>
    %53 = vector.shape_cast %52 : vector<1x16x16xbf16> to vector<16x16xbf16>
    %cst_66 = arith.constant dense<0.000000e+00> : vector<256x16xf32>
    %54 = tpu.matmul %51, %53, %cst_66 {dimension_numbers = #tpu.dot_dimension_numbers<[1], [0], [0], [1], [0, 0, 1, 1], [], []>} : vector<256x16xbf16>, vector<16x16xbf16>, vector<256x16xf32> -> vector<256x16xf32>
    %55 = arith.addf %49, %54 : vector<256x16xf32>
    %c2_67 = arith.constant 2 : index
    %c2_68 = arith.constant 2 : index
    %c0_69 = arith.constant 0 : index
    %56 = vector.load %arg7[%c2_67, %c2_68, %c0_69] : memref<18x18x16xbf16, #tpu.memory_space<vmem>>, vector<16x16x16xbf16>
    %57 = vector.shape_cast %56 : vector<16x16x16xbf16> to vector<256x16xbf16>
    %c8 = arith.constant 8 : index
    %c0_70 = arith.constant 0 : index
    %c0_71 = arith.constant 0 : index
    %58 = vector.load %arg2[%c8, %c0_70, %c0_71] : memref<9x16x16xbf16, #tpu.memory_space<vmem>>, vector<1x16x16xbf16>
    %59 = vector.shape_cast %58 : vector<1x16x16xbf16> to vector<16x16xbf16>
    %cst_72 = arith.constant dense<0.000000e+00> : vector<256x16xf32>
    %60 = tpu.matmul %57, %59, %cst_72 {dimension_numbers = #tpu.dot_dimension_numbers<[1], [0], [0], [1], [0, 0, 1, 1], [], []>} : vector<256x16xbf16>, vector<16x16xbf16>, vector<256x16xf32> -> vector<256x16xf32>
    %61 = arith.addf %55, %60 : vector<256x16xf32>
    %c0_73 = arith.constant 0 : index
    %c0_74 = arith.constant 0 : index
    %62 = vector.load %arg3[%c0_73, %c0_74] : memref<1x16xf32, #tpu.memory_space<vmem>>, vector<1x16xf32>
    %63 = vector.broadcast %62 : vector<1x16xf32> to vector<256x16xf32>
    %64 = arith.addf %61, %63 : vector<256x16xf32>
    %cst_75 = arith.constant 0.000000e+00 : f32
    %65 = vector.broadcast %cst_75 : f32 to vector<256x16xf32>
    %66 = arith.maximumf %64, %65 : vector<256x16xf32>
    %67 = arith.truncf %66 : vector<256x16xf32> to vector<256x16xbf16>
    %c0_76 = arith.constant 0 : index
    %c0_77 = arith.constant 0 : index
    %68 = vector.load %arg4[%c0_76, %c0_77] : memref<16x128xbf16, #tpu.memory_space<vmem>>, vector<16x128xbf16>
    %cst_78 = arith.constant dense<0.000000e+00> : vector<256x128xf32>
    %69 = tpu.matmul %67, %68, %cst_78 {dimension_numbers = #tpu.dot_dimension_numbers<[1], [0], [0], [1], [0, 0, 1, 1], [], []>} : vector<256x16xbf16>, vector<16x128xbf16>, vector<256x128xf32> -> vector<256x128xf32>
    %c0_79 = arith.constant 0 : index
    %c0_80 = arith.constant 0 : index
    %70 = vector.load %arg5[%c0_79, %c0_80] : memref<1x128xf32, #tpu.memory_space<vmem>>, vector<1x128xf32>
    %71 = vector.broadcast %70 : vector<1x128xf32> to vector<256x128xf32>
    %72 = arith.addf %69, %71 : vector<256x128xf32>
    %73 = arith.truncf %72 : vector<256x128xf32> to vector<256x128xbf16>
    %c0_81 = arith.constant 0 : index
    %c0_82 = arith.constant 0 : index
    %c0_83 = arith.constant 0 : index
    %74 = vector.load %arg6[%c0_81, %c0_82, %c0_83] : memref<1x256x128xbf16, #tpu.memory_space<vmem>>, vector<1x256x128xbf16>
    %75 = vector.shape_cast %74 : vector<1x256x128xbf16> to vector<256x128xbf16>
    %76 = vector.shape_cast %73 : vector<256x128xbf16> to vector<1x256x128xbf16>
    tpu.vector_store %arg6[%c0_81, %c0_82, %c0_83], %76 {strides = array<i32>} : memref<1x256x128xbf16, #tpu.memory_space<vmem>>, vector<1x256x128xbf16>,
    return
  }
  func.func @transform_0(%arg0: i32) -> (i32, i32, i32, i32) {
    %c0_i32 = arith.constant 0 : i32
    %c0_i32_0 = arith.constant 0 : i32
    %c0_i32_1 = arith.constant 0 : i32
    %c0_i32_2 = arith.constant 0 : i32
    return %arg0, %c0_i32, %c0_i32_0, %c0_i32_1 : i32, i32, i32, i32
  }
  func.func @transform_1(%arg0: i32) -> (i32, i32, i32) {
    %c0_i32 = arith.constant 0 : i32
    %c0_i32_0 = arith.constant 0 : i32
    %c0_i32_1 = arith.constant 0 : i32
    %c0_i32_2 = arith.constant 0 : i32
    return %c0_i32, %c0_i32_0, %c0_i32_1 : i32, i32, i32
  }
  func.func @transform_2(%arg0: i32) -> (i32, i32) {
    %c0_i32 = arith.constant 0 : i32
    %c0_i32_0 = arith.constant 0 : i32
    %c0_i32_1 = arith.constant 0 : i32
    return %c0_i32, %c0_i32_0 : i32, i32
  }
  func.func @transform_3(%arg0: i32) -> (i32, i32) {
    %c0_i32 = arith.constant 0 : i32
    %c0_i32_0 = arith.constant 0 : i32
    %c0_i32_1 = arith.constant 0 : i32
    return %c0_i32, %c0_i32_0 : i32, i32
  }
  func.func @transform_4(%arg0: i32) -> (i32, i32) {
    %c0_i32 = arith.constant 0 : i32
    %c0_i32_0 = arith.constant 0 : i32
    %c0_i32_1 = arith.constant 0 : i32
    return %c0_i32, %c0_i32_0 : i32, i32
  }
  func.func @transform_5(%arg0: i32) -> (i32, i32, i32) {
    %c0_i32 = arith.constant 0 : i32
    %c0_i32_0 = arith.constant 0 : i32
    %c0_i32_1 = arith.constant 0 : i32
    return %arg0, %c0_i32, %c0_i32_0 : i32, i32, i32
  }
}

</mosaic_0001>

<bundles_post_ra>
// kernel: rpn_head_forward.1
= control target key start
LH: loop header
LB: loop body
LE: loop exit
PB: predicated region body
PF: predicated region fallthrough
CT: control target
= control target key end

     0   :  { %s7104_s18 = smov 0   ;;  %s9462_s0 = inlined_call_operand.vmem [shape: bf16[2,16,16,16], index: 0, kind: input, shape index: {}]   ;;  %s9463_s1 = inlined_call_operand.vmem [shape: bf16[9,16,16], index: 1, kind: input, shape index: {}]   ;;  %s9464_s2 = inlined_call_operand.vmem [shape: f32[1,16], index: 2, kind: input, shape index: {}]   ;;  %s9465_s3 = inlined_call_operand.vmem [shape: bf16[16,128], index: 3, kind: input, shape index: {}]   ;;  %s9466_s4 = inlined_call_operand.vmem [shape: f32[1,128], index: 4, kind: input, shape index: {}]   ;;  %s9467_s5 = inlined_call_operand.vmem [shape: bf16[2,256,128], index: 5, kind: output, shape index: {}]  }
   0x1 LB: > { %s5924_s19 = sadd.s32 4294967295, %s7071_s18   ;;  %p5928_p0 = scmp.ge.s32.totalorder %s7071_s18, 1  ;;  %s7071_s18 = sphi %s7104_s18, %s15_s18  }
   0x2   : > { %p187_p1 = scmp.lt.s32.totalorder %s7071_s18, 3 }
   0x4   : > { %p188_p2 = pnand %p5928_p0, %p187_p1 }
   0x6   : > { %191 = sbr.rel (%p188_p2) target bundleno = 842 (0x34a), region = 40 }
   0xb   : > { %v6995_v0 = vld [vmem:[%s9463_s1 + $0x8] sm:$0xff]   ;;  %vm226_vm0 = vcmask 125952   ;;  %v6996_v1 = vld [vmem:[%s9463_s1] sm:$0xff]   ;;  %v7073_v2 = vmov 0   ;;  %vm229_vm1 = vcmask 122880   ;;  %v7135_v5 = vld [vmem:[%s9463_s1 + $0x10] sm:$0xff]  }
   0xc   : > { %6646 = vmatprep.subr.bf16.mxu0 %v6995_v0  ;;  %227 = vst.msk [vmem:[#allocation2] sm:$0xf] %vm226_vm0, %v7073_v2  ;;  %228 = vst.msk [vmem:[#allocation2 + $0x4] sm:$0xf] %vm226_vm0, %v7073_v2  ;;  %vm237_vm2 = vsmask.f32 256  ;;  %6680 = vmatprep.subr.bf16.mxu1 %v6996_v1 }
   0xd   : > { %vm287_vm3 = vsmask.f32 7938  ;;  %232 = vst.msk [vmem:[#allocation2 + $0xcc] sm:$0xf] %vm226_vm0, %v7073_v2  ;;  %233 = vst.msk [vmem:[#allocation2 + $0xd0] sm:$0xf] %vm226_vm0, %v7073_v2  ;;  %6647 = vmatpush3.bf16.msra.mxu0 %v6995_v0  ;;  %6681 = vmatpush3.bf16.msra.mxu1 %v6996_v1 }
   0xe   : > { %230 = vst.msk [vmem:[#allocation2 + $0x8] sm:$0x1] %vm229_vm1, %v7073_v2  ;;  %234 = vst.msk [vmem:[#allocation2 + $0xd4] sm:$0x1] %vm229_vm1, %v7073_v2  ;;  %vm855_vm6 = vsmask.f32 3328  ;;  %6714 = vmatprep.subr.bf16.mxu0 %v7135_v5 }
   0xf   : > { %vm7123_vm4 = vmand %vm229_vm1, %vm237_vm2  ;;  %vm856_vm7 = vsmask.f32 7440  ;;  %p215_p3 = scmp.lt.s32.totalorder %s5924_s19, 1  ;;  %v239_v6 = vld [vmem:[#allocation2 + $0xc] sm:$0x1]  ;;  %vm1299_vm9 = vcmask 130048  }
  0x10   : > { %vm7128_vm5 = vmand %vm229_vm1, %vm287_vm3  ;;  %v289_v7 = vld [vmem:[#allocation2 + $0x14] sm:$0x1]  ;;  %vm369_vm8 = vsmask.f32 4368  ;;  %v240_v8 = vsel %vm7123_vm4, 0, %v239_v6  ;;  %vm1852_vm13 = vcmask 1042432  }
  0x11   : > { %s9619_s19 = smov (!%p215_p3, %s5924_s19), 1  ;;  %v290_v9 = vsel %vm7128_vm5, 0, %v289_v7  ;;  %v242_v10 = vld [vmem:[#allocation2 + $0x18] sm:$0x1]  ;;  %241 = vst [vmem:[#allocation2 + $0xc] sm:$0x1] %v240_v8  ;;  %vm7174_vm10 = vmand %vm226_vm0, %vm287_vm3 }
  0x12   : > { %291 = vst [vmem:[#allocation2 + $0x14] sm:$0x1] %v290_v9  ;;  %v243_v11 = vsel %vm7123_vm4, 0, %v242_v10  ;;  %v292_v12 = vld [vmem:[#allocation2 + $0x20] sm:$0x1]  ;;  %s6347_s26 = sshll.u32 %s9619_s19, 7  ;;  %vm7180_vm11 = vmor %vm855_vm6, %vm856_vm7 }
  0x13   : > { %v245_v13 = vld [vmem:[#allocation2 + $0x24] sm:$0x1]  ;;  %244 = vst [vmem:[#allocation2 + $0x18] sm:$0x1] %v243_v11  ;;  %v293_v14 = vsel %vm7128_vm5, 0, %v292_v12  ;;  %s7160_s29 = scalar_lea.vmem %s9462_s0, %s6347_s26  ;;  %vm7186_vm12 = vmor %vm237_vm2, %vm369_vm8  ;;  %vm1853_vm14 = vcmask 1046532   ;;  %s9411_s30 = scalar_lea.vmem %s9467_s5, %s6347_s26 }
  0x14   : > { %v246_v15 = vsel %vm7123_vm4, 0, %v245_v13  ;;  %v295_v16 = vld [vmem:[#allocation2 + $0x2c] sm:$0x1]  ;;  %v805_v17 = vld [vmem:[#allocation2] sm:$0xf]  ;;  %vm7586_vm15 = vmor %vm1852_vm13, %vm1853_vm14 }
  0x15   : > { %v806_v18 = vld [vmem:[#allocation2 + $0x4] sm:$0xf]  ;;  %294 = vst [vmem:[#allocation2 + $0x20] sm:$0x1] %v293_v14  ;;  %247 = vst [vmem:[#allocation2 + $0x24] sm:$0x1] %v246_v15 }
  0x16   : > { %v296_v19 = vsel %vm7128_vm5, 0, %v295_v16  ;;  %v7164_v20 = vld [vmem:[#allocation2 + $0x8] sm:$0x1]  ;;  %v859_v21 = vshrl.u32 %v805_v17, 16  ;;  %v862_v22 = vshll.u32 %v805_v17, 16  ;;  %v868_v23 = vshll.u32 %v806_v18, 16 }
  0x17   : > { %v872_v24 = vshrl.u32 %v806_v18, 16  ;;  %297 = vst [vmem:[#allocation2 + $0x2c] sm:$0x1] %v296_v19  ;;  %v878_v25 = vshll.u32 %v7164_v20, 16  ;;  %v5968_v26 = vcombine.low %v805_v17, %v806_v18  ;;  %v337_v27 = vld [vmem:[%s7160_s29] sm:$0xf] }
  0x18   : > { %v338_v28 = vld [vmem:[%s7160_s29 + $0x4] sm:$0xf]  ;;  %v861_v29 = vrot.slane %v859_v21, 4  ;;  %v864_v30 = vrot.slane %v862_v22, 5  ;;  %v870_v31 = vrot.slane %v868_v23, 5  ;;  %v372_v35 = vshrl.u32 %v337_v27, 16 }
  0x19   : > { %v874_v32 = vrot.slane %v872_v24, 4  ;;  %v339_v33 = vld [vmem:[%s7160_s29 + $0x8] sm:$0xf]  ;;  %v880_v34 = vrot.slane %v878_v25, 5  ;;  %6682 = vmatprep.mubr.msk.bf16.mxu1 %vm1299_vm9, %v5968_v26  ;;  %v375_v36 = vshll.u32 %v337_v27, 16  ;;  %v380_v37 = vshrl.u32 %v338_v28, 16 }
  0x1a   : > { %v340_v38 = vld [vmem:[%s7160_s29 + $0xc] sm:$0xf]  ;;  %v865_v40 = vor.u32 %v864_v30, %v861_v29  ;;  %v383_v42 = vshll.u32 %v338_v28, 16  ;;  %v389_v43 = vshrl.u32 %v339_v33, 16  ;;  %v374_v45 = vrot.slane %v372_v35, 7 }
  0x1b   : > { %v875_v41 = vor.u32 %v874_v32, %v870_v31  ;;  %v382_v46 = vrot.slane %v380_v37, 7  ;;  %v693_v47 = vld [vmem:[#allocation2 + $0xc] sm:$0xf]  ;;  %v392_v48 = vshll.u32 %v339_v33, 16  ;;  %v397_v49 = vshrl.u32 %v340_v38, 16 }
  0x1c   : > { %v866_v50 = vrot.slane %v865_v40, 4  ;;  %v697_v53 = vld [vmem:[#allocation2 + $0x14] sm:$0x1]  ;;  %v391_v54 = vrot.slane %v389_v43, 7  ;;  %v400_v55 = vshll.u32 %v340_v38, 16  ;;  %v377_v56 = vor.u32 %v375_v36, %v374_v45 }
  0x1d   : > { %v876_v51 = vrot.slane %v875_v41, 4  ;;  %v378_v57 = vrot.slane %v374_v45, 4  ;;  %v385_v58 = vor.u32 %v383_v42, %v382_v46  ;;  %v387_v59 = vrot.slane %v382_v46, 4  ;;  %v700_v60 = vld [vmem:[#allocation2 + $0x18] sm:$0xf] }
  0x1e   : > { %v341_v61 = vld [vmem:[%s7160_s29 + $0x10] sm:$0xf]  ;;  %v871_v62 = vsel %vm7180_vm11, %v866_v50, %v870_v31  ;;  %v394_v0 = vor.u32 %v392_v48, %v391_v54  ;;  %v395_v1 = vrot.slane %v391_v54, 4  ;;  %v342_v2 = vld [vmem:[%s7160_s29 + $0x14] sm:$0xf]  ;;  %v694_v8 = vsel %vm7174_vm10, %v377_v56, %v693_v47  ;;  %v7013_v46 = vld [vmem:[%s9463_s1 + $0x18] sm:$0xff]  }
  0x1f   : > { %v881_v63 = vsel %vm7180_vm11, %v876_v51, %v880_v34  ;;  %v386_v7 = vsel %vm7186_vm12, %v378_v57, %v385_v58  ;;  %v698_v9 = vsel %vm7123_vm4, %v387_v59, %v697_v53  ;;  %v704_v10 = vld [vmem:[#allocation2 + $0x20] sm:$0x1]  ;;  %v248_v11 = vld [vmem:[#allocation2 + $0x30] sm:$0x1]  ;;  %v298_v12 = vld [vmem:[#allocation2 + $0x38] sm:$0x1]  ;;  %6748 = vmatprep.subr.bf16.mxu1 %v7013_v46 }
  0x20   : > { %v5935_v6 = vcombine.low %v871_v62, %v881_v63  ;;  %v343_v13 = vld [vmem:[%s7160_s29 + $0x18] sm:$0xf]  ;;  %695 = vst [vmem:[#allocation2 + $0xc] sm:$0xf] %v694_v8  ;;  %696 = vst.msk [vmem:[#allocation2 + $0x10] sm:$0xf] %vm226_vm0, %v386_v7  ;;  %v701_v15 = vsel %vm7174_vm10, %v394_v0, %v700_v60 }
  0x21   : > { %699 = vst [vmem:[#allocation2 + $0x14] sm:$0x1] %v698_v9  ;;  %v399_v14 = vrot.slane %v397_v49, 7  ;;  %v406_v16 = vshrl.u32 %v341_v61, 16  ;;  %v409_v17 = vshll.u32 %v341_v61, 16  ;;  %v414_v19 = vshrl.u32 %v342_v2, 16 }
  0x22   : > { %v344_v18 = vld [vmem:[%s7160_s29 + $0x1c] sm:$0xf]  ;;  %6648 = vmatprep.mubr.msk.bf16.mxu0 %vm1299_vm9, %v5935_v6  ;;  %702 = vst [vmem:[#allocation2 + $0x18] sm:$0xf] %v701_v15  ;;  %v417_v21 = vshll.u32 %v342_v2, 16  ;;  %v249_v23 = vsel %vm7123_vm4, 0, %v248_v11 }
  0x23   : > { %v707_v22 = vld [vmem:[#allocation2 + $0x24] sm:$0xf]  ;;  %v299_v24 = vsel %vm7128_vm5, 0, %v298_v12  ;;  %v402_v25 = vor.u32 %v400_v55, %v399_v14  ;;  %v404_v26 = vrot.slane %v399_v14, 4  ;;  %v408_v27 = vrot.slane %v406_v16, 7 }
  0x24   : > { %250 = vst [vmem:[#allocation2 + $0x30] sm:$0x1] %v249_v23  ;;  %300 = vst [vmem:[#allocation2 + $0x38] sm:$0x1] %v299_v24  ;;  %v423_v28 = vshrl.u32 %v343_v13, 16  ;;  %v416_v30 = vrot.slane %v414_v19, 7 }
  0x25   : > { %v251_v29 = vld [vmem:[#allocation2 + $0x3c] sm:$0x1]  ;;  %v426_v31 = vshll.u32 %v343_v13, 16  ;;  %v431_v32 = vshrl.u32 %v344_v18, 16  ;;  %v434_v33 = vshll.u32 %v344_v18, 16  ;;  %v403_v35 = vsel %vm7186_vm12, %v395_v1, %v402_v25 }
  0x26   : > { %v301_v34 = vld [vmem:[#allocation2 + $0x44] sm:$0x1]  ;;  %v705_v36 = vsel %vm7123_vm4, %v404_v26, %v704_v10  ;;  %v411_v37 = vor.u32 %v409_v17, %v408_v27  ;;  %v412_v38 = vrot.slane %v408_v27, 4  ;;  %v711_v40 = vld [vmem:[#allocation2 + $0x2c] sm:$0x1]  ;;  %v419_v41 = vor.u32 %v417_v21, %v416_v30 }
  0x27   : > { %703 = vst.msk [vmem:[#allocation2 + $0x1c] sm:$0xf] %vm226_vm0, %v403_v35  ;;  %706 = vst [vmem:[#allocation2 + $0x20] sm:$0x1] %v705_v36  ;;  %v421_v42 = vrot.slane %v416_v30, 4  ;;  %v425_v43 = vrot.slane %v423_v28, 7 }
  0x28   : > { %v7217_v45 = vrot.slane %v431_v32, 7  ;;  %v708_v47 = vsel %vm7174_vm10, %v411_v37, %v707_v22  ;;  %v252_v48 = vsel %vm7123_vm4, 0, %v251_v29  ;;  %v302_v49 = vsel %vm7128_vm5, 0, %v301_v34  ;;  %v7229_v50 = vld [vmem:[%s7160_s29 + $0x20] sm:$0xf] }
  0x29   : > { %v807_v51 = vld [vmem:[#allocation2 + $0xc] sm:$0xf]  ;;  %v7231_v53 = vld [vmem:[#allocation2 + $0x10] sm:$0xf]  ;;  %v840_v54 = vld [vmem:[#allocation2 + $0x14] sm:$0x1]  ;;  %v420_v55 = vsel %vm7186_vm12, %v412_v38, %v419_v41  ;;  %v712_v56 = vsel %vm7123_vm4, %v421_v42, %v711_v40  ;;  %v428_v57 = vor.u32 %v426_v31, %v425_v43 }
  0x2a   : > { %709 = vst [vmem:[#allocation2 + $0x24] sm:$0xf] %v708_v47  ;;  %253 = vst [vmem:[#allocation2 + $0x3c] sm:$0x1] %v252_v48  ;;  %v883_v58 = vshrl.u32 %v807_v51, 16  ;;  %v886_v59 = vshll.u32 %v807_v51, 16  ;;  %v5969_v0 = vcombine.low %v807_v51, %v7231_v53  ;;  %v436_v1 = vor.u32 %v434_v33, %v7217_v45 }
  0x2b   : > { %303 = vst [vmem:[#allocation2 + $0x44] sm:$0x1] %v302_v49  ;;  %v892_v60 = vshll.u32 %v7231_v53, 16  ;;  %v896_v61 = vshrl.u32 %v7231_v53, 16  ;;  %v809_v62 = vld [vmem:[#allocation2 + $0x18] sm:$0xf] }
  0x2c   : > { %710 = vst.msk [vmem:[#allocation2 + $0x28] sm:$0xf] %vm226_vm0, %v420_v55  ;;  %713 = vst [vmem:[#allocation2 + $0x2c] sm:$0x1] %v712_v56  ;;  %v902_v63 = vshll.u32 %v840_v54, 16  ;;  %v440_v6 = vshrl.u32 %v7229_v50, 16  ;;  %6683 = vmatmul.mubr.msk.bf16.vlgmr.msra.gmra.mxu1 %vm1299_vm9, %v5969_v0 }
  0x2d   : > { %v714_v2 = vld [vmem:[#allocation2 + $0x30] sm:$0xf]  ;;  %v885_v7 = vrot.slane %v883_v58, 4  ;;  %v888_v8 = vrot.slane %v886_v59, 5  ;;  %v894_v9 = vrot.slane %v892_v60, 5  ;;  %v898_v10 = vrot.slane %v896_v61, 4  ;;  %6749 = vmatpush3.bf16.msra.mxu1 %v7013_v46 }
  0x2e   : > { %v904_v11 = vrot.slane %v902_v63, 5  ;;  %v907_v12 = vshrl.u32 %v809_v62, 16  ;;  %v910_v13 = vshll.u32 %v809_v62, 16  ;;  %v429_v14 = vrot.slane %v425_v43, 4  ;;  %v810_v17 = vld [vmem:[#allocation2 + $0x1c] sm:$0xf] }
  0x2f   : > { %v889_v15 = vor.u32 %v888_v8, %v885_v7  ;;  %v899_v16 = vor.u32 %v898_v10, %v894_v9  ;;  %v841_v18 = vld [vmem:[#allocation2 + $0x20] sm:$0x1]  ;;  %v438_v19 = vrot.slane %v7217_v45, 4  ;;  %v715_v21 = vsel %vm7174_vm10, %v428_v57, %v714_v2  ;;  %v718_v47 = vld [vmem:[#allocation2 + $0x38] sm:$0x1] }
  0x30   : > { %v909_v22 = vrot.slane %v907_v12, 4  ;;  %v912_v23 = vrot.slane %v910_v13, 5  ;;  %v916_v24 = vshll.u32 %v810_v17, 16  ;;  %v920_v25 = vshrl.u32 %v810_v17, 16  ;;  %716 = vst [vmem:[#allocation2 + $0x30] sm:$0xf] %v715_v21 }
  0x31   : > { %v890_v26 = vrot.slane %v889_v15, 4  ;;  %v900_v27 = vrot.slane %v899_v16, 4  ;;  %v926_v28 = vshll.u32 %v841_v18, 16  ;;  %v5970_v29 = vcombine.low %v809_v62, %v810_v17  ;;  %v811_v30 = vld [vmem:[#allocation2 + $0x24] sm:$0xf] }
  0x32   : > { %v913_v31 = vor.u32 %v912_v23, %v909_v22  ;;  %v918_v32 = vrot.slane %v916_v24, 5  ;;  %v922_v33 = vrot.slane %v920_v25, 4  ;;  %v437_v36 = vsel %vm7186_vm12, %v429_v14, %v436_v1  ;;  %v7014_v48 = vld [vmem:[%s9463_s1 + $0x20] sm:$0xff]   ;;  %v254_v18 = vld [vmem:[#allocation2 + $0x48] sm:$0x1] }
  0x33   : > { %v812_v34 = vld [vmem:[#allocation2 + $0x28] sm:$0xf]  ;;  %v842_v35 = vld [vmem:[#allocation2 + $0x2c] sm:$0x1]  ;;  %v895_v37 = vsel %vm7180_vm11, %v890_v26, %v894_v9  ;;  %v905_v38 = vsel %vm7180_vm11, %v900_v27, %v904_v11  ;;  %v928_v40 = vrot.slane %v926_v28, 5  ;;  %6686 = vmatprep.mubr.msk.bf16.mxu1 %vm1299_vm9, %v5970_v29  ;;  %v931_v41 = vshrl.u32 %v811_v30, 16 }
  0x34   : > { %717 = vst.msk [vmem:[#allocation2 + $0x34] sm:$0xf] %vm226_vm0, %v437_v36  ;;  %v5936_v42 = vcombine.low %v895_v37, %v905_v38  ;;  %v914_v43 = vrot.slane %v913_v31, 4  ;;  %v923_v45 = vor.u32 %v922_v33, %v918_v32  ;;  %v934_v46 = vshll.u32 %v811_v30, 16  ;;  %v346_v60 = vld [vmem:[%s7160_s29 + $0x24] sm:$0xf] }
  0x35   : > { %v933_v49 = vrot.slane %v931_v41, 4  ;;  %v940_v51 = vshll.u32 %v812_v34, 16  ;;  %v944_v54 = vshrl.u32 %v812_v34, 16  ;;  %v950_v55 = vshll.u32 %v842_v35, 16  ;;  %v721_v24 = vld [vmem:[#allocation2 + $0x3c] sm:$0xf] }
  0x36   : > { %6649 = vmatmul.mubr.msk.bf16.vlgmr.msra.gmra.mxu0 %vm1299_vm9, %v5936_v42  ;;  %v919_v56 = vsel %vm7180_vm11, %v914_v43, %v918_v32  ;;  %v924_v57 = vrot.slane %v923_v45, 4  ;;  %v936_v58 = vrot.slane %v934_v46, 5  ;;  %v5971_v59 = vcombine.low %v811_v30, %v812_v34  ;;  %v304_v27 = vld [vmem:[#allocation2 + $0x50] sm:$0x1]  ;;  %v347_v28 = vld [vmem:[%s7160_s29 + $0x28] sm:$0xf] }
  0x37   : > { %6715 = vmatpush3.bf16.msra.mxu0 %v7135_v5  ;;  %v942_v61 = vrot.slane %v940_v51, 5  ;;  %v946_v62 = vrot.slane %v944_v54, 4  ;;  %v952_v63 = vrot.slane %v950_v55, 5  ;;  %v719_v0 = vsel %vm7123_vm4, %v438_v19, %v718_v47  ;;  %v813_v1 = vld [vmem:[#allocation2 + $0x30] sm:$0xf] }
  0x38   : > { %v929_v2 = vsel %vm7180_vm11, %v924_v57, %v928_v40  ;;  %v937_v7 = vor.u32 %v936_v58, %v933_v49  ;;  %6687 = vmatmul.mubr.msk.bf16.gmra.mxu1 %vm1299_vm9, %v5971_v59  ;;  %720 = vst [vmem:[#allocation2 + $0x38] sm:$0x1] %v719_v0  ;;  %v955_v8 = vshrl.u32 %v813_v1, 16  ;;  %v958_v9 = vshll.u32 %v813_v1, 16  ;;  %6782 = vmatprep.subr.bf16.mxu0 %v7014_v48  ;;  %v348_v33 = vld [vmem:[%s7160_s29 + $0x2c] sm:$0xf] }
  0x39   : > { %v5937_v10 = vcombine.low %v919_v56, %v929_v2  ;;  %v947_v11 = vor.u32 %v946_v62, %v942_v61  ;;  %v442_v5 = vrot.slane %v440_v6, 7  ;;  %v443_v12 = vshll.u32 %v7229_v50, 16  ;;  %v725_v38 = vld [vmem:[#allocation2 + $0x44] sm:$0x1]  ;;  %v257_v40 = vld [vmem:[#allocation2 + $0x54] sm:$0x1] }
  0x3a   : > { %v938_v13 = vrot.slane %v937_v7, 4  ;;  %v957_v15 = vrot.slane %v955_v8, 4  ;;  %v960_v16 = vrot.slane %v958_v9, 5  ;;  %v448_v17 = vshrl.u32 %v346_v60, 16  ;;  %v307_v54 = vld [vmem:[#allocation2 + $0x5c] sm:$0x1] }
  0x3b   : > { %v814_v14 = vld [vmem:[#allocation2 + $0x34] sm:$0xf]  ;;  %6652 = vmatprep.mubr.msk.bf16.mxu0 %vm1299_vm9, %v5937_v10  ;;  %v948_v19 = vrot.slane %v947_v11, 4  ;;  %v445_v50 = vor.u32 %v443_v12, %v442_v5  ;;  %v446_v26 = vrot.slane %v442_v5, 4  ;;  %v451_v36 = vshll.u32 %v346_v60, 16 }
  0x3c   : > { %v964_v21 = vshll.u32 %v814_v14, 16  ;;  %v968_v22 = vshrl.u32 %v814_v14, 16  ;;  %v5972_v23 = vcombine.low %v813_v1, %v814_v14  ;;  %v943_v6 = vsel %vm7180_vm11, %v938_v13, %v942_v61  ;;  %v349_v55 = vld [vmem:[%s7160_s29 + $0x30] sm:$0xf]  ;;  %v350_v60 = vld [vmem:[%s7160_s29 + $0x34] sm:$0xf] }
  0x3d   : > { %v961_v25 = vor.u32 %v960_v16, %v957_v15  ;;  %v953_v29 = vsel %vm7180_vm11, %v948_v19, %v952_v63  ;;  %v450_v32 = vrot.slane %v448_v17, 7  ;;  %v722_v37 = vsel %vm7174_vm10, %v445_v50, %v721_v24  ;;  %v260_v1 = vld [vmem:[#allocation2 + $0x60] sm:$0x1]  ;;  %v310_v10 = vld [vmem:[#allocation2 + $0x68] sm:$0x1] }
  0x3e   : > { %v966_v30 = vrot.slane %v964_v21, 5  ;;  %v970_v31 = vrot.slane %v968_v22, 4  ;;  %6690 = vmatprep.mubr.msk.bf16.mxu1 %vm1299_vm9, %v5972_v23  ;;  %v5938_v34 = vcombine.low %v943_v6, %v953_v29  ;;  %723 = vst [vmem:[#allocation2 + $0x3c] sm:$0xf] %v722_v37  ;;  %v255_v45 = vsel %vm7123_vm4, 0, %v254_v18 }
  0x3f   : > { %v962_v35 = vrot.slane %v961_v25, 4  ;;  %v843_v41 = vld [vmem:[#allocation2 + $0x38] sm:$0x1]  ;;  %v455_v43 = vrot.slane %v450_v32, 4  ;;  %v305_v46 = vsel %vm7128_vm5, 0, %v304_v27  ;;  %v453_v49 = vor.u32 %v451_v36, %v450_v32 }
  0x40   : > { %v971_v42 = vor.u32 %v970_v31, %v966_v30  ;;  %6653 = vmatmul.mubr.msk.bf16.gmra.mxu0 %vm1299_vm9, %v5938_v34  ;;  %v974_v48 = vshll.u32 %v843_v41, 16  ;;  %256 = vst [vmem:[#allocation2 + $0x48] sm:$0x1] %v255_v45  ;;  %306 = vst [vmem:[#allocation2 + $0x50] sm:$0x1] %v305_v46  ;;  %v457_v51 = vshrl.u32 %v347_v28, 16 }
  0x41   : > { %v967_v47 = vsel %vm7180_vm11, %v962_v35, %v966_v30  ;;  %v726_v57 = vsel %vm7123_vm4, %v455_v43, %v725_v38  ;;  %v460_v58 = vshll.u32 %v347_v28, 16  ;;  %v465_v59 = vshrl.u32 %v348_v33, 16  ;;  %v7302_v18 = vld [vmem:[%s7160_s29 + $0x38] sm:$0xf]  ;;  %v7305_v19 = vld [vmem:[%s7160_s29 + $0x3c] sm:$0xf] }
  0x42   : > { %v972_v56 = vrot.slane %v971_v42, 4  ;;  %v976_v61 = vrot.slane %v974_v48, 5  ;;  %v454_v62 = vsel %vm7186_vm12, %v446_v26, %v453_v49  ;;  %727 = vst [vmem:[#allocation2 + $0x44] sm:$0x1] %v726_v57  ;;  %v459_v63 = vrot.slane %v457_v51, 7 }
  0x43   : > { %v468_v0 = vshll.u32 %v348_v33, 16  ;;  %724 = vst.msk [vmem:[#allocation2 + $0x40] sm:$0xf] %vm226_vm0, %v454_v62  ;;  %v467_v2 = vrot.slane %v465_v59, 7  ;;  %v258_v7 = vsel %vm7123_vm4, 0, %v257_v40  ;;  %v308_v8 = vsel %vm7128_vm5, 0, %v307_v54 }
  0x44   : > { %v474_v9 = vshrl.u32 %v349_v55, 16  ;;  %v977_v11 = vsel %vm7180_vm11, %v972_v56, %v976_v61  ;;  %v462_v5 = vor.u32 %v460_v58, %v459_v63  ;;  %v463_v12 = vrot.slane %v459_v63, 4  ;;  %259 = vst [vmem:[#allocation2 + $0x54] sm:$0x1] %v258_v7  ;;  %309 = vst [vmem:[#allocation2 + $0x5c] sm:$0x1] %v308_v8 }
  0x45   : > { %v477_v13 = vshll.u32 %v349_v55, 16  ;;  %v5939_v14 = vcombine.low %v967_v47, %v977_v11  ;;  %v470_v15 = vor.u32 %v468_v0, %v467_v2  ;;  %v472_v16 = vrot.slane %v467_v2, 4  ;;  %v815_v21 = vld [vmem:[#allocation2 + $0x3c] sm:$0xf] }
  0x46   : > { %v476_v17 = vrot.slane %v474_v9, 7  ;;  %v482_v22 = vshrl.u32 %v350_v60, 16  ;;  %v485_v23 = vshll.u32 %v350_v60, 16  ;;  %v261_v24 = vsel %vm7123_vm4, 0, %v260_v1 }
  0x47   : > { %v311_v6 = vsel %vm7128_vm5, 0, %v310_v10  ;;  %6656 = vmatprep.mubr.msk.bf16.mxu0 %vm1299_vm9, %v5939_v14  ;;  %v979_v25 = vshrl.u32 %v815_v21, 16  ;;  %v982_v50 = vshll.u32 %v815_v21, 16  ;;  %v471_v26 = vsel %vm7186_vm12, %v463_v12, %v470_v15  ;;  %v728_v27 = vld [vmem:[#allocation2 + $0x48] sm:$0xf] }
  0x48   : > { %v732_v28 = vld [vmem:[#allocation2 + $0x50] sm:$0x1]  ;;  %v479_v29 = vor.u32 %v477_v13, %v476_v17  ;;  %262 = vst [vmem:[#allocation2 + $0x60] sm:$0x1] %v261_v24  ;;  %312 = vst [vmem:[#allocation2 + $0x68] sm:$0x1] %v311_v6  ;;  %v729_v30 = vsel %vm7174_vm10, %v462_v5, %v728_v27 }
  0x49   : > { %731 = vst.msk [vmem:[#allocation2 + $0x4c] sm:$0xf] %vm226_vm0, %v471_v26  ;;  %v733_v31 = vsel %vm7123_vm4, %v472_v16, %v732_v28  ;;  %v480_v32 = vrot.slane %v476_v17, 4  ;;  %v484_v33 = vrot.slane %v482_v22, 7  ;;  %v844_v34 = vld [vmem:[#allocation2 + $0x44] sm:$0x1] }
  0x4a   : > { %v981_v35 = vrot.slane %v979_v25, 4  ;;  %v984_v36 = vrot.slane %v982_v50, 5  ;;  %730 = vst [vmem:[#allocation2 + $0x48] sm:$0xf] %v729_v30  ;;  %734 = vst [vmem:[#allocation2 + $0x50] sm:$0x1] %v733_v31 }
  0x4b   : > { %v491_v37 = vshrl.u32 %v7302_v18, 16  ;;  %v816_v38 = vld [vmem:[#allocation2 + $0x40] sm:$0xf]  ;;  %v998_v40 = vshll.u32 %v844_v34, 16  ;;  %v487_v41 = vor.u32 %v485_v23, %v484_v33  ;;  %v489_v42 = vrot.slane %v484_v33, 4 }
  0x4c   : > { %v499_v43 = vshrl.u32 %v7305_v19, 16  ;;  %v985_v45 = vor.u32 %v984_v36, %v981_v35  ;;  %v988_v46 = vshll.u32 %v816_v38, 16  ;;  %v992_v47 = vshrl.u32 %v816_v38, 16  ;;  %v735_v49 = vld [vmem:[#allocation2 + $0x54] sm:$0xf] }
  0x4d   : > { %v5973_v48 = vcombine.low %v815_v21, %v816_v38  ;;  %v739_v51 = vld [vmem:[#allocation2 + $0x5c] sm:$0x1]  ;;  %v488_v54 = vsel %vm7186_vm12, %v480_v32, %v487_v41  ;;  %v736_v55 = vsel %vm7174_vm10, %v479_v29, %v735_v49  ;;  %v494_v57 = vshll.u32 %v7302_v18, 16  ;;  %v263_v33 = vld [vmem:[#allocation2 + $0x6c] sm:$0x1] }
  0x4e   : > { %v740_v56 = vsel %vm7123_vm4, %v489_v42, %v739_v51  ;;  %v986_v58 = vrot.slane %v985_v45, 4  ;;  %v990_v59 = vrot.slane %v988_v46, 5  ;;  %v994_v60 = vrot.slane %v992_v47, 4  ;;  %737 = vst [vmem:[#allocation2 + $0x54] sm:$0xf] %v736_v55 }
  0x4f   : > { %6691 = vmatmul.mubr.msk.bf16.gmra.mxu1 %vm1299_vm9, %v5973_v48  ;;  %738 = vst.msk [vmem:[#allocation2 + $0x58] sm:$0xf] %vm226_vm0, %v488_v54  ;;  %741 = vst [vmem:[#allocation2 + $0x5c] sm:$0x1] %v740_v56  ;;  %v493_v61 = vrot.slane %v491_v37, 7  ;;  %v1860_v62 = vrot.slane %v7164_v20, 5 }
  0x50   : > { %v7331_v63 = vrot.slane %v499_v43, 7  ;;  %v502_v0 = vshll.u32 %v7305_v19, 16  ;;  %v991_v1 = vsel %vm7180_vm11, %v986_v58, %v990_v59  ;;  %v995_v2 = vor.u32 %v994_v60, %v990_v59  ;;  %v818_v8 = vld [vmem:[#allocation2 + $0x4c] sm:$0xf]  ;;  %v742_v21 = vld [vmem:[#allocation2 + $0x60] sm:$0xf] }
  0x51   : > { %v1000_v7 = vrot.slane %v998_v40, 5  ;;  %v497_v9 = vrot.slane %v493_v61, 4  ;;  %v817_v10 = vld [vmem:[#allocation2 + $0x48] sm:$0xf]  ;;  %v845_v11 = vld [vmem:[#allocation2 + $0x50] sm:$0x1]  ;;  %v496_v13 = vor.u32 %v494_v57, %v493_v61 }
  0x52   : > { %v1012_v5 = vshll.u32 %v818_v8, 16  ;;  %v1016_v12 = vshrl.u32 %v818_v8, 16  ;;  %v504_v14 = vor.u32 %v502_v0, %v7331_v63  ;;  %v996_v15 = vrot.slane %v995_v2, 4  ;;  %v313_v34 = vld [vmem:[#allocation2 + $0x74] sm:$0x1] }
  0x53   : > { %v1003_v16 = vshrl.u32 %v817_v10, 16  ;;  %v1006_v17 = vshll.u32 %v817_v10, 16  ;;  %v1022_v18 = vshll.u32 %v845_v11, 16  ;;  %v5974_v23 = vcombine.low %v817_v10, %v818_v8  ;;  %v746_v40 = vld [vmem:[#allocation2 + $0x68] sm:$0x1] }
  0x54   : > { %v1014_v19 = vrot.slane %v1012_v5, 5  ;;  %v1018_v22 = vrot.slane %v1016_v12, 4  ;;  %v505_v24 = vsel %vm7186_vm12, %v497_v9, %v504_v14  ;;  %v1001_v6 = vsel %vm7180_vm11, %v996_v15, %v1000_v7  ;;  %v353_v41 = vld [vmem:[%s7160_s29 + $0x40] sm:$0xf]  ;;  %v354_v58 = vld [vmem:[%s7160_s29 + $0x44] sm:$0xf] }
  0x55   : > { %v1005_v25 = vrot.slane %v1003_v16, 4  ;;  %v1008_v50 = vrot.slane %v1006_v17, 5  ;;  %v1024_v26 = vrot.slane %v1022_v18, 5  ;;  %745 = vst.msk [vmem:[#allocation2 + $0x64] sm:$0xf] %vm226_vm0, %v505_v24  ;;  %v5940_v27 = vcombine.low %v991_v1, %v1001_v6  ;;  %6694 = vmatprep.mubr.msk.bf16.mxu1 %vm1299_vm9, %v5974_v23 }
  0x56   : > { %v1019_v28 = vor.u32 %v1018_v22, %v1014_v19  ;;  %v819_v29 = vld [vmem:[#allocation2 + $0x54] sm:$0xf]  ;;  %v7343_v30 = vld [vmem:[#allocation2 + $0x58] sm:$0xf]  ;;  %v7345_v31 = vld [vmem:[#allocation2 + $0x5c] sm:$0x1]  ;;  %v743_v32 = vsel %vm7174_vm10, %v496_v13, %v742_v21 }
  0x57   : > { %v1009_v35 = vor.u32 %v1008_v50, %v1005_v25  ;;  %v1027_v36 = vshrl.u32 %v819_v29, 16  ;;  %v1030_v37 = vshll.u32 %v819_v29, 16  ;;  %v1036_v38 = vshll.u32 %v7343_v30, 16  ;;  %744 = vst [vmem:[#allocation2 + $0x60] sm:$0xf] %v743_v32  ;;  %6657 = vmatmul.mubr.msk.bf16.gmra.mxu0 %vm1299_vm9, %v5940_v27 }
  0x58   : > { %v1020_v42 = vrot.slane %v1019_v28, 4  ;;  %v1040_v43 = vshrl.u32 %v7343_v30, 16  ;;  %v1046_v45 = vshll.u32 %v7345_v31, 16  ;;  %v5975_v46 = vcombine.low %v819_v29, %v7343_v30  ;;  %v266_v12 = vld [vmem:[#allocation2 + $0x78] sm:$0x1] }
  0x59   : > { %v1010_v47 = vrot.slane %v1009_v35, 4  ;;  %v1029_v48 = vrot.slane %v1027_v36, 4  ;;  %v1032_v49 = vrot.slane %v1030_v37, 5  ;;  %v1038_v51 = vrot.slane %v1036_v38, 5  ;;  %v316_v13 = vld [vmem:[#allocation2 + $0x80] sm:$0x1] }
  0x5a   : > { %v1025_v54 = vsel %vm7180_vm11, %v1020_v42, %v1024_v26  ;;  %v1042_v55 = vrot.slane %v1040_v43, 4  ;;  %v1048_v56 = vrot.slane %v1046_v45, 5  ;;  %6695 = vmatmul.mubr.msk.bf16.gmra.mxu1 %vm1299_vm9, %v5975_v46  ;;  %v506_v57 = vrot.slane %v7331_v63, 4  ;;  %v355_v21 = vld [vmem:[%s7160_s29 + $0x48] sm:$0xf] }
  0x5b   : > { %v1015_v59 = vsel %vm7180_vm11, %v1010_v47, %v1014_v19  ;;  %v1033_v60 = vor.u32 %v1032_v49, %v1029_v48  ;;  %v264_v61 = vsel %vm7123_vm4, 0, %v263_v33  ;;  %v314_v0 = vsel %vm7128_vm5, 0, %v313_v34  ;;  %v356_v33 = vld [vmem:[%s7160_s29 + $0x4c] sm:$0xf]  ;;  %v269_v38 = vld [vmem:[#allocation2 + $0x84] sm:$0x1] }
  0x5c   : > { %v5941_v1 = vcombine.low %v1015_v59, %v1025_v54  ;;  %v1043_v2 = vor.u32 %v1042_v55, %v1038_v51  ;;  %v747_v7 = vsel %vm7123_vm4, %v506_v57, %v746_v40  ;;  %v7368_v8 = vld [vmem:[#allocation2 + $0x64] sm:$0xf]  ;;  %265 = vst [vmem:[#allocation2 + $0x6c] sm:$0x1] %v264_v61  ;;  %315 = vst [vmem:[#allocation2 + $0x74] sm:$0x1] %v314_v0 }
  0x5d   : > { %v508_v63 = vshrl.u32 %v353_v41, 16  ;;  %v1034_v9 = vrot.slane %v1033_v60, 4  ;;  %748 = vst [vmem:[#allocation2 + $0x68] sm:$0x1] %v747_v7  ;;  %v1060_v10 = vshll.u32 %v7368_v8, 16  ;;  %v1064_v11 = vshrl.u32 %v7368_v8, 16 }
  0x5e   : > { %v511_v5 = vshll.u32 %v353_v41, 16  ;;  %6660 = vmatprep.mubr.msk.bf16.mxu0 %vm1299_vm9, %v5941_v1  ;;  %v1044_v14 = vrot.slane %v1043_v2, 4  ;;  %v821_v15 = vld [vmem:[#allocation2 + $0x60] sm:$0xf]  ;;  %v516_v17 = vshrl.u32 %v354_v58, 16  ;;  %v519_v18 = vshll.u32 %v354_v58, 16 }
  0x5f   : > { %v510_v16 = vrot.slane %v508_v63, 7  ;;  %v1039_v19 = vsel %vm7180_vm11, %v1034_v9, %v1038_v51  ;;  %v1051_v22 = vshrl.u32 %v821_v15, 16  ;;  %v1054_v23 = vshll.u32 %v821_v15, 16  ;;  %v319_v46 = vld [vmem:[#allocation2 + $0x8c] sm:$0x1] }
  0x60   : > { %v1062_v24 = vrot.slane %v1060_v10, 5  ;;  %v1049_v6 = vsel %vm7180_vm11, %v1044_v14, %v1048_v56  ;;  %v1066_v25 = vrot.slane %v1064_v11, 4  ;;  %v5976_v50 = vcombine.low %v821_v15, %v7368_v8  ;;  %v357_v47 = vld [vmem:[%s7160_s29 + $0x50] sm:$0xf]  ;;  %v358_v56 = vld [vmem:[%s7160_s29 + $0x54] sm:$0xf] }
  0x61   : > { %v513_v26 = vor.u32 %v511_v5, %v510_v16  ;;  %v5942_v27 = vcombine.low %v1039_v19, %v1049_v6  ;;  %v1053_v28 = vrot.slane %v1051_v22, 4  ;;  %v1056_v29 = vrot.slane %v1054_v23, 5  ;;  %v272_v57 = vld [vmem:[#allocation2 + $0x90] sm:$0x1]  ;;  %v322_v5 = vld [vmem:[#allocation2 + $0x98] sm:$0x1] }
  0x62   : > { %v514_v32 = vrot.slane %v510_v16, 4  ;;  %v1067_v34 = vor.u32 %v1066_v25, %v1062_v24  ;;  %6698 = vmatprep.mubr.msk.bf16.mxu1 %vm1299_vm9, %v5976_v50  ;;  %v518_v35 = vrot.slane %v516_v17, 7  ;;  %v267_v36 = vsel %vm7123_vm4, 0, %v266_v12  ;;  %v7403_v12 = vld [vmem:[%s7160_s29 + $0x58] sm:$0xf] }
  0x63   : > { %v317_v37 = vsel %vm7128_vm5, 0, %v316_v13  ;;  %6661 = vmatmul.mubr.msk.bf16.gmra.mxu0 %vm1299_vm9, %v5942_v27  ;;  %v1057_v40 = vor.u32 %v1056_v29, %v1053_v28  ;;  %v749_v41 = vld [vmem:[#allocation2 + $0x6c] sm:$0xf]  ;;  %v753_v42 = vld [vmem:[#allocation2 + $0x74] sm:$0x1]  ;;  %v525_v43 = vshrl.u32 %v355_v21, 16 }
  0x64   : > { %268 = vst [vmem:[#allocation2 + $0x78] sm:$0x1] %v267_v36  ;;  %318 = vst [vmem:[#allocation2 + $0x80] sm:$0x1] %v317_v37  ;;  %v528_v45 = vshll.u32 %v355_v21, 16  ;;  %v1068_v49 = vrot.slane %v1067_v34, 4  ;;  %v521_v51 = vor.u32 %v519_v18, %v518_v35  ;;  %v750_v55 = vsel %vm7174_vm10, %v513_v26, %v749_v41 }
  0x65   : > { %v7387_v48 = vld [vmem:[#allocation2 + $0x68] sm:$0x1]  ;;  %v523_v54 = vrot.slane %v518_v35, 4  ;;  %v1058_v58 = vrot.slane %v1057_v40, 4  ;;  %751 = vst [vmem:[#allocation2 + $0x6c] sm:$0xf] %v750_v55 }
  0x66   : > { %v1070_v59 = vshll.u32 %v7387_v48, 16  ;;  %v527_v60 = vrot.slane %v525_v43, 7  ;;  %v533_v61 = vshrl.u32 %v356_v33, 16  ;;  %v522_v0 = vsel %vm7186_vm12, %v514_v32, %v521_v51  ;;  %v7419_v32 = vld [vmem:[%s9463_s1 + $0x28] sm:$0xff]   ;;  %v7435_v55 = vld [vmem:[%s7160_s29 + $0x5c] sm:$0xf] }
  0x67   : > { %v754_v1 = vsel %vm7123_vm4, %v523_v54, %v753_v42  ;;  %v536_v2 = vshll.u32 %v356_v33, 16  ;;  %v270_v7 = vsel %vm7123_vm4, 0, %v269_v38  ;;  %v1063_v63 = vsel %vm7180_vm11, %v1058_v58, %v1062_v24  ;;  %752 = vst.msk [vmem:[#allocation2 + $0x70] sm:$0xf] %vm226_vm0, %v522_v0  ;;  %6816 = vmatprep.subr.bf16.mxu1 %v7419_v32 }
  0x68   : > { %v1072_v9 = vrot.slane %v1070_v59, 5  ;;  %755 = vst [vmem:[#allocation2 + $0x74] sm:$0x1] %v754_v1  ;;  %v530_v10 = vor.u32 %v528_v45, %v527_v60  ;;  %v531_v11 = vrot.slane %v527_v60, 4  ;;  %271 = vst [vmem:[#allocation2 + $0x84] sm:$0x1] %v270_v7 }
  0x69   : > { %v535_v13 = vrot.slane %v533_v61, 7  ;;  %v320_v14 = vsel %vm7128_vm5, 0, %v319_v46  ;;  %v542_v15 = vshrl.u32 %v357_v47, 16  ;;  %v545_v16 = vshll.u32 %v357_v47, 16 }
  0x6a   : > { %v1073_v17 = vsel %vm7180_vm11, %v1068_v49, %v1072_v9  ;;  %321 = vst [vmem:[#allocation2 + $0x8c] sm:$0x1] %v320_v14  ;;  %v550_v18 = vshrl.u32 %v358_v56, 16  ;;  %v553_v21 = vshll.u32 %v358_v56, 16  ;;  %v273_v19 = vsel %vm7123_vm4, 0, %v272_v57 }
  0x6b   : > { %v5943_v22 = vcombine.low %v1063_v63, %v1073_v17  ;;  %v538_v23 = vor.u32 %v536_v2, %v535_v13  ;;  %v540_v24 = vrot.slane %v535_v13, 4  ;;  %v756_v6 = vld [vmem:[#allocation2 + $0x78] sm:$0xf]  ;;  %v760_v25 = vld [vmem:[#allocation2 + $0x80] sm:$0x1]  ;;  %v544_v50 = vrot.slane %v542_v15, 7 }
  0x6c   : > { %274 = vst [vmem:[#allocation2 + $0x90] sm:$0x1] %v273_v19  ;;  %v757_v26 = vsel %vm7174_vm10, %v530_v10, %v756_v6  ;;  %v552_v27 = vrot.slane %v550_v18, 7  ;;  %v323_v28 = vsel %vm7128_vm5, 0, %v322_v5  ;;  %v559_v29 = vshrl.u32 %v7403_v12, 16 }
  0x6d   : > { %6664 = vmatprep.mubr.msk.bf16.mxu0 %vm1299_vm9, %v5943_v22  ;;  %v823_v33 = vld [vmem:[#allocation2 + $0x6c] sm:$0xf]  ;;  %v539_v34 = vsel %vm7186_vm12, %v531_v11, %v538_v23  ;;  %758 = vst [vmem:[#allocation2 + $0x78] sm:$0xf] %v757_v26  ;;  %v761_v35 = vsel %vm7123_vm4, %v540_v24, %v760_v25  ;;  %v547_v36 = vor.u32 %v545_v16, %v544_v50  ;;  %v548_v37 = vrot.slane %v544_v50, 4 }
  0x6e   : > { %324 = vst [vmem:[#allocation2 + $0x98] sm:$0x1] %v323_v28  ;;  %v1075_v38 = vshrl.u32 %v823_v33, 16  ;;  %v1078_v40 = vshll.u32 %v823_v33, 16  ;;  %759 = vst.msk [vmem:[#allocation2 + $0x7c] sm:$0xf] %vm226_vm0, %v539_v34  ;;  %v555_v41 = vor.u32 %v553_v21, %v552_v27 }
  0x6f   : > { %762 = vst [vmem:[#allocation2 + $0x80] sm:$0x1] %v761_v35  ;;  %v557_v42 = vrot.slane %v552_v27, 4  ;;  %v7428_v43 = vld [vmem:[#allocation2 + $0x70] sm:$0xf]  ;;  %v1864_v7 = vrot.slane %v7231_v53, 5 }
  0x70   : > { %v7430_v45 = vld [vmem:[#allocation2 + $0x74] sm:$0x1]  ;;  %v763_v46 = vld [vmem:[#allocation2 + $0x84] sm:$0xf]  ;;  %v1077_v47 = vrot.slane %v1075_v38, 4  ;;  %v1080_v49 = vrot.slane %v1078_v40, 5  ;;  %v5977_v57 = vcombine.low %v823_v33, %v7428_v43  ;;  %v556_v58 = vsel %vm7186_vm12, %v548_v37, %v555_v41 }
  0x71   : > { %v1084_v51 = vshll.u32 %v7428_v43, 16  ;;  %v1088_v54 = vshrl.u32 %v7428_v43, 16  ;;  %v1094_v56 = vshll.u32 %v7430_v45, 16  ;;  %v764_v59 = vsel %vm7174_vm10, %v547_v36, %v763_v46  ;;  %v767_v60 = vld [vmem:[#allocation2 + $0x8c] sm:$0x1] }
  0x72   : > { %v1081_v61 = vor.u32 %v1080_v49, %v1077_v47  ;;  %765 = vst [vmem:[#allocation2 + $0x84] sm:$0xf] %v764_v59  ;;  %766 = vst.msk [vmem:[#allocation2 + $0x88] sm:$0xf] %vm226_vm0, %v556_v58  ;;  %v768_v2 = vsel %vm7123_vm4, %v557_v42, %v767_v60  ;;  %6699 = vmatmul.mubr.msk.bf16.gmra.mxu1 %vm1299_vm9, %v5977_v57  ;;  %v7448_v9 = vrot.slane %v559_v29, 7  ;;  %v562_v10 = vshll.u32 %v7403_v12, 16 }
  0x73   : > { %v1086_v0 = vrot.slane %v1084_v51, 5  ;;  %v1090_v1 = vrot.slane %v1088_v54, 4  ;;  %v1096_v63 = vrot.slane %v1094_v56, 5  ;;  %769 = vst [vmem:[#allocation2 + $0x8c] sm:$0x1] %v768_v2  ;;  %v567_v14 = vshrl.u32 %v7435_v55, 16 }
  0x74   : > { %v1082_v11 = vrot.slane %v1081_v61, 4  ;;  %v825_v13 = vld [vmem:[#allocation2 + $0x78] sm:$0xf]  ;;  %v570_v15 = vshll.u32 %v7435_v55, 16  ;;  %v564_v19 = vor.u32 %v562_v10, %v7448_v9  ;;  %v565_v33 = vrot.slane %v7448_v9, 4 }
  0x75   : > { %v1091_v5 = vor.u32 %v1090_v1, %v1086_v0  ;;  %v7453_v16 = vld [vmem:[#allocation2 + $0x7c] sm:$0xf]  ;;  %v1099_v18 = vshrl.u32 %v825_v13, 16  ;;  %v1102_v21 = vshll.u32 %v825_v13, 16  ;;  %v569_v40 = vrot.slane %v567_v14, 7 }
  0x76   : > { %v7455_v17 = vld [vmem:[#allocation2 + $0x80] sm:$0x1]  ;;  %v1087_v22 = vsel %vm7180_vm11, %v1082_v11, %v1086_v0  ;;  %v1108_v12 = vshll.u32 %v7453_v16, 16  ;;  %v1112_v24 = vshrl.u32 %v7453_v16, 16  ;;  %v5978_v26 = vcombine.low %v825_v13, %v7453_v16  ;;  %v770_v41 = vld [vmem:[#allocation2 + $0x90] sm:$0xf] }
  0x77   : > { %v1092_v23 = vrot.slane %v1091_v5, 4  ;;  %v1101_v6 = vrot.slane %v1099_v18, 4  ;;  %v1104_v25 = vrot.slane %v1102_v21, 5  ;;  %v1118_v50 = vshll.u32 %v7455_v17, 16  ;;  %v275_v54 = vld [vmem:[#allocation2 + $0x9c] sm:$0x1] }
  0x78   : > { %v1110_v28 = vrot.slane %v1108_v12, 5  ;;  %v1114_v29 = vrot.slane %v1112_v24, 4  ;;  %6702 = vmatprep.mubr.msk.bf16.mxu1 %vm1299_vm9, %v5978_v26  ;;  %v774_v59 = vld [vmem:[#allocation2 + $0x98] sm:$0x1]  ;;  %v325_v60 = vld [vmem:[#allocation2 + $0xa4] sm:$0x1]  ;;  %v572_v13 = vor.u32 %v570_v15, %v569_v40 }
  0x79   : > { %v1097_v27 = vsel %vm7180_vm11, %v1092_v23, %v1096_v63  ;;  %v1105_v35 = vor.u32 %v1104_v25, %v1101_v6  ;;  %v1120_v36 = vrot.slane %v1118_v50, 5  ;;  %v827_v37 = vld [vmem:[#allocation2 + $0x84] sm:$0xf]  ;;  %v7468_v38 = vld [vmem:[#allocation2 + $0x88] sm:$0xf]  ;;  %v771_v23 = vsel %vm7174_vm10, %v564_v19, %v770_v41 }
  0x7a   : > { %v5944_v34 = vcombine.low %v1087_v22, %v1097_v27  ;;  %v1115_v42 = vor.u32 %v1114_v29, %v1110_v28  ;;  %v7470_v46 = vld [vmem:[#allocation2 + $0x8c] sm:$0x1]  ;;  %v1123_v47 = vshrl.u32 %v827_v37, 16  ;;  %v1126_v49 = vshll.u32 %v827_v37, 16  ;;  %v361_v61 = vld [vmem:[%s7160_s29 + $0x60] sm:$0xf] }
  0x7b   : > { %v1132_v51 = vshll.u32 %v7468_v38, 16  ;;  %v1106_v55 = vrot.slane %v1105_v35, 4  ;;  %v1136_v56 = vshrl.u32 %v7468_v38, 16  ;;  %v1142_v57 = vshll.u32 %v7470_v46, 16  ;;  %v362_v9 = vld [vmem:[%s7160_s29 + $0x64] sm:$0xf] }
  0x7c   : > { %6665 = vmatmul.mubr.msk.bf16.gmra.mxu0 %vm1299_vm9, %v5944_v34  ;;  %v5979_v58 = vcombine.low %v827_v37, %v7468_v38  ;;  %v1116_v0 = vrot.slane %v1115_v42, 4  ;;  %v1125_v1 = vrot.slane %v1123_v47, 4  ;;  %v1128_v2 = vrot.slane %v1126_v49, 5  ;;  %v278_v14 = vld [vmem:[#allocation2 + $0xa8] sm:$0x1] }
  0x7d   : > { %v1134_v63 = vrot.slane %v1132_v51, 5  ;;  %v1111_v10 = vsel %vm7180_vm11, %v1106_v55, %v1110_v28  ;;  %v1138_v11 = vrot.slane %v1136_v56, 4  ;;  %v1144_v5 = vrot.slane %v1142_v57, 5  ;;  %v328_v12 = vld [vmem:[#allocation2 + $0xb0] sm:$0x1] }
  0x7e   : > { %6703 = vmatmul.mubr.msk.bf16.gmra.mxu1 %vm1299_vm9, %v5979_v58  ;;  %v1121_v18 = vsel %vm7180_vm11, %v1116_v0, %v1120_v36  ;;  %v1129_v21 = vor.u32 %v1128_v2, %v1125_v1  ;;  %v574_v22 = vrot.slane %v569_v40, 4  ;;  %v363_v24 = vld [vmem:[%s7160_s29 + $0x68] sm:$0xf]  ;;  %v573_v50 = vsel %vm7186_vm12, %v565_v33, %v572_v13  ;;  %772 = vst [vmem:[#allocation2 + $0x90] sm:$0xf] %v771_v23 }
  0x7f   : > { %v5945_v6 = vcombine.low %v1111_v10, %v1121_v18  ;;  %v1139_v25 = vor.u32 %v1138_v11, %v1134_v63  ;;  %v276_v15 = vsel %vm7123_vm4, 0, %v275_v54  ;;  %773 = vst.msk [vmem:[#allocation2 + $0x94] sm:$0xf] %vm226_vm0, %v573_v50  ;;  %v326_v19 = vsel %vm7128_vm5, 0, %v325_v60  ;;  %v364_v29 = vld [vmem:[%s7160_s29 + $0x6c] sm:$0xf] }
  0x80   : > { %v1130_v26 = vrot.slane %v1129_v21, 4  ;;  %v775_v27 = vsel %vm7123_vm4, %v574_v22, %v774_v59  ;;  %277 = vst [vmem:[#allocation2 + $0x9c] sm:$0x1] %v276_v15  ;;  %v576_v28 = vshrl.u32 %v361_v61, 16  ;;  %327 = vst [vmem:[#allocation2 + $0xa4] sm:$0x1] %v326_v19 }
  0x81   : > { %6668 = vmatprep.mubr.msk.bf16.mxu0 %vm1299_vm9, %v5945_v6  ;;  %v1140_v33 = vrot.slane %v1139_v25, 4  ;;  %776 = vst [vmem:[#allocation2 + $0x98] sm:$0x1] %v775_v27  ;;  %v579_v34 = vshll.u32 %v361_v61, 16  ;;  %v584_v35 = vshrl.u32 %v362_v9, 16  ;;  %v587_v36 = vshll.u32 %v362_v9, 16 }
  0x82   : > { %v281_v37 = vld [vmem:[#allocation2 + $0xb4] sm:$0x1]  ;;  %v331_v40 = vld [vmem:[#allocation2 + $0xbc] sm:$0x1]  ;;  %v1135_v41 = vsel %vm7180_vm11, %v1130_v26, %v1134_v63  ;;  %v578_v42 = vrot.slane %v576_v28, 7  ;;  %v279_v47 = vsel %vm7123_vm4, 0, %v278_v14 }
  0x83   : > { %v329_v49 = vsel %vm7128_vm5, 0, %v328_v12  ;;  %v7505_v51 = vld [vmem:[%s7160_s29 + $0x70] sm:$0xf]  ;;  %v1145_v54 = vsel %vm7180_vm11, %v1140_v33, %v1144_v5  ;;  %v586_v55 = vrot.slane %v584_v35, 7  ;;  %280 = vst [vmem:[#allocation2 + $0xa8] sm:$0x1] %v279_v47 }
  0x84   : > { %330 = vst [vmem:[#allocation2 + $0xb0] sm:$0x1] %v329_v49  ;;  %v593_v56 = vshrl.u32 %v363_v24, 16  ;;  %v596_v57 = vshll.u32 %v363_v24, 16  ;;  %v5946_v58 = vcombine.low %v1135_v41, %v1145_v54  ;;  %v581_v59 = vor.u32 %v579_v34, %v578_v42  ;;  %v366_v27 = vld [vmem:[%s7160_s29 + $0x74] sm:$0xf] }
  0x85   : > { %v582_v60 = vrot.slane %v578_v42, 4  ;;  %v601_v61 = vshrl.u32 %v364_v29, 16  ;;  %v589_v0 = vor.u32 %v587_v36, %v586_v55  ;;  %v591_v1 = vrot.slane %v586_v55, 4  ;;  %v829_v9 = vld [vmem:[#allocation2 + $0x90] sm:$0xf] }
  0x86   : > { %v595_v2 = vrot.slane %v593_v56, 7  ;;  %v604_v63 = vshll.u32 %v364_v29, 16  ;;  %6669 = vmatmul.mubr.msk.bf16.gmra.mxu0 %vm1299_vm9, %v5946_v58  ;;  %v282_v11 = vsel %vm7123_vm4, 0, %v281_v37  ;;  %v332_v5 = vsel %vm7128_vm5, 0, %v331_v40  ;;  %v7515_v14 = vld [vmem:[#allocation2 + $0x94] sm:$0xf] }
  0x87   : > { %v603_v10 = vrot.slane %v601_v61, 7  ;;  %v610_v13 = vshrl.u32 %v7505_v51, 16  ;;  %v1147_v18 = vshrl.u32 %v829_v9, 16  ;;  %v1150_v21 = vshll.u32 %v829_v9, 16  ;;  %v777_v23 = vld [vmem:[#allocation2 + $0x9c] sm:$0xf] }
  0x88   : > { %v590_v22 = vsel %vm7186_vm12, %v582_v60, %v589_v0  ;;  %v598_v12 = vor.u32 %v596_v57, %v595_v2  ;;  %283 = vst [vmem:[#allocation2 + $0xb4] sm:$0x1] %v282_v11  ;;  %333 = vst [vmem:[#allocation2 + $0xbc] sm:$0x1] %v332_v5  ;;  %v7519_v24 = vld [vmem:[#allocation2 + $0x98] sm:$0x1]  ;;  %v5980_v50 = vcombine.low %v829_v9, %v7515_v14 }
  0x89   : > { %v1156_v6 = vshll.u32 %v7515_v14, 16  ;;  %v1160_v25 = vshrl.u32 %v7515_v14, 16  ;;  %v778_v15 = vsel %vm7174_vm10, %v581_v59, %v777_v23  ;;  %780 = vst.msk [vmem:[#allocation2 + $0xa0] sm:$0xf] %vm226_vm0, %v590_v22  ;;  %v781_v26 = vld [vmem:[#allocation2 + $0xa4] sm:$0x1]  ;;  %v606_v37 = vor.u32 %v604_v63, %v603_v10 }
  0x8a   : > { %v1149_v19 = vrot.slane %v1147_v18, 4  ;;  %v1152_v28 = vrot.slane %v1150_v21, 5  ;;  %v1166_v29 = vshll.u32 %v7519_v24, 16  ;;  %779 = vst [vmem:[#allocation2 + $0x9c] sm:$0xf] %v778_v15  ;;  %v782_v33 = vsel %vm7123_vm4, %v591_v1, %v781_v26  ;;  %6706 = vmatprep.mubr.msk.bf16.mxu1 %vm1299_vm9, %v5980_v50 }
  0x8b   : > { %v1158_v34 = vrot.slane %v1156_v6, 5  ;;  %v1162_v35 = vrot.slane %v1160_v25, 4  ;;  %783 = vst [vmem:[#allocation2 + $0xa4] sm:$0x1] %v782_v33  ;;  %v599_v36 = vrot.slane %v595_v2, 4  ;;  %v608_v47 = vrot.slane %v603_v10, 4 }
  0x8c   : > { %v784_v40 = vld [vmem:[#allocation2 + $0xa8] sm:$0xf]  ;;  %v1153_v41 = vor.u32 %v1152_v28, %v1149_v19  ;;  %v1168_v42 = vrot.slane %v1166_v29, 5  ;;  %v788_v54 = vld [vmem:[#allocation2 + $0xb0] sm:$0x1]  ;;  %v7536_v57 = vrot.slane %v610_v13, 7 }
  0x8d   : > { %v785_v49 = vsel %vm7174_vm10, %v598_v12, %v784_v40  ;;  %v1163_v55 = vor.u32 %v1162_v35, %v1158_v34  ;;  %v607_v56 = vsel %vm7186_vm12, %v599_v36, %v606_v37  ;;  %v613_v58 = vshll.u32 %v7505_v51, 16  ;;  %v7539_v59 = vld [vmem:[#allocation2 + $0x14] sm:$0x1]  ;;  %v7557_v6 = vld [vmem:[#allocation2] sm:$0xe] }
  0x8e   : > { %786 = vst [vmem:[#allocation2 + $0xa8] sm:$0xf] %v785_v49  ;;  %v1867_v60 = vrot.slane %v7539_v59, 5  ;;  %v1154_v61 = vrot.slane %v1153_v41, 4  ;;  %787 = vst.msk [vmem:[#allocation2 + $0xac] sm:$0xf] %vm226_vm0, %v607_v56  ;;  %v789_v0 = vsel %vm7123_vm4, %v608_v47, %v788_v54 }
  0x8f   : > { %v618_v1 = vshrl.u32 %v366_v27, 16  ;;  %v1164_v2 = vrot.slane %v1163_v55, 4  ;;  %790 = vst [vmem:[#allocation2 + $0xb0] sm:$0x1] %v789_v0  ;;  %v615_v63 = vor.u32 %v613_v58, %v7536_v57  ;;  %v616_v9 = vrot.slane %v7536_v57, 4 }
  0x90   : > { %v621_v10 = vshll.u32 %v366_v27, 16  ;;  %v791_v11 = vld [vmem:[#allocation2 + $0xb4] sm:$0xf]  ;;  %v1159_v51 = vsel %vm7180_vm11, %v1154_v61, %v1158_v34  ;;  %v7549_v5 = vld [vmem:[#allocation2 + $0xa0] sm:$0xf]  ;;  %v6001_v41 = vrot.slane %v7557_v6, 9 }
  0x91   : > { %v620_v13 = vrot.slane %v618_v1, 7  ;;  %v1169_v18 = vsel %vm7180_vm11, %v1164_v2, %v1168_v42  ;;  %v831_v21 = vld [vmem:[#allocation2 + $0x9c] sm:$0xf]  ;;  %v1180_v22 = vshll.u32 %v7549_v5, 16  ;;  %v1184_v23 = vshrl.u32 %v7549_v5, 16 }
  0x92   : > { %v792_v12 = vsel %vm7174_vm10, %v615_v63, %v791_v11  ;;  %v5947_v25 = vcombine.low %v1159_v51, %v1169_v18  ;;  %v7559_v50 = vld [vmem:[#allocation2 + $0xa4] sm:$0x1]  ;;  %v1171_v15 = vshrl.u32 %v831_v21, 16  ;;  %v1174_v26 = vshll.u32 %v831_v21, 16  ;;  %v795_v40 = vld [vmem:[#allocation2 + $0xbc] sm:$0x1] }
  0x93   : > { %v5981_v27 = vcombine.low %v831_v21, %v7549_v5  ;;  %793 = vst [vmem:[#allocation2 + $0xb4] sm:$0xf] %v792_v12  ;;  %v1182_v19 = vrot.slane %v1180_v22, 5  ;;  %v1186_v28 = vrot.slane %v1184_v23, 4  ;;  %v1190_v29 = vshll.u32 %v7559_v50, 16 }
  0x94   : > { %v623_v33 = vor.u32 %v621_v10, %v620_v13  ;;  %6672 = vmatprep.mubr.msk.bf16.mxu0 %vm1299_vm9, %v5947_v25  ;;  %v1173_v34 = vrot.slane %v1171_v15, 4  ;;  %v1176_v35 = vrot.slane %v1174_v26, 5  ;;  %v625_v37 = vrot.slane %v620_v13, 4  ;;  %v1805_v21 = vld [vmem:[#allocation2 + $0xc] sm:$0xe] }
  0x95   : > { %6707 = vmatmul.mubr.msk.bf16.gmra.mxu1 %vm1299_vm9, %v5981_v27  ;;  %v833_v36 = vld [vmem:[#allocation2 + $0xa8] sm:$0xf]  ;;  %v1187_v42 = vor.u32 %v1186_v28, %v1182_v19  ;;  %v1192_v47 = vrot.slane %v1190_v29, 5  ;;  %v7566_v49 = vld [vmem:[#allocation2 + $0xac] sm:$0xf] }
  0x96   : > { %v1195_v54 = vshrl.u32 %v833_v36, 16  ;;  %v1198_v55 = vshll.u32 %v833_v36, 16  ;;  %v1177_v56 = vor.u32 %v1176_v35, %v1173_v34  ;;  %v7568_v57 = vld [vmem:[#allocation2 + $0xb0] sm:$0x1]  ;;  %v1204_v58 = vshll.u32 %v7566_v49, 16 }
  0x97   : > { %v1208_v61 = vshrl.u32 %v7566_v49, 16  ;;  %v5982_v0 = vcombine.low %v833_v36, %v7566_v49  ;;  %v1188_v1 = vrot.slane %v1187_v42, 4  ;;  %v1214_v10 = vshll.u32 %v7568_v57, 16  ;;  %v7053_v34 = vld [vmem:[#allocation2 + $0x4] sm:$0xf] }
  0x98   : > { %v1197_v2 = vrot.slane %v1195_v54, 4  ;;  %v1200_v63 = vrot.slane %v1198_v55, 5  ;;  %v1178_v11 = vrot.slane %v1177_v56, 4  ;;  %v1206_v51 = vrot.slane %v1204_v58, 5  ;;  %v1807_v58 = vld [vmem:[#allocation2 + $0x24] sm:$0xe] }
  0x99   : > { %v1210_v13 = vrot.slane %v1208_v61, 4  ;;  %6710 = vmatprep.mubr.msk.bf16.mxu1 %vm1299_vm9, %v5982_v0  ;;  %v624_v18 = vsel %vm7186_vm12, %v616_v9, %v623_v33  ;;  %v1193_v22 = vsel %vm7180_vm11, %v1188_v1, %v1192_v47  ;;  %v1216_v12 = vrot.slane %v1214_v10, 5  ;;  %v7054_v10 = vld [vmem:[#allocation2 + $0x1c] sm:$0xf] }
  0x9a   : > { %v1201_v23 = vor.u32 %v1200_v63, %v1197_v2  ;;  %794 = vst.msk [vmem:[#allocation2 + $0xb8] sm:$0xf] %vm226_vm0, %v624_v18  ;;  %v796_v6 = vsel %vm7123_vm4, %v625_v37, %v795_v40  ;;  %v835_v25 = vld [vmem:[#allocation2 + $0xb4] sm:$0xf]  ;;  %v1183_v15 = vsel %vm7180_vm11, %v1178_v11, %v1182_v19  ;;  %v1857_v35 = vrot.slane %v7053_v34, 5 }
  0x9b   : > { %v1211_v26 = vor.u32 %v1210_v13, %v1206_v51  ;;  %797 = vst [vmem:[#allocation2 + $0xbc] sm:$0x1] %v796_v6  ;;  %v1219_v27 = vshrl.u32 %v835_v25, 16  ;;  %v1222_v28 = vshll.u32 %v835_v25, 16  ;;  %v5948_v29 = vcombine.low %v1183_v15, %v1193_v22  ;;  %v1806_v37 = vld [vmem:[#allocation2 + $0x18] sm:$0xe] }
  0x9c   : > { %v1202_v33 = vrot.slane %v1201_v23, 4  ;;  %v6002_v36 = vrot.slane %v1805_v21, 9  ;;  %v1866_v19 = vrot.slane %v1864_v7, 4  ;;  %v1859_v55 = vrot.slane %v1857_v35, 4  ;;  %v7055_v21 = vld [vmem:[#allocation2 + $0x20] sm:$0x1] }
  0x9d   : > { %v1212_v40 = vrot.slane %v1211_v26, 4  ;;  %v1221_v42 = vrot.slane %v1219_v27, 4  ;;  %v1224_v47 = vrot.slane %v1222_v28, 5  ;;  %6673 = vmatmul.mubr.msk.bf16.gmra.mxu0 %vm1299_vm9, %v5948_v29  ;;  %v6003_v2 = vrot.slane %v1806_v37, 9  ;;  %v7056_v27 = vld [vmem:[#allocation2 + $0x28] sm:$0xf] }
  0x9e   : > { %v1207_v54 = vsel %vm7180_vm11, %v1202_v33, %v1206_v51  ;;  %v7599_v56 = vsel %vm7586_vm15, %v6002_v36, %v1864_v7  ;;  %v7607_v1 = vsel %vm7586_vm15, %v1866_v19, %v1867_v60  ;;  %v7611_v53 = vsel %vm7586_vm15, %v6001_v41, %v1857_v35  ;;  %v1808_v51 = vld [vmem:[#allocation2 + $0x30] sm:$0xe]  ;;  %v7057_v29 = vld [vmem:[#allocation2 + $0x2c] sm:$0x1]  ;;  %v7058_v37 = vld [vmem:[#allocation2 + $0x34] sm:$0xf] }
  0x9f   : > { %v1217_v61 = vsel %vm7180_vm11, %v1212_v40, %v1216_v12  ;;  %v1225_v0 = vor.u32 %v1224_v47, %v1221_v42  ;;  %v6020_v7 = vcombine.low %v7599_v56, %v7607_v1  ;;  %v1871_v11 = vrot.slane %v7054_v10, 5  ;;  %v7015_v60 = vld [vmem:[#allocation2 + $0xc] sm:$0xff]   ;;  %v1809_v42 = vld [vmem:[#allocation2 + $0x3c] sm:$0xe]  ;;  %v7059_v10 = vld [vmem:[#allocation2 + $0x38] sm:$0x1] }
  0xa0   : > { %v5949_v63 = vcombine.low %v1207_v54, %v1217_v61  ;;  %v7621_v59 = vsel %vm7586_vm15, %v1859_v55, %v1860_v62  ;;  %v1874_v22 = vrot.slane %v7055_v21, 5  ;;  %v6004_v41 = vrot.slane %v1807_v58, 9  ;;  %v7060_v21 = vld [vmem:[#allocation2 + $0x40] sm:$0xf] }
  0xa1   : > { %v7615_v13 = vld [vmem:[#allocation2 + $0xb8] sm:$0xf]  ;;  %v1226_v18 = vrot.slane %v1225_v0, 4  ;;  %v7631_v20 = vsel %vm7586_vm15, %v6003_v2, %v1871_v11  ;;  %v1873_v26 = vrot.slane %v1871_v11, 4  ;;  %v1878_v28 = vrot.slane %v7056_v27, 5 }
  0xa2   : > { %6676 = vmatprep.mubr.msk.bf16.mxu0 %vm1299_vm9, %v5949_v63  ;;  %v7624_v23 = vld [vmem:[#allocation2 + $0xbc] sm:$0x1]  ;;  %v1228_v12 = vshll.u32 %v7615_v13, 16  ;;  %v1232_v6 = vshrl.u32 %v7615_v13, 16  ;;  %v5983_v15 = vcombine.low %v835_v25, %v7615_v13  ;;  %v1881_v33 = vrot.slane %v7057_v29, 5 }
  0xa3   : > { %v1238_v62 = vshll.u32 %v7624_v23, 16  ;;  %v6005_v36 = vrot.slane %v1808_v51, 9  ;;  %v1885_v40 = vrot.slane %v7058_v37, 5  ;;  %v6019_v47 = vcombine.low %v7611_v53, %v7621_v59  ;;  %v1810_v2 = vld [vmem:[#allocation2 + $0x48] sm:$0xe] }
  0xa4   : > { %v1230_v34 = vrot.slane %v1228_v12, 5  ;;  %v1234_v35 = vrot.slane %v1232_v6, 4  ;;  %6711 = vmatmul.mubr.msk.bf16.gmra.mxu1 %vm1299_vm9, %v5983_v15  ;;  %v7640_v19 = vsel %vm7586_vm15, %v1873_v26, %v1874_v22  ;;  %v1880_v54 = vrot.slane %v1878_v28, 4  ;;  %v7061_v12 = vld [vmem:[#allocation2 + $0x44] sm:$0x1] }
  0xa5   : > { %v1240_v25 = vrot.slane %v1238_v62, 5  ;;  %6750 = vmatprep.mubr.msk.bf16.mxu1 %vm1299_vm9, %v7015_v60  ;;  %v6021_v61 = vcombine.low %v7631_v20, %v7640_v19  ;;  %v7648_v0 = vsel %vm7586_vm15, %v6004_v41, %v1878_v28  ;;  %v1887_v53 = vrot.slane %v1885_v40, 4  ;;  %v7016_v60 = vld [vmem:[#allocation2 + $0x18] sm:$0xff]   ;;  %v1811_v6 = vld [vmem:[#allocation2 + $0x54] sm:$0xe]  ;;  %v7017_v15 = vld [vmem:[#allocation2 + $0x24] sm:$0xff]  }
  0xa6   : > { %v1231_v55 = vsel %vm7180_vm11, %v1226_v18, %v1230_v34  ;;  %v1235_v58 = vor.u32 %v1234_v35, %v1230_v34  ;;  %v7652_v63 = vsel %vm7586_vm15, %v1880_v54, %v1881_v33  ;;  %v1888_v11 = vrot.slane %v7059_v10, 5  ;;  %v7062_v27 = vld [vmem:[#allocation2 + $0x4c] sm:$0xf]  ;;  %v7063_v29 = vld [vmem:[#allocation2 + $0x50] sm:$0x1] }
  0xa7   : > { %v6006_v51 = vrot.slane %v1809_v42, 9  ;;  %v7656_v18 = vsel %vm7586_vm15, %v6005_v36, %v1885_v40  ;;  %v1892_v22 = vrot.slane %v7060_v21, 5  ;;  %v1895_v41 = vrot.slane %v7061_v12, 5  ;;  %v1812_v40 = vld [vmem:[#allocation2 + $0x60] sm:$0xe] }
  0xa8   : > { %v1236_v59 = vrot.slane %v1235_v58, 4  ;;  %v7660_v62 = vsel %vm7586_vm15, %v1887_v53, %v1888_v11  ;;  %v6007_v26 = vrot.slane %v1810_v2, 9  ;;  %v1899_v28 = vrot.slane %v7062_v27, 5  ;;  %v1813_v53 = vld [vmem:[#allocation2 + $0x6c] sm:$0xe] }
  0xa9   : > { %v1902_v33 = vrot.slane %v7063_v29, 5  ;;  %v6022_v35 = vcombine.low %v7648_v0, %v7652_v63  ;;  %v7668_v36 = vsel %vm7586_vm15, %v6006_v51, %v1892_v22  ;;  %v1894_v37 = vrot.slane %v1892_v22, 4  ;;  %v1814_v22 = vld [vmem:[#allocation2 + $0x78] sm:$0xe]  ;;  %v1815_v27 = vld [vmem:[#allocation2 + $0x84] sm:$0xe] }
  0xaa   : > { %v1241_v34 = vsel %vm7180_vm11, %v1236_v59, %v1240_v25  ;;  %v6023_v54 = vcombine.low %v7656_v18, %v7660_v62  ;;  %v1901_v58 = vrot.slane %v1899_v28, 4  ;;  %v6008_v2 = vrot.slane %v1811_v6, 9  ;;  %v7846_v18 = vld [vmem:[#allocation2 + $0x1c] sm:$0xf]  ;;  %v7022_v62 = vld [vmem:[#allocation2 + $0x60] sm:$0xff]  }
  0xab   : > { %v5950_v42 = vcombine.low %v1231_v55, %v1241_v34  ;;  %v7675_v25 = vsel %vm7586_vm15, %v1894_v37, %v1895_v41  ;;  %v7679_v10 = vsel %vm7586_vm15, %v6007_v26, %v1899_v28  ;;  %v1906_v11 = vrot.slane %v7343_v30, 5  ;;  %v7018_v28 = vld [vmem:[#allocation2 + $0x30] sm:$0xff]  }
  0xac   : > { %6751 = vmatmul.mubr.msk.bf16.vlgmr.msra.gmra.mxu1 %vm1299_vm9, %v7016_v60  ;;  %v1909_v55 = vrot.slane %v7345_v31, 5  ;;  %v6024_v51 = vcombine.low %v7668_v36, %v7675_v25  ;;  %v7689_v59 = vsel %vm7586_vm15, %v1901_v58, %v1902_v33  ;;  %v6009_v60 = vrot.slane %v1812_v40, 9  ;;  %v1816_v34 = vld [vmem:[#allocation2 + $0x90] sm:$0xe] }
  0xad   : > { %6677 = vmatmul.mubr.msk.bf16.gmra.mxu0 %vm1299_vm9, %v5950_v42  ;;  %6754 = vmatprep.mubr.msk.bf16.mxu1 %vm1299_vm9, %v7017_v15  ;;  %v1913_v21 = vrot.slane %v7368_v8, 5  ;;  %v7695_v30 = vsel %vm7586_vm15, %v6008_v2, %v1906_v11  ;;  %v1908_v31 = vrot.slane %v1906_v11, 4  ;;  %v1916_v12 = vrot.slane %v7387_v48, 5 }
  0xae   : > { %6716 = vmatprep.mubr.msk.bf16.mxu0 %vm1299_vm9, %v6019_v47  ;;  %v6010_v41 = vrot.slane %v1813_v53, 9  ;;  %6817 = vmatpush3.bf16.msra.mxu1 %v7419_v32  ;;  %v6025_v6 = vcombine.low %v7679_v10, %v7689_v59  ;;  %v1920_v26 = vrot.slane %v7428_v43, 5  ;;  %v1923_v8 = vrot.slane %v7430_v45, 5  ;;  %v7706_v47 = vld [vmem:[%s9463_s1 + $0x38] sm:$0xff]   ;;  %v7881_v10 = vld [vmem:[#allocation2 + $0x2c] sm:$0x1] }
  0xaf   : > { %v1915_v15 = vrot.slane %v1913_v21, 4  ;;  %v7710_v48 = vsel %vm7586_vm15, %v1908_v31, %v1909_v55  ;;  %v6011_v32 = vrot.slane %v1814_v22, 9  ;;  %v1927_v29 = vrot.slane %v7453_v16, 5  ;;  %v7019_v43 = vld [vmem:[#allocation2 + $0x3c] sm:$0xff]   ;;  %6884 = vmatprep.subr.bf16.mxu1 %v7706_v47  ;;  %v7742_v22 = vld [vmem:[%s9463_s1 + $0x30] sm:$0xff]  }
  0xb0   : > { %v1930_v33 = vrot.slane %v7455_v17, 5  ;;  %v6026_v45 = vcombine.low %v7695_v30, %v7710_v48  ;;  %v7718_v37 = vsel %vm7586_vm15, %v6009_v60, %v1913_v21  ;;  %v7722_v40 = vsel %vm7586_vm15, %v6010_v41, %v1920_v26  ;;  %v1817_v53 = vld [vmem:[#allocation2 + $0x9c] sm:$0xe] }
  0xb1   : > { %v1922_v42 = vrot.slane %v1920_v26, 4  ;;  %v7727_v16 = vsel %vm7586_vm15, %v1915_v15, %v1916_v12  ;;  %v7731_v17 = vsel %vm7586_vm15, %v6011_v32, %v1927_v29  ;;  %v1929_v58 = vrot.slane %v1927_v29, 4 }
  0xb2   : > { %v6012_v2 = vrot.slane %v1815_v27, 9  ;;  %v1934_v55 = vrot.slane %v7468_v38, 5  ;;  %v1937_v60 = vrot.slane %v7470_v46, 5  ;;  %v6013_v21 = vrot.slane %v1816_v34, 9  ;;  %v1818_v46 = vld [vmem:[#allocation2 + $0xa8] sm:$0xe] }
  0xb3   : > { %v7735_v11 = vsel %vm7586_vm15, %v1922_v42, %v1923_v8  ;;  %v7749_v12 = vsel %vm7586_vm15, %v1929_v58, %v1930_v33  ;;  %v1941_v41 = vrot.slane %v7515_v14, 5  ;;  %v1944_v38 = vrot.slane %v7519_v24, 5  ;;  %v7064_v14 = vld [vmem:[%s9463_s1 + $0x20] sm:$0xff]   ;;  %v7020_v33 = vld [vmem:[#allocation2 + $0x48] sm:$0xff]   ;;  %v367_v42 = vld [vmem:[%s7160_s29 + $0x78] sm:$0xf] }
  0xb4   : > { %6755 = vmatmul.mubr.msk.bf16.gmra.mxu1 %vm1299_vm9, %v7018_v28  ;;  %v6028_v31 = vcombine.low %v7722_v40, %v7735_v11  ;;  %v6029_v15 = vcombine.low %v7731_v17, %v7749_v12  ;;  %v7762_v26 = vsel %vm7586_vm15, %v6012_v2, %v1934_v55  ;;  %v1936_v8 = vrot.slane %v1934_v55, 4  ;;  %v1819_v28 = vld [vmem:[#allocation2 + $0xb4] sm:$0xe]  ;;  %v368_v55 = vld [vmem:[%s7160_s29 + $0x7c] sm:$0xf]  ;;  %v7028_v40 = vld [vmem:[#allocation2 + $0xa8] sm:$0xff]  }
  0xb5   : > { %6717 = vmatmul.mubr.msk.bf16.vlgmr.msra.gmra.mxu0 %vm1299_vm9, %v6020_v7  ;;  %6758 = vmatprep.mubr.msk.bf16.mxu1 %vm1299_vm9, %v7019_v43  ;;  %v6014_v27 = vrot.slane %v1817_v53, 9  ;;  %v7773_v24 = vsel %vm7586_vm15, %v6013_v21, %v1941_v41  ;;  %v1943_v56 = vrot.slane %v1941_v41, 4  ;;  %v1948_v1 = vrot.slane %v7549_v5, 5 }
  0xb6   : > { %6783 = vmatpush3.bf16.msra.mxu0 %v7064_v14  ;;  %6720 = vmatprep.mubr.msk.bf16.mxu0 %vm1299_vm9, %v6021_v61  ;;  %v1951_v7 = vrot.slane %v7559_v50, 5  ;;  %v7779_v32 = vsel %vm7586_vm15, %v1936_v8, %v1937_v60  ;;  %v6015_v29 = vrot.slane %v1818_v46, 9  ;;  %v1955_v20 = vrot.slane %v7566_v49, 5  ;;  %v284_v61 = vld [vmem:[#allocation2 + $0xc0] sm:$0x1]  ;;  %v7021_v49 = vld [vmem:[#allocation2 + $0x54] sm:$0xff]  }
  0xb7   : > { %v1958_v19 = vrot.slane %v7568_v57, 5  ;;  %6850 = vmatprep.subr.bf16.mxu0 %v7742_v22  ;;  %v6030_v5 = vcombine.low %v7762_v26, %v7779_v32  ;;  %v7788_v50 = vsel %vm7586_vm15, %v1943_v56, %v1944_v38  ;;  %v7792_v34 = vsel %vm7586_vm15, %v6014_v27, %v1948_v1  ;;  %v2627_v46 = vld [vmem:[#allocation2 + $0xc] sm:$0xf]  ;;  %v2645_v32 = vld [vmem:[#allocation2 + $0x54] sm:$0xf] }
  0xb8   : > { %v1950_v43 = vrot.slane %v1948_v1, 4  ;;  %v7799_v58 = vsel %vm7586_vm15, %v6015_v29, %v1955_v20  ;;  %v1957_v2 = vrot.slane %v1955_v20, 4  ;;  %v6016_v53 = vrot.slane %v1819_v28, 9  ;;  %v7816_v1 = vld [vmem:[#allocation2 + $0x10] sm:$0xf] }
  0xb9   : > { %v1962_v21 = vrot.slane %v7615_v13, 5  ;;  %v1965_v41 = vrot.slane %v7624_v23, 5  ;;  %v285_v38 = vsel %vm7123_vm4, 0, %v284_v61  ;;  %v627_v14 = vshrl.u32 %v367_v42, 16  ;;  %v3357_v57 = vld [vmem:[#allocation2 + $0xc] sm:$0xe] }
  0xba   : > { %v7804_v60 = vsel %vm7586_vm15, %v1950_v43, %v1951_v7  ;;  %v7814_v27 = vsel %vm7586_vm15, %v1957_v2, %v1958_v19  ;;  %286 = vst [vmem:[#allocation2 + $0xc0] sm:$0x1] %v285_v38  ;;  %v630_v56 = vshll.u32 %v367_v42, 16  ;;  %v635_v28 = vshrl.u32 %v368_v55, 16  ;;  %v7830_v19 = vld [vmem:[#allocation2 + $0x14] sm:$0x1] }
  0xbb   : > { %v7823_v23 = vsel %vm7586_vm15, %v6016_v53, %v1962_v21  ;;  %v1964_v7 = vrot.slane %v1962_v21, 4  ;;  %v629_v29 = vrot.slane %v627_v14, 7  ;;  %v638_v20 = vshll.u32 %v368_v55, 16  ;;  %v2630_v42 = vld [vmem:[#allocation2 + $0x18] sm:$0xf] }
  0xbc   : > { %6759 = vmatmul.mubr.msk.bf16.gmra.mxu1 %vm1299_vm9, %v7020_v33  ;;  %v2676_v61 = vshrl.u32 %v2627_v46, 16  ;;  %v2679_v33 = vshll.u32 %v2627_v46, 16  ;;  %v7840_v0 = vrot.slane %v635_v28, 7  ;;  %v2685_v63 = vshll.u32 %v7816_v1, 16  ;;  %v7851_v28 = vld [vmem:[#allocation2 + $0x20] sm:$0x1] }
  0xbd   : > { %6721 = vmatmul.mubr.msk.bf16.gmra.mxu0 %vm1299_vm9, %v6022_v35  ;;  %6762 = vmatprep.mubr.msk.bf16.mxu1 %vm1299_vm9, %v7021_v49  ;;  %v7838_v43 = vsel %vm7586_vm15, %v1964_v7, %v1965_v41  ;;  %v2689_v35 = vshrl.u32 %v7816_v1, 16  ;;  %v632_v2 = vor.u32 %v630_v56, %v629_v29  ;;  %v633_v53 = vrot.slane %v629_v29, 4 }
  0xbe   : > { %6724 = vmatprep.mubr.msk.bf16.mxu0 %vm1299_vm9, %v6023_v54  ;;  %v2678_v55 = vrot.slane %v2676_v61, 4  ;;  %v7023_v54 = vld [vmem:[#allocation2 + $0x6c] sm:$0xff]   ;;  %v640_v21 = vor.u32 %v638_v20, %v7840_v0  ;;  %v2681_v38 = vrot.slane %v2679_v33, 5  ;;  %v2687_v46 = vrot.slane %v2685_v63, 5 }
  0xbf   : > { %v2691_v14 = vrot.slane %v2689_v35, 4  ;;  %v2695_v7 = vshll.u32 %v7830_v19, 16  ;;  %v2700_v13 = vshrl.u32 %v2630_v42, 16  ;;  %v2703_v49 = vshll.u32 %v2630_v42, 16 }
  0xc0   : > { %v641_v56 = vsel %vm7186_vm12, %v633_v53, %v640_v21  ;;  %v2682_v61 = vor.u32 %v2681_v38, %v2678_v55  ;;  %v2709_v8 = vshll.u32 %v7846_v18, 16  ;;  %v2713_v20 = vshrl.u32 %v7846_v18, 16  ;;  %v3358_v21 = vld [vmem:[#allocation2 + $0x18] sm:$0xe]  ;;  %v2633_v38 = vld [vmem:[#allocation2 + $0x24] sm:$0xf] }
  0xc1   : > { %v798_v29 = vld [vmem:[#allocation2 + $0xc0] sm:$0xf]  ;;  %801 = vst.msk [vmem:[#allocation2 + $0xc4] sm:$0xf] %vm226_vm0, %v641_v56  ;;  %v2692_v63 = vor.u32 %v2691_v14, %v2687_v46  ;;  %v2697_v35 = vrot.slane %v2695_v7, 5  ;;  %v2702_v41 = vrot.slane %v2700_v13, 4 }
  0xc2   : > { %v799_v33 = vsel %vm7174_vm10, %v632_v2, %v798_v29  ;;  %v2683_v52 = vrot.slane %v2682_v61, 4  ;;  %v2705_v42 = vrot.slane %v2703_v49, 5  ;;  %v2711_v53 = vrot.slane %v2709_v8, 5  ;;  %v7024_v8 = vld [vmem:[#allocation2 + $0x78] sm:$0xff]   ;;  %v7879_v7 = vld [vmem:[#allocation2 + $0x28] sm:$0xf] }
  0xc3   : > { %800 = vst [vmem:[#allocation2 + $0xc0] sm:$0xf] %v799_v33  ;;  %v2715_v55 = vrot.slane %v2713_v20, 4  ;;  %v2693_v39 = vrot.slane %v2692_v63, 4  ;;  %v2719_v2 = vshll.u32 %v7851_v28, 16  ;;  %v6122_v13 = vrot.slane %v3357_v57, 9 }
  0xc4   : > { %6763 = vmatmul.mubr.msk.bf16.gmra.mxu1 %vm1299_vm9, %v7022_v62  ;;  %v3423_v62 = vrot.slane %v7816_v1, 5  ;;  %v2688_v49 = vsel %vm7180_vm11, %v2683_v52, %v2687_v46  ;;  %v2706_v36 = vor.u32 %v2705_v42, %v2702_v41  ;;  %v7025_v56 = vld [vmem:[#allocation2 + $0x84] sm:$0xff]   ;;  %v3430_v29 = vrot.slane %v7846_v18, 5  ;;  %v7899_v52 = vld [vmem:[#allocation2 + $0x34] sm:$0xf] }
  0xc5   : > { %6725 = vmatmul.mubr.msk.bf16.gmra.mxu0 %vm1299_vm9, %v6024_v51  ;;  %6766 = vmatprep.mubr.msk.bf16.mxu1 %vm1299_vm9, %v7023_v54  ;;  %v2716_v25 = vor.u32 %v2715_v55, %v2711_v53  ;;  %v3426_v51 = vrot.slane %v7830_v19, 5  ;;  %v6027_v54 = vcombine.low %v7718_v37, %v7727_v16  ;;  %v2698_v57 = vsel %vm7180_vm11, %v2693_v39, %v2697_v35  ;;  %v2636_v19 = vld [vmem:[#allocation2 + $0x30] sm:$0xf] }
  0xc6   : > { %6728 = vmatprep.mubr.msk.bf16.mxu0 %vm1299_vm9, %v6025_v6  ;;  %v2721_v1 = vrot.slane %v2719_v2, 5  ;;  %v3425_v14 = vrot.slane %v3423_v62, 4  ;;  %v7883_v59 = vcombine.low %v2688_v49, %v2698_v57  ;;  %v2707_v6 = vrot.slane %v2706_v36, 4 }
  0xc7   : > { %v2717_v46 = vrot.slane %v2716_v25, 4  ;;  %v7887_v41 = vsel %vm7586_vm15, %v6122_v13, %v3423_v62  ;;  %v6123_v16 = vrot.slane %v3358_v21, 9  ;;  %v2724_v61 = vshrl.u32 %v2633_v38, 16  ;;  %v3359_v25 = vld [vmem:[#allocation2 + $0x24] sm:$0xe] }
  0xc8   : > { %v7891_v37 = vsel %vm7586_vm15, %v3425_v14, %v3426_v51  ;;  %v2712_v20 = vsel %vm7180_vm11, %v2707_v6, %v2711_v53  ;;  %v3433_v63 = vrot.slane %v7851_v28, 5  ;;  %v2727_v35 = vshll.u32 %v2633_v38, 16  ;;  %v7918_v38 = vld [vmem:[#allocation2 + $0x38] sm:$0x1]  ;;  %v7026_v6 = vld [vmem:[#allocation2 + $0x90] sm:$0xff]  }
  0xc9   : > { %v2722_v33 = vsel %vm7180_vm11, %v2717_v46, %v2721_v1  ;;  %v6140_v55 = vcombine.low %v7887_v41, %v7891_v37  ;;  %v3432_v21 = vrot.slane %v3430_v29, 4  ;;  %v2726_v39 = vrot.slane %v2724_v61, 4 }
  0xca   : > { %v7901_v42 = vcombine.low %v2712_v20, %v2722_v33  ;;  %v2729_v18 = vrot.slane %v2727_v35, 5  ;;  %v2733_v53 = vshll.u32 %v7879_v7, 16  ;;  %v2737_v2 = vshrl.u32 %v7879_v7, 16 }
  0xcb   : > { %v2743_v13 = vshll.u32 %v7881_v10, 16  ;;  %v7916_v28 = vsel %vm7586_vm15, %v6123_v16, %v3430_v29  ;;  %v2748_v62 = vshrl.u32 %v2636_v19, 16  ;;  %v2757_v49 = vshll.u32 %v7899_v52, 16 }
  0xcc   : > { %6767 = vmatmul.mubr.msk.bf16.gmra.mxu1 %vm1299_vm9, %v7024_v8  ;;  %v2751_v8 = vshll.u32 %v2636_v19, 16  ;;  %v7924_v36 = vsel %vm7586_vm15, %v3432_v21, %v3433_v63  ;;  %v2730_v30 = vor.u32 %v2729_v18, %v2726_v39  ;;  %v2735_v48 = vrot.slane %v2733_v53, 5  ;;  %v3360_v63 = vld [vmem:[#allocation2 + $0x30] sm:$0xe]  ;;  %v2639_v53 = vld [vmem:[#allocation2 + $0x3c] sm:$0xf] }
  0xcd   : > { %6729 = vmatmul.mubr.msk.bf16.gmra.mxu0 %vm1299_vm9, %v6026_v45  ;;  %6770 = vmatprep.mubr.msk.bf16.mxu1 %vm1299_vm9, %v7025_v56  ;;  %v2739_v45 = vrot.slane %v2737_v2, 4  ;;  %v2745_v51 = vrot.slane %v2743_v13, 5  ;;  %v2750_v57 = vrot.slane %v2748_v62, 4  ;;  %v2759_v14 = vrot.slane %v2757_v49, 5  ;;  %v7934_v2 = vld [vmem:[#allocation2 + $0x40] sm:$0xf] }
  0xce   : > { %6732 = vmatprep.mubr.msk.bf16.mxu0 %vm1299_vm9, %v6027_v54  ;;  %v2753_v1 = vrot.slane %v2751_v8, 5  ;;  %v2731_v46 = vrot.slane %v2730_v30, 4  ;;  %v2761_v19 = vshrl.u32 %v7899_v52, 16  ;;  %v2767_v16 = vshll.u32 %v7918_v38, 16  ;;  %v7027_v54 = vld [vmem:[#allocation2 + $0x9c] sm:$0xff]  }
  0xcf   : > { %v2740_v56 = vor.u32 %v2739_v45, %v2735_v48  ;;  %v6124_v61 = vrot.slane %v3359_v25, 9  ;;  %v3437_v20 = vrot.slane %v7879_v7, 5  ;;  %v3440_v33 = vrot.slane %v7881_v10, 5  ;;  %v7940_v10 = vld [vmem:[#allocation2 + $0x44] sm:$0x1] }
  0xd0   : > { %v2754_v29 = vor.u32 %v2753_v1, %v2750_v57  ;;  %v6141_v35 = vcombine.low %v7916_v28, %v7924_v36  ;;  %v2736_v21 = vsel %vm7180_vm11, %v2731_v46, %v2735_v48  ;;  %v2763_v18 = vrot.slane %v2761_v19, 4 }
  0xd1   : > { %v2741_v39 = vrot.slane %v2740_v56, 4  ;;  %v2769_v62 = vrot.slane %v2767_v16, 5  ;;  %v7938_v8 = vsel %vm7586_vm15, %v6124_v61, %v3437_v20  ;;  %v3439_v7 = vrot.slane %v3437_v20, 4  ;;  %v7029_v56 = vld [vmem:[#allocation2 + $0xb4] sm:$0xff]   ;;  %v3361_v20 = vld [vmem:[#allocation2 + $0x3c] sm:$0xe] }
  0xd2   : > { %v2755_v13 = vrot.slane %v2754_v29, 4  ;;  %v2764_v30 = vor.u32 %v2763_v18, %v2759_v14  ;;  %v6125_v48 = vrot.slane %v3360_v63, 9  ;;  %v3444_v45 = vrot.slane %v7899_v52, 5  ;;  %v7968_v29 = vld [vmem:[#allocation2 + $0x4c] sm:$0xf] }
  0xd3   : > { %v2746_v49 = vsel %vm7180_vm11, %v2741_v39, %v2745_v51  ;;  %v7955_v57 = vsel %vm7586_vm15, %v3439_v7, %v3440_v33  ;;  %v3447_v1 = vrot.slane %v7918_v38, 5  ;;  %v2772_v51 = vshrl.u32 %v2639_v53, 16 }
  0xd4   : > { %6771 = vmatmul.mubr.msk.bf16.gmra.mxu1 %vm1299_vm9, %v7026_v6  ;;  %v7951_v25 = vcombine.low %v2736_v21, %v2746_v49  ;;  %v2642_v6 = vld [vmem:[#allocation2 + $0x48] sm:$0xf]  ;;  %v2760_v11 = vsel %vm7180_vm11, %v2755_v13, %v2759_v14  ;;  %v6142_v52 = vcombine.low %v7938_v8, %v7955_v57  ;;  %v3446_v46 = vrot.slane %v3444_v45, 4  ;;  %v7977_v14 = vld [vmem:[#allocation2 + $0x50] sm:$0x1] }
  0xd5   : > { %6733 = vmatmul.mubr.msk.bf16.gmra.mxu0 %vm1299_vm9, %v6028_v31  ;;  %6774 = vmatprep.mubr.msk.bf16.mxu1 %vm1299_vm9, %v7027_v54  ;;  %v2765_v31 = vrot.slane %v2764_v30, 4  ;;  %v2774_v19 = vrot.slane %v2772_v51, 4  ;;  %v2775_v16 = vshll.u32 %v2639_v53, 16  ;;  %v2781_v38 = vshll.u32 %v7934_v2, 16 }
  0xd6   : > { %6736 = vmatprep.mubr.msk.bf16.mxu0 %vm1299_vm9, %v6029_v15  ;;  %v2785_v54 = vshrl.u32 %v7934_v2, 16  ;;  %v7974_v12 = vsel %vm7586_vm15, %v6125_v48, %v3444_v45  ;;  %v2791_v15 = vshll.u32 %v7940_v10, 16  ;;  %v2796_v61 = vshrl.u32 %v2642_v6, 16 }
  0xd7   : > { %v2770_v17 = vsel %vm7180_vm11, %v2765_v31, %v2769_v62  ;;  %v7983_v63 = vsel %vm7586_vm15, %v3446_v46, %v3447_v1  ;;  %v2777_v21 = vrot.slane %v2775_v16, 5  ;;  %v2783_v39 = vrot.slane %v2781_v38, 5  ;;  %v3362_v31 = vld [vmem:[#allocation2 + $0x48] sm:$0xe] }
  0xd8   : > { %v7979_v33 = vcombine.low %v2760_v11, %v2770_v17  ;;  %v2787_v18 = vrot.slane %v2785_v54, 4  ;;  %v2793_v53 = vrot.slane %v2791_v15, 5  ;;  %v2798_v13 = vrot.slane %v2796_v61, 4  ;;  %v2646_v61 = vld [vmem:[#allocation2 + $0x58] sm:$0xf] }
  0xd9   : > { %v2799_v62 = vshll.u32 %v2642_v6, 16  ;;  %v2778_v7 = vor.u32 %v2777_v21, %v2774_v19  ;;  %v2805_v49 = vshll.u32 %v7968_v29, 16  ;;  %v2809_v30 = vshrl.u32 %v7968_v29, 16 }
  0xda   : > { %v2815_v48 = vshll.u32 %v7977_v14, 16  ;;  %v2788_v45 = vor.u32 %v2787_v18, %v2783_v39  ;;  %v6126_v11 = vrot.slane %v3361_v20, 9  ;;  %v3451_v1 = vrot.slane %v7934_v2, 5  ;;  %v8006_v20 = vld [vmem:[#allocation2 + $0x5c] sm:$0x1] }
  0xdb   : > { %v2801_v51 = vrot.slane %v2799_v62, 5  ;;  %v2779_v6 = vrot.slane %v2778_v7, 4  ;;  %v2807_v46 = vrot.slane %v2805_v49, 5  ;;  %v2811_v19 = vrot.slane %v2809_v30, 4 }
  0xdc   : > { %6775 = vmatmul.mubr.msk.bf16.gmra.mxu1 %vm1299_vm9, %v7028_v40  ;;  %v2817_v16 = vrot.slane %v2815_v48, 5  ;;  %v9489_v40 = vcombine.low %v7773_v24, %v7788_v50  ;;  %v2789_v38 = vrot.slane %v2788_v45, 4  ;;  %v8001_v2 = vsel %vm7586_vm15, %v6126_v11, %v3451_v1  ;;  %v7030_v24 = vld [vmem:[#allocation2 + $0xc0] sm:$0xff]  }
  0xdd   : > { %6737 = vmatmul.mubr.msk.bf16.gmra.mxu0 %vm1299_vm9, %v6030_v5  ;;  %6778 = vmatprep.mubr.msk.bf16.mxu1 %vm1299_vm9, %v7029_v56  ;;  %v2802_v54 = vor.u32 %v2801_v51, %v2798_v13  ;;  %v3453_v26 = vrot.slane %v3451_v1, 4  ;;  %v2784_v5 = vsel %vm7180_vm11, %v2779_v6, %v2783_v39  ;;  %v2812_v56 = vor.u32 %v2811_v19, %v2807_v46  ;;  %v2648_v48 = vld [vmem:[#allocation2 + $0x60] sm:$0xf]  ;;  %v8026_v1 = vld [vmem:[#allocation2 + $0x64] sm:$0xf] }
  0xde   : > { %6740 = vmatprep.mubr.msk.bf16.mxu0 %vm1299_vm9, %v9489_v40  ;;  %v3454_v17 = vrot.slane %v7940_v10, 5  ;;  %v6127_v15 = vrot.slane %v3362_v31, 9  ;;  %v2794_v50 = vsel %vm7180_vm11, %v2789_v38, %v2793_v53  ;;  %v3458_v18 = vrot.slane %v7968_v29, 5  ;;  %v8036_v40 = vld [vmem:[#allocation2 + $0x68] sm:$0x1] }
  0xdf   : > { %v2803_v21 = vrot.slane %v2802_v54, 4  ;;  %v3461_v13 = vrot.slane %v7977_v14, 5  ;;  %v6143_v62 = vcombine.low %v7974_v12, %v7983_v63  ;;  %v2813_v39 = vrot.slane %v2812_v56, 4 }
  0xe0   : > { %v8016_v10 = vsel %vm7586_vm15, %v3453_v26, %v3454_v17  ;;  %v2820_v7 = vshrl.u32 %v2645_v32, 16  ;;  %v8018_v49 = vcombine.low %v2784_v5, %v2794_v50  ;;  %v3460_v29 = vrot.slane %v3458_v18, 4  ;;  %v3363_v5 = vld [vmem:[#allocation2 + $0x54] sm:$0xe]  ;;  %v3364_v50 = vld [vmem:[#allocation2 + $0x60] sm:$0xe] }
  0xe1   : > { %v2808_v30 = vsel %vm7180_vm11, %v2803_v21, %v2807_v46  ;;  %v6144_v53 = vcombine.low %v8001_v2, %v8016_v10  ;;  %v2818_v14 = vsel %vm7180_vm11, %v2813_v39, %v2817_v16  ;;  %v2823_v51 = vshll.u32 %v2645_v32, 16 }
  0xe2   : > { %v2822_v45 = vrot.slane %v2820_v7, 4  ;;  %v2829_v11 = vshll.u32 %v2646_v61, 16  ;;  %v8029_v31 = vcombine.low %v2808_v30, %v2818_v14  ;;  %v8033_v6 = vsel %vm7586_vm15, %v6127_v15, %v3458_v18  ;;  %v2651_v7 = vld [vmem:[#allocation2 + $0x6c] sm:$0xf] }
  0xe3   : > { %v2833_v46 = vshrl.u32 %v2646_v61, 16  ;;  %v2839_v19 = vshll.u32 %v8006_v20, 16  ;;  %v9490_v16 = vcombine.low %v7792_v34, %v7804_v60  ;;  %v8048_v38 = vsel %vm7586_vm15, %v3460_v29, %v3461_v13 }
  0xe4   : > { %6779 = vmatmul.mubr.msk.bf16.gmra.mxu1 %vm1299_vm9, %v7030_v24  ;;  %v2825_v54 = vrot.slane %v2823_v51, 5  ;;  %v2831_v26 = vrot.slane %v2829_v11, 5  ;;  %v2844_v32 = vshrl.u32 %v2648_v48, 16  ;;  %v9491_v56 = vcombine.low %v7799_v58, %v7814_v27 }
  0xe5   : > { %6741 = vmatmul.mubr.msk.bf16.gmra.mxu0 %vm1299_vm9, %v9490_v16  ;;  %6818 = vmatprep.mubr.msk.bf16.mxu1 %vm1299_vm9, %v6140_v55  ;;  %v2835_v34 = vrot.slane %v2833_v46, 4  ;;  %v2841_v60 = vrot.slane %v2839_v19, 5  ;;  %v2847_v17 = vshll.u32 %v2648_v48, 16  ;;  %v2853_v41 = vshll.u32 %v8026_v1, 16 }
  0xe6   : > { %6744 = vmatprep.mubr.msk.bf16.mxu0 %vm1299_vm9, %v9491_v56  ;;  %v2826_v37 = vor.u32 %v2825_v54, %v2822_v45  ;;  %v2846_v55 = vrot.slane %v2844_v32, 4  ;;  %v2857_v15 = vshrl.u32 %v8026_v1, 16  ;;  %v2863_v24 = vshll.u32 %v8036_v40, 16  ;;  %v8066_v54 = vld [vmem:[#allocation2 + $0x70] sm:$0xf] }
  0xe7   : > { %v2836_v21 = vor.u32 %v2835_v34, %v2831_v26  ;;  %v2849_v18 = vrot.slane %v2847_v17, 5  ;;  %v2855_v13 = vrot.slane %v2853_v41, 5  ;;  %v6128_v39 = vrot.slane %v3363_v5, 9  ;;  %v8068_v32 = vld [vmem:[#allocation2 + $0x74] sm:$0x1] }
  0xe8   : > { %v6145_v58 = vcombine.low %v8033_v6, %v8048_v38  ;;  %v2827_v27 = vrot.slane %v2826_v37, 4  ;;  %v2859_v30 = vrot.slane %v2857_v15, 4  ;;  %v3465_v29 = vrot.slane %v2646_v61, 5  ;;  %v2654_v56 = vld [vmem:[#allocation2 + $0x78] sm:$0xf] }
  0xe9   : > { %v2837_v48 = vrot.slane %v2836_v21, 4  ;;  %v2850_v14 = vor.u32 %v2849_v18, %v2846_v55  ;;  %v2865_v45 = vrot.slane %v2863_v24, 5  ;;  %v3468_v51 = vrot.slane %v8006_v20, 5 }
  0xea   : > { %v2832_v11 = vsel %vm7180_vm11, %v2827_v27, %v2831_v26  ;;  %v2860_v46 = vor.u32 %v2859_v30, %v2855_v13  ;;  %v8064_v19 = vsel %vm7586_vm15, %v6128_v39, %v3465_v29  ;;  %v3467_v16 = vrot.slane %v3465_v29, 4 }
  0xeb   : > { %v2842_v61 = vsel %vm7180_vm11, %v2837_v48, %v2841_v60  ;;  %v2851_v20 = vrot.slane %v2850_v14, 4  ;;  %v6129_v26 = vrot.slane %v3364_v50, 9  ;;  %v3472_v5 = vrot.slane %v8026_v1, 5  ;;  %v8090_v1 = vld [vmem:[#allocation2 + $0x7c] sm:$0xf] }
  0xec   : > { %6819 = vmatmul.mubr.msk.bf16.vlgmr.msra.gmra.mxu1 %vm1299_vm9, %v6141_v35  ;;  %v9492_v34 = vcombine.low %v7823_v23, %v7838_v43  ;;  %v2861_v28 = vrot.slane %v2860_v46, 4  ;;  %v8087_v36 = vsel %vm7586_vm15, %v3467_v16, %v3468_v51  ;;  %v3475_v35 = vrot.slane %v8036_v40, 5  ;;  %v8124_v51 = vld [vmem:[%s9463_s1 + $0x40] sm:$0xff]  }
  0xed   : > { %6822 = vmatprep.mubr.msk.bf16.mxu1 %vm1299_vm9, %v6142_v52  ;;  %v2868_v60 = vshrl.u32 %v2651_v7, 16  ;;  %v8094_v23 = vcombine.low %v2832_v11, %v2842_v61  ;;  %v2856_v43 = vsel %vm7180_vm11, %v2851_v20, %v2855_v13  ;;  %v6146_v8 = vcombine.low %v8064_v19, %v8087_v36  ;;  %v8100_v52 = vld [vmem:[#allocation2 + $0x80] sm:$0x1]  ;;  %6885 = vmatpush3.bf16.msra.mxu1 %v7706_v47  ;;  %v3365_v13 = vld [vmem:[#allocation2 + $0x6c] sm:$0xe] }
  0xee   : > { %6745 = vmatmul.mubr.msk.bf16.gmra.mxu0 %vm1299_vm9, %v9492_v34  ;;  %v3474_v57 = vrot.slane %v3472_v5, 4  ;;  %v2866_v40 = vsel %vm7180_vm11, %v2861_v28, %v2865_v45  ;;  %v2871_v41 = vshll.u32 %v2651_v7, 16  ;;  %v8110_v55 = vsel %vm7586_vm15, %v6129_v26, %v3472_v5  ;;  %v3366_v20 = vld [vmem:[#allocation2 + $0x78] sm:$0xe] }
  0xef   : > { %6784 = vmatprep.mubr.msk.bf16.mxu0 %vm1299_vm9, %v7883_v59  ;;  %v2870_v17 = vrot.slane %v2868_v60, 4  ;;  %v2877_v59 = vshll.u32 %v8066_v54, 16  ;;  %v8106_v37 = vcombine.low %v2856_v43, %v2866_v40  ;;  %v2881_v15 = vshrl.u32 %v8066_v54, 16 }
  0xf0   : > { %v2887_v24 = vshll.u32 %v8068_v32, 16  ;;  %v8116_v47 = vsel %vm7586_vm15, %v3474_v57, %v3475_v35  ;;  %v2873_v50 = vrot.slane %v2871_v41, 5  ;;  %v2892_v18 = vshrl.u32 %v2654_v56, 16 }
  0xf1   : > { %v2879_v21 = vrot.slane %v2877_v59, 5  ;;  %v2883_v39 = vrot.slane %v2881_v15, 4  ;;  %v2895_v27 = vshll.u32 %v2654_v56, 16  ;;  %v2901_v30 = vshll.u32 %v8090_v1, 16  ;;  %v8139_v56 = vpop.f32.mrf.mxu1 }
  0xf2   : > { %v2889_v7 = vrot.slane %v2887_v24, 5  ;;  %v2874_v29 = vor.u32 %v2873_v50, %v2870_v17  ;;  %v2894_v48 = vrot.slane %v2892_v18, 4  ;;  %v2905_v14 = vshrl.u32 %v8090_v1, 16 }
  0xf3   : > { %v2911_v45 = vshll.u32 %v8100_v52, 16  ;;  %v2884_v11 = vor.u32 %v2883_v39, %v2879_v21  ;;  %v2897_v46 = vrot.slane %v2895_v27, 5  ;;  %v2903_v16 = vrot.slane %v2901_v30, 5  ;;  %v8164_v15 = vpop.f32.mrf.mxu1  ;;  %v8175_v27 = vld [vmem:[#allocation2 + $0x94] sm:$0xf] }
  0xf4   : > { %6823 = vmatmul.mubr.msk.bf16.gmra.mxu1 %vm1299_vm9, %v6143_v62  ;;  %v6130_v61 = vrot.slane %v3365_v13, 9  ;;  %v6147_v26 = vcombine.low %v8110_v55, %v8116_v47  ;;  %v2875_v5 = vrot.slane %v2874_v29, 4  ;;  %v2907_v12 = vrot.slane %v2905_v14, 4  ;;  %v2657_v62 = vld [vmem:[#allocation2 + $0x84] sm:$0xf] }
  0xf5   : > { %6826 = vmatprep.mubr.msk.bf16.mxu1 %vm1299_vm9, %v6144_v53  ;;  %v3479_v63 = vrot.slane %v8066_v54, 5  ;;  %v2898_v34 = vor.u32 %v2897_v46, %v2894_v48  ;;  %v2913_v2 = vrot.slane %v2911_v45, 5  ;;  %v3482_v10 = vrot.slane %v8068_v32, 5  ;;  %v8145_v53 = vld [vmem:[#allocation2 + $0x88] sm:$0xf] }
  0xf6   : > { %6785 = vmatmul.mubr.msk.bf16.vlgmr.msra.gmra.mxu0 %vm1299_vm9, %v7901_v42  ;;  %v2885_v42 = vrot.slane %v2884_v11, 4  ;;  %v2880_v28 = vsel %vm7180_vm11, %v2875_v5, %v2879_v21  ;;  %v2908_v35 = vor.u32 %v2907_v12, %v2903_v16  ;;  %v6131_v32 = vrot.slane %v3366_v20, 9  ;;  %v8189_v45 = vld [vmem:[#allocation2 + $0x98] sm:$0x1]  ;;  %v3367_v11 = vld [vmem:[#allocation2 + $0x84] sm:$0xe]  ;;  %v8203_v20 = vpop.f32.mrf.mxu1 }
  0xf7   : > { %6851 = vmatpush3.bf16.msra.mxu0 %v7742_v22  ;;  %6788 = vmatprep.mubr.msk.bf16.mxu0 %vm1299_vm9, %v7951_v25  ;;  %v8151_v54 = vsel %vm7586_vm15, %v6130_v61, %v3479_v63  ;;  %v3481_v60 = vrot.slane %v3479_v63, 4  ;;  %v8153_v22 = vld [vmem:[#allocation2 + $0x8c] sm:$0x1]  ;;  %v2899_v43 = vrot.slane %v2898_v34, 4  ;;  %v3486_v57 = vrot.slane %v8090_v1, 5  ;;  %v8201_v61 = vpop.f32.mrf.mxu0 }
  0xf8   : > { %6918 = vmatprep.subr.bf16.mxu0 %v8124_v51  ;;  %v2890_v25 = vsel %vm7180_vm11, %v2885_v42, %v2889_v7  ;;  %v2909_v40 = vrot.slane %v2908_v35, 4  ;;  %v3489_v41 = vrot.slane %v8100_v52, 5  ;;  %v2916_v59 = vshrl.u32 %v2657_v62, 16  ;;  %v2660_v1 = vld [vmem:[#allocation2 + $0x90] sm:$0xf] }
  0xf9   : > { %v8161_v17 = vsel %vm7586_vm15, %v3481_v60, %v3482_v10  ;;  %v8166_v24 = vcombine.low %v2880_v28, %v2890_v25  ;;  %v2904_v50 = vsel %vm7180_vm11, %v2899_v43, %v2903_v16  ;;  %v3488_v18 = vrot.slane %v3486_v57, 4  ;;  %v3368_v16 = vld [vmem:[#allocation2 + $0x90] sm:$0xe]  ;;  %v8215_v60 = vpop.f32.mrf.mxu0  ;;  %v8217_v25 = vpop.f32.mrf.mxu1 }
  0xfa   : > { %v6148_v21 = vcombine.low %v8151_v54, %v8161_v17  ;;  %v2914_v13 = vsel %vm7180_vm11, %v2909_v40, %v2913_v2  ;;  %v2918_v39 = vrot.slane %v2916_v59, 4  ;;  %v2919_v7 = vshll.u32 %v2657_v62, 16  ;;  %9493 = vst [vmem:[#allocation3_spill] sm:$0xff] %v8217_v25  ;;  %v2663_v17 = vld [vmem:[#allocation2 + $0x9c] sm:$0xf] }
  0xfb   : > { %v2925_v52 = vshll.u32 %v8145_v53, 16  ;;  %v8181_v30 = vcombine.low %v2904_v50, %v2914_v13  ;;  %v8185_v29 = vsel %vm7586_vm15, %v6131_v32, %v3486_v57  ;;  %v2929_v48 = vshrl.u32 %v8145_v53, 16 }
  0xfc   : > { %6827 = vmatmul.mubr.msk.bf16.gmra.mxu1 %vm1299_vm9, %v6145_v58  ;;  %v2935_v14 = vshll.u32 %v8153_v22, 16  ;;  %v8199_v6 = vsel %vm7586_vm15, %v3488_v18, %v3489_v41  ;;  %v2921_v38 = vrot.slane %v2919_v7, 5  ;;  %v2940_v46 = vshrl.u32 %v2660_v1, 16  ;;  %v8246_v7 = vld [vmem:[#allocation2 + $0xa4] sm:$0x1] }
  0xfd   : > { %6830 = vmatprep.mubr.msk.bf16.mxu1 %vm1299_vm9, %v6146_v8  ;;  %v2927_v58 = vrot.slane %v2925_v52, 5  ;;  %v2943_v19 = vshll.u32 %v2660_v1, 16  ;;  %v2949_v36 = vshll.u32 %v8175_v27, 16  ;;  %v2953_v63 = vshrl.u32 %v8175_v27, 16 }
  0xfe   : > { %6789 = vmatmul.mubr.msk.bf16.gmra.mxu0 %vm1299_vm9, %v7979_v33  ;;  %v2931_v33 = vrot.slane %v2929_v48, 4  ;;  %v2937_v5 = vrot.slane %v2935_v14, 5  ;;  %v2922_v8 = vor.u32 %v2921_v38, %v2918_v39  ;;  %v2942_v12 = vrot.slane %v2940_v46, 4  ;;  %v8235_v39 = vld [vmem:[#allocation2 + $0xa0] sm:$0xf]  ;;  %v8250_v48 = vpop.f32.mrf.mxu1 }
  0xff   : > { %6792 = vmatprep.mubr.msk.bf16.mxu0 %vm1299_vm9, %v8018_v49  ;;  %v2959_v62 = vshll.u32 %v8189_v45, 16  ;;  %v2945_v34 = vrot.slane %v2943_v19, 5  ;;  %v8210_v2 = vrot.slane %v2949_v36, 5  ;;  %v6132_v10 = vrot.slane %v3367_v11, 9  ;;  %v2667_v46 = vld [vmem:[#allocation2 + $0xac] sm:$0xf] }
 0x100   : > { %v2932_v42 = vor.u32 %v2931_v33, %v2927_v58  ;;  %v2923_v28 = vrot.slane %v2922_v8, 4  ;;  %v2955_v35 = vrot.slane %v2953_v63, 4  ;;  %v3493_v49 = vrot.slane %v8145_v53, 5  ;;  %v8275_v19 = vld [vmem:[#allocation2 + $0xb0] sm:$0x1] }
 0x101   : > { %v8212_v54 = vrot.slane %v2959_v62, 5  ;;  %v2946_v32 = vor.u32 %v2945_v34, %v2942_v12  ;;  %v3496_v57 = vrot.slane %v8153_v22, 5  ;;  %v6133_v40 = vrot.slane %v3368_v16, 9  ;;  %v3369_v62 = vld [vmem:[#allocation2 + $0x9c] sm:$0xe]  ;;  %v8281_v34 = vpop.f32.mrf.mxu1 }
 0x102   : > { %v2933_v43 = vrot.slane %v2932_v42, 4  ;;  %v2928_v41 = vsel %vm7180_vm11, %v2923_v28, %v2927_v58  ;;  %v2956_v59 = vor.u32 %v2955_v35, %v8210_v2  ;;  %v3494_v50 = vsel %vm7586_vm15, %v6132_v10, %v3493_v49 }
 0x103   : > { %v3495_v18 = vrot.slane %v3493_v49, 4  ;;  %v8231_v22 = vrot.slane %v2946_v32, 4  ;;  %v3500_v1 = vrot.slane %v8175_v27, 5  ;;  %v3503_v13 = vrot.slane %v8189_v45, 5  ;;  %v8248_v27 = vpop.f32.mrf.mxu0  ;;  %v2666_v45 = vld [vmem:[#allocation2 + $0xa8] sm:$0xf] }
 0x104   : > { %6831 = vmatmul.mubr.msk.bf16.gmra.mxu1 %vm1299_vm9, %v6147_v26  ;;  %v2938_v53 = vsel %vm7180_vm11, %v2933_v43, %v2937_v5  ;;  %v6149_v55 = vcombine.low %v8185_v29, %v8199_v6  ;;  %v8242_v47 = vrot.slane %v2956_v59, 4  ;;  %v2964_v52 = vshrl.u32 %v2663_v17, 16 }
 0x105   : > { %6834 = vmatprep.mubr.msk.bf16.mxu1 %vm1299_vm9, %v6148_v21  ;;  %v3497_v26 = vsel %vm7586_vm15, %v3495_v18, %v3496_v57  ;;  %v2952_v21 = vsel %vm7180_vm11, %v8231_v22, %v8210_v2  ;;  %v8262_v29 = vsel %vm7586_vm15, %v6133_v40, %v3500_v1  ;;  %v3502_v14 = vrot.slane %v3500_v1, 4  ;;  %v8279_v42 = vpop.f32.mrf.mxu0 }
 0x106   : > { %6793 = vmatmul.mubr.msk.bf16.gmra.mxu0 %vm1299_vm9, %v8029_v31  ;;  %v8254_v31 = vcombine.low %v2928_v41, %v2938_v53  ;;  %v6150_v11 = vcombine.low %v3494_v50, %v3497_v26  ;;  %v2966_v6 = vrot.slane %v2964_v52, 4  ;;  %v2967_v38 = vshll.u32 %v2663_v17, 16  ;;  %9494 = vst [vmem:[#allocation4_spill] sm:$0xff] %v8279_v42  ;;  %v2669_v52 = vld [vmem:[#allocation2 + $0xb4] sm:$0xf]  ;;  %v7041_v42 = vld [vmem:[#allocation2 + $0x60] sm:$0xff]  }
 0x107   : > { %6796 = vmatprep.mubr.msk.bf16.mxu0 %vm1299_vm9, %v8094_v23  ;;  %v2973_v58 = vshll.u32 %v8235_v39, 16  ;;  %v2962_v23 = vsel %vm7180_vm11, %v8242_v47, %v8212_v54  ;;  %v8271_v16 = vsel %vm7586_vm15, %v3502_v14, %v3503_v13  ;;  %v2977_v33 = vshrl.u32 %v8235_v39, 16  ;;  %v3370_v54 = vld [vmem:[#allocation2 + $0xa8] sm:$0xe]  ;;  %v8293_v1 = vpop.f32.mrf.mxu0  ;;  %v8295_v13 = vpop.f32.mrf.mxu1 }
 0x108   : > { %v2983_v5 = vshll.u32 %v8246_v7, 16  ;;  %v6151_v36 = vcombine.low %v8262_v29, %v8271_v16  ;;  %v2969_v8 = vrot.slane %v2967_v38, 5  ;;  %v2988_v63 = vshrl.u32 %v2666_v45, 16 }
 0x109   : > { %v2975_v12 = vrot.slane %v2973_v58, 5  ;;  %v2979_v2 = vrot.slane %v2977_v33, 4  ;;  %v2991_v28 = vshll.u32 %v2666_v45, 16  ;;  %v2997_v35 = vshll.u32 %v2667_v46, 16 }
 0x10a   : > { %v2985_v10 = vrot.slane %v2983_v5, 5  ;;  %v2970_v49 = vor.u32 %v2969_v8, %v2966_v6  ;;  %v2990_v43 = vrot.slane %v2988_v63, 4  ;;  %v3001_v32 = vshrl.u32 %v2667_v46, 16  ;;  %v2671_v5 = vld [vmem:[#allocation2 + $0xbc] sm:$0x1]  ;;  %v8316_v63 = vpop.f32.mrf.mxu1 }
 0x10b   : > { %v3007_v57 = vshll.u32 %v8275_v19, 16  ;;  %v2980_v40 = vor.u32 %v2979_v2, %v2975_v12  ;;  %v2993_v17 = vrot.slane %v2991_v28, 5  ;;  %v8285_v41 = vrot.slane %v2997_v35, 5  ;;  %9495 = vst [vmem:[#allocation5_spill] sm:$0xff] %v8316_v63 }
 0x10c   : > { %6835 = vmatmul.mubr.msk.bf16.gmra.mxu1 %vm1299_vm9, %v6149_v55  ;;  %v6134_v59 = vrot.slane %v3369_v62, 9  ;;  %v2971_v50 = vrot.slane %v2970_v49, 4  ;;  %v3003_v18 = vrot.slane %v3001_v32, 4  ;;  %v3507_v22 = vrot.slane %v8235_v39, 5 }
 0x10d   : > { %6838 = vmatprep.mubr.msk.bf16.mxu1 %vm1299_vm9, %v6150_v11  ;;  %v8290_v53 = vrot.slane %v3007_v57, 5  ;;  %v2981_v55 = vrot.slane %v2980_v40, 4  ;;  %v2994_v47 = vor.u32 %v2993_v17, %v2990_v43  ;;  %v3510_v26 = vrot.slane %v8246_v7, 5  ;;  %v2670_v7 = vld [vmem:[#allocation2 + $0xb8] sm:$0xf] }
 0x10e   : > { %6797 = vmatmul.mubr.msk.bf16.gmra.mxu0 %vm1299_vm9, %v8106_v37  ;;  %v6135_v37 = vrot.slane %v3370_v54, 9  ;;  %v2976_v29 = vsel %vm7180_vm11, %v2971_v50, %v2975_v12  ;;  %v3004_v14 = vor.u32 %v3003_v18, %v8285_v41  ;;  %v3508_v39 = vsel %vm7586_vm15, %v6134_v59, %v3507_v22  ;;  %v8314_v12 = vpop.f32.mrf.mxu0  ;;  %v2672_v54 = vld [vmem:[#allocation2 + $0xc0] sm:$0xf]  ;;  %v8332_v40 = vld [vmem:[#allocation2 + $0xc4] sm:$0xf] }
 0x10f   : > { %6800 = vmatprep.mubr.msk.bf16.mxu0 %vm1299_vm9, %v8166_v24  ;;  %v3509_v45 = vrot.slane %v3507_v22, 4  ;;  %v2986_v11 = vsel %vm7180_vm11, %v2981_v55, %v2985_v10  ;;  %v8307_v6 = vrot.slane %v2994_v47, 4  ;;  %v3514_v24 = vrot.slane %v2667_v46, 5  ;;  %v334_v10 = vld [vmem:[#allocation2 + $0xc8] sm:$0x1] }
 0x110   : > { %v3517_v38 = vrot.slane %v8275_v19, 5  ;;  %v8310_v58 = vcombine.low %v2952_v21, %v2962_v23  ;;  %v3005_v16 = vrot.slane %v3004_v14, 4  ;;  %v3012_v8 = vshrl.u32 %v2669_v52, 16  ;;  %v3371_v17 = vld [vmem:[#allocation2 + $0xb4] sm:$0xe]  ;;  %v8339_v18 = vpop.f32.mrf.mxu0 }
 0x111   : > { %v3511_v33 = vsel %vm7586_vm15, %v3509_v45, %v3510_v26  ;;  %v8318_v62 = vcombine.low %v2976_v29, %v2986_v11  ;;  %v3515_v46 = vsel %vm7586_vm15, %v6135_v37, %v3514_v24  ;;  %v3516_v19 = vrot.slane %v3514_v24, 4 }
 0x112   : > { %v6152_v2 = vcombine.low %v3508_v39, %v3511_v33  ;;  %v3000_v21 = vsel %vm7180_vm11, %v8307_v6, %v8285_v41  ;;  %v3014_v23 = vrot.slane %v3012_v8, 4  ;;  %v3015_v28 = vshll.u32 %v2669_v52, 16 }
 0x113   : > { %v3021_v35 = vshll.u32 %v2670_v7, 16  ;;  %v3010_v49 = vsel %vm7180_vm11, %v3005_v16, %v8290_v53  ;;  %v3518_v43 = vsel %vm7586_vm15, %v3516_v19, %v3517_v38  ;;  %v3025_v32 = vshrl.u32 %v2670_v7, 16  ;;  %v8341_v53 = vpop.f32.mrf.mxu1  ;;  %v8349_v38 = vpop.f32.mrf.mxu0  ;;  %v3372_v19 = vld [vmem:[#allocation2 + $0xc0] sm:$0xe] }
 0x114   : > { %6839 = vmatmul.mubr.msk.bf16.gmra.mxu1 %vm1299_vm9, %v6151_v36  ;;  %v3031_v57 = vshll.u32 %v2671_v5, 16  ;;  %v6153_v41 = vcombine.low %v3515_v46, %v3518_v43  ;;  %v3017_v59 = vrot.slane %v3015_v28, 5  ;;  %v335_v50 = vsel %vm7128_vm5, 0, %v334_v10  ;;  %9496 = vst [vmem:[#allocation6_spill] sm:$0xff] %v8349_v38  ;;  %v8368_v43 = vld [vmem:[#allocation2 + $0x20] sm:$0x1] }
 0x115   : > { %6842 = vmatprep.mubr.msk.bf16.mxu1 %vm1299_vm9, %v6152_v2  ;;  %v3023_v36 = vrot.slane %v3021_v35, 5  ;;  %v3027_v22 = vrot.slane %v3025_v32, 4  ;;  %336 = vst [vmem:[#allocation2 + $0xc8] sm:$0x1] %v335_v50  ;;  %v3036_v47 = vshrl.u32 %v2672_v54, 16  ;;  %v3045_v37 = vshll.u32 %v8332_v40, 16  ;;  %v8351_v16 = vpop.f32.mrf.mxu1 }
 0x116   : > { %6801 = vmatmul.mubr.msk.bf16.gmra.mxu0 %vm1299_vm9, %v8181_v30  ;;  %v3033_v55 = vrot.slane %v3031_v57, 5  ;;  %v3039_v30 = vshll.u32 %v2672_v54, 16  ;;  %v3018_v26 = vor.u32 %v3017_v59, %v3014_v23  ;;  %v3049_v52 = vshrl.u32 %v8332_v40, 16  ;;  %v8366_v54 = vld [vmem:[#allocation2 + $0x1c] sm:$0xf] }
 0x117   : > { %6804 = vmatprep.mubr.msk.bf16.mxu0 %vm1299_vm9, %v8254_v31  ;;  %v6136_v29 = vrot.slane %v3371_v17, 9  ;;  %v3028_v4 = vor.u32 %v3027_v22, %v3023_v36  ;;  %v3038_v14 = vrot.slane %v3036_v47, 4  ;;  %v3521_v45 = vrot.slane %v2670_v7, 5  ;;  %v4194_v7 = vld [vmem:[#allocation2 + $0x18] sm:$0xf]  ;;  %v8374_v59 = vpop.f32.mrf.mxu0 }
 0x118   : > { %v3041_v39 = vrot.slane %v3039_v30, 5  ;;  %v3019_v11 = vrot.slane %v3018_v26, 4  ;;  %v8347_v6 = vrot.slane %v3045_v37, 5  ;;  %v3051_v24 = vrot.slane %v3049_v52, 4 }
 0x119   : > { %v3524_v31 = vrot.slane %v2671_v5, 5  ;;  %v3029_v33 = vrot.slane %v3028_v4, 4  ;;  %v3522_v2 = vsel %vm7586_vm15, %v6136_v29, %v3521_v45  ;;  %v3523_v46 = vrot.slane %v3521_v45, 4  ;;  %v8398_v45 = vpop.f32.mrf.mxu0 }
 0x11a   : > { %v3042_v8 = vor.u32 %v3041_v39, %v3038_v14  ;;  %v3024_v10 = vsel %vm7180_vm11, %v3019_v11, %v3023_v36  ;;  %v6102_v23 = vcombine.low %v3000_v21, %v3010_v49  ;;  %v8364_v35 = vadd.f32 %v8139_v56, %v8201_v61  ;;  %v8376_v36 = vpop.f32.mrf.mxu1 }
 0x11b   : > { %v3034_v5 = vsel %vm7180_vm11, %v3029_v33, %v3033_v55  ;;  %v3525_v28 = vsel %vm7586_vm15, %v3523_v46, %v3524_v31  ;;  %v3052_v49 = vor.u32 %v3051_v24, %v8347_v6  ;;  %v6137_v57 = vrot.slane %v3372_v19, 9 }
 0x11c   : > { %6843 = vmatmul.mubr.msk.bf16.gmra.mxu1 %vm1299_vm9, %v6153_v41  ;;  %v802_v21 = vld [vmem:[#allocation2 + $0xc8] sm:$0x1]  ;;  %v6154_v32 = vcombine.low %v3522_v2, %v3525_v28  ;;  %v3528_v17 = vrot.slane %v8332_v40, 5  ;;  %v4197_v41 = vld [vmem:[#allocation2 + $0x24] sm:$0xf]  ;;  %v6103_v56 = vcombine.low %v3024_v10, %v3034_v5  ;;  %v9497_v61 = vrot.slane %v7840_v0, 4  ;;  %v8400_v11 = vpop.f32.mrf.mxu1 }
 0x11d   : > { %v8384_v50 = vrot.slane %v3042_v8, 4  ;;  %v4243_v22 = vshrl.u32 %v4194_v7, 16  ;;  %v4246_v40 = vshll.u32 %v4194_v7, 16  ;;  %v4252_v55 = vshll.u32 %v8366_v54, 16  ;;  %v8396_v0 = vld [vmem:[#allocation2 + $0x2c] sm:$0x1] }
 0x11e   : > { %6805 = vmatmul.mubr.msk.bf16.gmra.mxu0 %vm1299_vm9, %v8310_v58  ;;  %v803_v58 = vsel %vm7123_vm4, %v9497_v61, %v802_v21  ;;  %6846 = vmatprep.mubr.msk.bf16.mxu1 %vm1299_vm9, %v6154_v32  ;;  %v4256_v47 = vshrl.u32 %v8366_v54, 16  ;;  %v4262_v30 = vshll.u32 %v8368_v43, 16  ;;  %v8394_v3 = vadd.f32 %v8164_v15, %v8215_v60  ;;  %v8414_v61 = vpop.f32.mrf.mxu0 }
 0x11f   : > { %6808 = vmatprep.mubr.msk.bf16.mxu0 %vm1299_vm9, %v8318_v62  ;;  %804 = vst [vmem:[#allocation2 + $0xc8] sm:$0x1] %v803_v58  ;;  %v8390_v62 = vld [vmem:[#allocation2 + $0x28] sm:$0xf]  ;;  %v4245_v26 = vrot.slane %v4243_v22, 4  ;;  %v4267_v37 = vshrl.u32 %v4197_v41, 16  ;;  %v3529_v19 = vsel %vm7586_vm15, %v6137_v57, %v3528_v17  ;;  %v8412_v32 = vadd.f32 %v8203_v20, %v8248_v27  ;;  %v8416_v58 = vpop.f32.mrf.mxu1 }
 0x120   : > { %v4270_v52 = vshll.u32 %v4197_v41, 16  ;;  %v3053_v29 = vrot.slane %v3052_v49, 4  ;;  %v4248_v4 = vrot.slane %v4246_v40, 5  ;;  %v4254_v14 = vrot.slane %v4252_v55, 5  ;;  %v4200_v41 = vld [vmem:[#allocation2 + $0x30] sm:$0xf] }
 0x121   : > { %v4258_v39 = vrot.slane %v4256_v47, 4  ;;  %v4269_v24 = vrot.slane %v4267_v37, 4  ;;  %v4276_v33 = vshll.u32 %v8390_v62, 16  ;;  %v4280_v8 = vshrl.u32 %v8390_v62, 16 }
 0x122   : > { %v4272_v31 = vrot.slane %v4270_v52, 5  ;;  %v4249_v15 = vor.u32 %v4248_v4, %v4245_v26  ;;  %v4264_v2 = vrot.slane %v4262_v30, 5  ;;  %v4286_v46 = vshll.u32 %v8396_v0, 16  ;;  %v8436_v4 = vld [vmem:[#allocation2 + $0x38] sm:$0x1] }
 0x123   : > { %v4259_v60 = vor.u32 %v4258_v39, %v4254_v14  ;;  %v8407_v7 = vrot.slane %v4276_v33, 5  ;;  %v4282_v5 = vrot.slane %v4280_v8, 4  ;;  %v3530_v28 = vrot.slane %v3528_v17, 4  ;;  %v8424_v17 = vld [vmem:[#allocation2 + $0x34] sm:$0xf] }
 0x124   : > { %v4273_v10 = vor.u32 %v4272_v31, %v4269_v24  ;;  %v4250_v21 = vrot.slane %v4249_v15, 4  ;;  %v4288_v55 = vrot.slane %v4286_v46, 5  ;;  %v4291_v52 = vshrl.u32 %v4200_v41, 16  ;;  %v8439_v24 = vpop.f32.mrf.mxu0  ;;  %v8441_v31 = vpop.f32.mrf.mxu1  ;;  %v4203_v15 = vld [vmem:[#allocation2 + $0x3c] sm:$0xf] }
 0x125   : > { %v4260_v49 = vrot.slane %v4259_v60, 4  ;;  %v4283_v40 = vor.u32 %v4282_v5, %v8407_v7  ;;  %v4294_v39 = vshll.u32 %v4200_v41, 16  ;;  %v4304_v8 = vshrl.u32 %v8424_v17, 16  ;;  %v8447_v60 = vld [vmem:[#allocation2 + $0x40] sm:$0xf]  ;;  %v7034_v46 = vld [vmem:[#allocation2 + $0x18] sm:$0xff]  }
 0x126   : > { %6809 = vmatmul.mubr.msk.bf16.gmra.mxu0 %vm1299_vm9, %v6102_v23  ;;  %v2674_v57 = vld [vmem:[#allocation2 + $0xc8] sm:$0x1]  ;;  %v4274_v22 = vrot.slane %v4273_v10, 4  ;;  %v8422_v23 = vadd.f32 %v8250_v48, %v8293_v1  ;;  %v4255_v47 = vsel %vm7180_vm11, %v4250_v21, %v4254_v14  ;;  %v4300_v14 = vshll.u32 %v8424_v17, 16 }
 0x127   : > { %6812 = vmatprep.mubr.msk.bf16.mxu0 %vm1299_vm9, %v6103_v56  ;;  %v3055_v20 = vshll.u32 %v2674_v57, 16  ;;  %v3531_v27 = vrot.slane %v2674_v57, 5  ;;  %v4265_v30 = vsel %vm7180_vm11, %v4260_v49, %v4264_v2  ;;  %v3048_v56 = vsel %vm7180_vm11, %v8384_v50, %v8347_v6 }
 0x128   : > { %v6210_v26 = vcombine.low %v4255_v47, %v4265_v30  ;;  %v4284_v37 = vrot.slane %v4283_v40, 4  ;;  %v4279_v6 = vsel %vm7180_vm11, %v4274_v22, %v8407_v7  ;;  %v4293_v50 = vrot.slane %v4291_v52, 4  ;;  %v4206_v52 = vld [vmem:[#allocation2 + $0x48] sm:$0xf] }
 0x129   : > { %v3057_v48 = vrot.slane %v3055_v20, 5  ;;  %v3532_v1 = vsel %vm7586_vm15, %v3530_v28, %v3531_v27  ;;  %v4296_v5 = vrot.slane %v4294_v39, 5  ;;  %v4302_v28 = vrot.slane %v4300_v14, 5  ;;  %v8465_v20 = vpop.f32.mrf.mxu1  ;;  %v8471_v14 = vld [vmem:[#allocation2 + $0x4c] sm:$0xf] }
 0x12a   : > { %v6155_v33 = vcombine.low %v3529_v19, %v3532_v1  ;;  %v4289_v10 = vsel %vm7180_vm11, %v4284_v37, %v4288_v55  ;;  %v8453_v19 = vld [vmem:[#allocation2 + $0x44] sm:$0x1]  ;;  %v4306_v7 = vrot.slane %v4304_v8, 4  ;;  %v4310_v49 = vshll.u32 %v8436_v4, 16  ;;  %v8463_v55 = vpop.f32.mrf.mxu0 }
 0x12b   : > { %v3058_v2 = vsel %vm7180_vm11, %v3053_v29, %v3057_v48  ;;  %v8459_v41 = vadd.f32 %v8281_v34, %v8314_v12  ;;  %v4297_v29 = vor.u32 %v4296_v5, %v4293_v50  ;;  %v4315_v57 = vshrl.u32 %v4203_v15, 16  ;;  %v8483_v5 = vpop.f32.mrf.mxu1 }
 0x12c   : > { %v6104_v21 = vcombine.low %v3048_v56, %v3058_v2  ;;  %6847 = vmatmul.mubr.msk.bf16.gmra.mxu1 %vm1299_vm9, %v6155_v33  ;;  %v4318_v22 = vshll.u32 %v4203_v15, 16  ;;  %v4324_v40 = vshll.u32 %v8447_v60, 16  ;;  %v4307_v27 = vor.u32 %v4306_v7, %v4302_v28  ;;  %v8479_v2 = vld [vmem:[#allocation2 + $0x50] sm:$0x1] }
 0x12d   : > { %6886 = vmatprep.mubr.msk.bf16.mxu1 %vm1299_vm9, %v6210_v26  ;;  %v4312_v47 = vrot.slane %v4310_v49, 5  ;;  %v4328_v30 = vshrl.u32 %v8447_v60, 16  ;;  %v4334_v34 = vshll.u32 %v8453_v19, 16  ;;  %v4298_v12 = vrot.slane %v4297_v29, 4  ;;  %v7037_v49 = vld [vmem:[#allocation2 + $0x30] sm:$0xff]  }
 0x12e   : > { %6813 = vmatmul.mubr.msk.bf16.gmra.mxu0 %vm1299_vm9, %v6104_v21  ;;  %v4317_v56 = vrot.slane %v4315_v57, 4  ;;  %v4320_v26 = vrot.slane %v4318_v22, 5  ;;  %v4326_v37 = vrot.slane %v4324_v40, 5  ;;  %v6211_v48 = vcombine.low %v4279_v6, %v4289_v10  ;;  %v7036_v6 = vld [vmem:[#allocation2 + $0x24] sm:$0xff]   ;;  %v4209_v22 = vld [vmem:[#allocation2 + $0x54] sm:$0xf] }
 0x12f   : > { %6852 = vmatprep.mubr.msk.bf16.mxu0 %vm1299_vm9, %v7034_v46  ;;  %v4308_v1 = vrot.slane %v4307_v27, 4  ;;  %v4330_v39 = vrot.slane %v4328_v30, 4  ;;  %v4303_v33 = vsel %vm7180_vm11, %v4298_v12, %v4302_v28  ;;  %v4336_v8 = vrot.slane %v4334_v34, 5  ;;  %v8481_v46 = vpop.f32.mrf.mxu0  ;;  %v8495_v34 = vld [vmem:[#allocation2 + $0x58] sm:$0xf] }
 0x130   : > { %v4321_v50 = vor.u32 %v4320_v26, %v4317_v56  ;;  %v8477_v15 = vadd.f32 %v8295_v13, %v8339_v18  ;;  %v8489_v28 = vadd.f32 %v8341_v53, %v8374_v59  ;;  %v4339_v7 = vshrl.u32 %v4206_v52, 16  ;;  %v8504_v26 = vld [vmem:[#allocation2 + $0x5c] sm:$0x1] }
 0x131   : > { %v4313_v10 = vsel %vm7180_vm11, %v4308_v1, %v4312_v47  ;;  %v4331_v21 = vor.u32 %v4330_v39, %v4326_v37  ;;  %v4342_v18 = vshll.u32 %v4206_v52, 16  ;;  %v4348_v57 = vshll.u32 %v8471_v14, 16  ;;  %v8506_v52 = vpop.f32.mrf.mxu0 }
 0x132   : > { %v6212_v29 = vcombine.low %v4303_v33, %v4313_v10  ;;  %v4322_v13 = vrot.slane %v4321_v50, 4  ;;  %v4341_v27 = vrot.slane %v4339_v7, 4  ;;  %v4352_v30 = vshrl.u32 %v8471_v14, 16 }
 0x133   : > { %v4332_v40 = vrot.slane %v4331_v21, 4  ;;  %v4358_v47 = vshll.u32 %v8479_v2, 16  ;;  %v4344_v59 = vrot.slane %v4342_v18, 5  ;;  %v4350_v12 = vrot.slane %v4348_v57, 5  ;;  %v4212_v57 = vld [vmem:[#allocation2 + $0x60] sm:$0xf] }
 0x134   : > { %6887 = vmatmul.mubr.msk.bf16.vlgmr.msra.gmra.mxu1 %vm1299_vm9, %v6211_v48  ;;  %v4327_v53 = vsel %vm7180_vm11, %v4322_v13, %v4326_v37  ;;  %v8502_v56 = vadd.f32 %v8351_v16, %v8398_v45  ;;  %v8508_v48 = vpop.f32.mrf.mxu1  ;;  %v4354_v39 = vrot.slane %v4352_v30, 4  ;;  %v4363_v37 = vshrl.u32 %v4209_v22, 16 }
 0x135   : > { %6890 = vmatprep.mubr.msk.bf16.mxu1 %vm1299_vm9, %v6212_v29  ;;  %v4337_v1 = vsel %vm7180_vm11, %v4332_v40, %v4336_v8  ;;  %v4360_v33 = vrot.slane %v4358_v47, 5  ;;  %v4345_v45 = vor.u32 %v4344_v59, %v4341_v27  ;;  %v4366_v50 = vshll.u32 %v4209_v22, 16  ;;  %v8518_v40 = vpop.f32.mrf.mxu0  ;;  %v8526_v47 = vld [vmem:[#allocation2 + $0x64] sm:$0xf] }
 0x136   : > { %6853 = vmatmul.mubr.msk.bf16.vlgmr.msra.gmra.mxu0 %vm1299_vm9, %v7036_v6  ;;  %v6213_v16 = vcombine.low %v4327_v53, %v4337_v1  ;;  %v4372_v10 = vshll.u32 %v8495_v34, 16  ;;  %v4355_v21 = vor.u32 %v4354_v39, %v4350_v12  ;;  %v4365_v7 = vrot.slane %v4363_v37, 4  ;;  %v7039_v53 = vld [vmem:[#allocation2 + $0x48] sm:$0xff]  }
 0x137   : > { %6919 = vmatpush3.bf16.msra.mxu0 %v8124_v51  ;;  %6856 = vmatprep.mubr.msk.bf16.mxu0 %vm1299_vm9, %v7037_v49  ;;  %v4376_v29 = vshrl.u32 %v8495_v34, 16  ;;  %v4382_v6 = vshll.u32 %v8504_v26, 16  ;;  %v4346_v13 = vrot.slane %v4345_v45, 4  ;;  %v4368_v8 = vrot.slane %v4366_v50, 5  ;;  %v8520_v51 = vpop.f32.mrf.mxu1  ;;  %v7038_v49 = vld [vmem:[#allocation2 + $0x3c] sm:$0xff]  }
 0x138   : > { %v4374_v18 = vrot.slane %v4372_v10, 5  ;;  %v4356_v30 = vrot.slane %v4355_v21, 4  ;;  %v8524_v22 = vadd.f32 %v8376_v36, %v8414_v61  ;;  %v8532_v37 = vadd.f32 %v8416_v58, %v8463_v55  ;;  %v8534_v45 = vld [vmem:[#allocation2 + $0x68] sm:$0x1] }
 0x139   : > { %v4378_v27 = vrot.slane %v4376_v29, 4  ;;  %v4351_v59 = vsel %vm7180_vm11, %v4346_v13, %v4350_v12  ;;  %v4369_v1 = vor.u32 %v4368_v8, %v4365_v7  ;;  %v4384_v39 = vrot.slane %v4382_v6, 5  ;;  %v4215_v6 = vld [vmem:[#allocation2 + $0x6c] sm:$0xf]  ;;  %v8541_v58 = vpop.f32.mrf.mxu1 }
 0x13a   : > { %9498 = vst [vmem:[#allocation7_spill] sm:$0xff] %v8524_v22  ;;  %9499 = vst [vmem:[#allocation8_spill] sm:$0xff] %v8532_v37  ;;  %v4361_v36 = vsel %vm7180_vm11, %v4356_v30, %v4360_v33  ;;  %v4387_v50 = vshrl.u32 %v4212_v57, 16  ;;  %v4390_v10 = vshll.u32 %v4212_v57, 16  ;;  %v4396_v12 = vshll.u32 %v8526_v47, 16 }
 0x13b   : > { %v4379_v61 = vor.u32 %v4378_v27, %v4374_v18  ;;  %v6214_v21 = vcombine.low %v4351_v59, %v4361_v36  ;;  %v4370_v29 = vrot.slane %v4369_v1, 4  ;;  %v4400_v7 = vshrl.u32 %v8526_v47, 16  ;;  %v8545_v30 = vld [vmem:[#allocation2 + $0x70] sm:$0xf] }
 0x13c   : > { %6891 = vmatmul.mubr.msk.bf16.gmra.mxu1 %vm1299_vm9, %v6213_v16  ;;  %v6666_v13 = vpop.f32.mrf.mxu0  ;;  %v4389_v16 = vrot.slane %v4387_v50, 4  ;;  %v4392_v8 = vrot.slane %v4390_v10, 5  ;;  %v4406_v33 = vshll.u32 %v8534_v45, 16  ;;  %v4398_v27 = vrot.slane %v4396_v12, 5  ;;  %v7040_v12 = vld [vmem:[#allocation2 + $0x54] sm:$0xff]  }
 0x13d   : > { %v4380_v55 = vrot.slane %v4379_v61, 4  ;;  %6894 = vmatprep.mubr.msk.bf16.mxu1 %vm1299_vm9, %v6214_v21  ;;  %v4375_v57 = vsel %vm7180_vm11, %v4370_v29, %v4374_v18  ;;  %v4402_v59 = vrot.slane %v4400_v7, 4  ;;  %v8553_v1 = vadd.f32 %v8441_v31, %v8481_v46  ;;  %v8560_v29 = vpop.f32.mrf.mxu1 }
 0x13e   : > { %6857 = vmatmul.mubr.msk.bf16.gmra.mxu0 %vm1299_vm9, %v7038_v49  ;;  %v8555_v49 = vld [vmem:[#allocation2 + $0x74] sm:$0x1]  ;;  %v1446_v36 = vpop.f32.mrf.mxu0  ;;  %v4393_v50 = vor.u32 %v4392_v8, %v4389_v16  ;;  %v4408_v10 = vrot.slane %v4406_v33, 5  ;;  %v4414_v38 = vshll.u32 %v4215_v6, 16  ;;  %v4420_v18 = vshll.u32 %v8545_v30, 16  ;;  %9501 = vst [vmem:[#allocation10_spill] sm:$0xff] %v8560_v29 }
 0x13f   : > { %6860 = vmatprep.mubr.msk.bf16.mxu0 %vm1299_vm9, %v7039_v53  ;;  %9500 = vst [vmem:[#allocation9_spill] sm:$0xff] %v8553_v1  ;;  %v4385_v61 = vsel %vm7180_vm11, %v4380_v55, %v4384_v39  ;;  %v4411_v53 = vshrl.u32 %v4215_v6, 16  ;;  %v4403_v21 = vor.u32 %v4402_v59, %v4398_v27  ;;  %v4424_v46 = vshrl.u32 %v8545_v30, 16  ;;  %v4218_v16 = vld [vmem:[#allocation2 + $0x78] sm:$0xf]  ;;  %v7042_v29 = vld [vmem:[#allocation2 + $0x6c] sm:$0xff]  }
 0x140   : > { %v6215_v63 = vcombine.low %v4375_v57, %v4385_v61  ;;  %v4394_v7 = vrot.slane %v4393_v50, 4  ;;  %v4430_v25 = vshll.u32 %v8555_v49, 16  ;;  %v4416_v39 = vrot.slane %v4414_v38, 5  ;;  %v6667_v8 = vpop.f32.mrf.mxu0  ;;  %v8571_v61 = vld [vmem:[#allocation2 + $0x7c] sm:$0xf] }
 0x141   : > { %v4413_v31 = vrot.slane %v4411_v53, 4  ;;  %v4404_v1 = vrot.slane %v4403_v21, 4  ;;  %v4422_v55 = vrot.slane %v4420_v18, 5  ;;  %v4426_v33 = vrot.slane %v4424_v46, 4  ;;  %v8573_v50 = vld [vmem:[#allocation2 + $0x80] sm:$0x1] }
 0x142   : > { %v4399_v6 = vsel %vm7180_vm11, %v4394_v7, %v4398_v27  ;;  %v4432_v57 = vrot.slane %v4430_v25, 5  ;;  %v8569_v59 = vadd.f32 %v8465_v20, %v8506_v52  ;;  %v8582_v27 = vadd.f32 %v8508_v48, %v6666_v13  ;;  %v6704_v25 = vpop.f32.mrf.mxu1 }
 0x143   : > { %v4409_v38 = vsel %vm7180_vm11, %v4404_v1, %v4408_v10  ;;  %v4417_v53 = vor.u32 %v4416_v39, %v4413_v31  ;;  %v4427_v52 = vor.u32 %v4426_v33, %v4422_v55  ;;  %v4435_v21 = vshrl.u32 %v4218_v16, 16  ;;  %v8589_v31 = vpop.f32.mrf.mxu0  ;;  %v8595_v39 = vld [vmem:[#allocation2 + $0x88] sm:$0xf] }
 0x144   : > { %6895 = vmatmul.mubr.msk.bf16.gmra.mxu1 %vm1299_vm9, %v6215_v63  ;;  %9502 = vst [vmem:[#allocation11_spill] sm:$0xff] %v8569_v59  ;;  %v8579_v63 = vadd.f32 %v8483_v5, %v8518_v40  ;;  %9504 = vst [vmem:[#allocation13_spill] sm:$0xff] %v8582_v27  ;;  %v6216_v20 = vcombine.low %v4399_v6, %v4409_v38  ;;  %v4438_v18 = vshll.u32 %v4218_v16, 16  ;;  %v4444_v1 = vshll.u32 %v8571_v61, 16  ;;  %v4221_v40 = vld [vmem:[#allocation2 + $0x84] sm:$0xf] }
 0x145   : > { %v4418_v7 = vrot.slane %v4417_v53, 4  ;;  %v4448_v10 = vshrl.u32 %v8571_v61, 16  ;;  %v4454_v5 = vshll.u32 %v8573_v50, 16  ;;  %9505 = vst [vmem:[#allocation14_spill] sm:$0xff] %v8589_v31  ;;  %v4428_v48 = vrot.slane %v4427_v52, 4  ;;  %v1757_v53 = vpop.f32.mrf.mxu1 }
 0x146   : > { %9503 = vst [vmem:[#allocation12_spill] sm:$0xff] %v8579_v63  ;;  %6861 = vmatmul.mubr.msk.bf16.gmra.mxu0 %vm1299_vm9, %v7040_v12  ;;  %6898 = vmatprep.mubr.msk.bf16.mxu1 %vm1299_vm9, %v6216_v20  ;;  %v4437_v13 = vrot.slane %v4435_v21, 4  ;;  %v4440_v12 = vrot.slane %v4438_v18, 5  ;;  %v8593_v46 = vadd.f32 %v8520_v51, %v1446_v36  ;;  %v4446_v16 = vrot.slane %v4444_v1, 5  ;;  %v8599_v38 = vld [vmem:[#allocation2 + $0x8c] sm:$0x1] }
 0x147   : > { %6864 = vmatprep.mubr.msk.bf16.mxu0 %vm1299_vm9, %v7041_v42  ;;  %v4423_v42 = vsel %vm7180_vm11, %v4418_v7, %v4422_v55  ;;  %v4450_v6 = vrot.slane %v4448_v10, 4  ;;  %v4456_v33 = vrot.slane %v4454_v5, 5  ;;  %v4433_v20 = vsel %vm7180_vm11, %v4428_v48, %v4432_v57  ;;  %v7043_v36 = vld [vmem:[#allocation2 + $0x78] sm:$0xff]   ;;  %v6670_v7 = vpop.f32.mrf.mxu0  ;;  %v4224_v63 = vld [vmem:[#allocation2 + $0x90] sm:$0xf] }
 0x148   : > { %9506 = vst [vmem:[#allocation15_spill] sm:$0xff] %v8593_v46  ;;  %v4441_v52 = vor.u32 %v4440_v12, %v4437_v13  ;;  %v4459_v21 = vshrl.u32 %v4221_v40, 16  ;;  %v4462_v18 = vshll.u32 %v4221_v40, 16  ;;  %v6217_v51 = vcombine.low %v4423_v42, %v4433_v20  ;;  %v8610_v12 = vld [vmem:[#allocation2 + $0x94] sm:$0xf]  ;;  %v6705_v42 = vpop.f32.mrf.mxu1 }
 0x149   : > { %v4451_v31 = vor.u32 %v4450_v6, %v4446_v16  ;;  %v4468_v46 = vshll.u32 %v8595_v39, 16  ;;  %v4472_v55 = vshrl.u32 %v8595_v39, 16  ;;  %v4478_v27 = vshll.u32 %v8599_v38, 16 }
 0x14a   : > { %v4442_v1 = vrot.slane %v4441_v52, 4  ;;  %v4461_v10 = vrot.slane %v4459_v21, 4  ;;  %v4464_v5 = vrot.slane %v4462_v18, 5  ;;  %v8608_v40 = vadd.f32 %v8541_v58, %v6667_v8  ;;  %v8616_v18 = vld [vmem:[#allocation2 + $0x98] sm:$0x1] }
 0x14b   : > { %v4452_v57 = vrot.slane %v4451_v31, 4  ;;  %v4470_v48 = vrot.slane %v4468_v46, 5  ;;  %v4474_v13 = vrot.slane %v4472_v55, 4  ;;  %v4480_v21 = vrot.slane %v4478_v27, 5  ;;  %9508 = vst [vmem:[#allocation17_spill] sm:$0xff] %v8616_v18 }
 0x14c   : > { %6899 = vmatmul.mubr.msk.bf16.gmra.mxu1 %vm1299_vm9, %v6217_v51  ;;  %9507 = vst [vmem:[#allocation16_spill] sm:$0xff] %v8608_v40  ;;  %v4447_v20 = vsel %vm7180_vm11, %v4442_v1, %v4446_v16  ;;  %v4465_v52 = vor.u32 %v4464_v5, %v4461_v10  ;;  %v8621_v31 = vadd.f32 %v6704_v25, %v6670_v7  ;;  %v4483_v46 = vshrl.u32 %v4224_v63, 16  ;;  %v1462_v51 = vpop.f32.mrf.mxu0  ;;  %v4227_v16 = vld [vmem:[#allocation2 + $0x9c] sm:$0xf]  ;;  %v8626_v5 = vld [vmem:[#allocation2 + $0xa0] sm:$0xf] }
 0x14d   : > { %v4457_v58 = vsel %vm7180_vm11, %v4452_v57, %v4456_v33  ;;  %v4475_v8 = vor.u32 %v4474_v13, %v4470_v48  ;;  %v4492_v40 = vshll.u32 %v8610_v12, 16  ;;  %v4496_v10 = vshrl.u32 %v8610_v12, 16  ;;  %v8628_v33 = vpop.f32.mrf.mxu1  ;;  %v7044_v25 = vld [vmem:[#allocation2 + $0x84] sm:$0xff]  }
 0x14e   : > { %6865 = vmatmul.mubr.msk.bf16.gmra.mxu0 %vm1299_vm9, %v7042_v29  ;;  %9509 = vst [vmem:[#allocation18_spill] sm:$0xff] %v8621_v31  ;;  %v6218_v55 = vcombine.low %v4447_v20, %v4457_v58  ;;  %v4466_v6 = vrot.slane %v4465_v52, 4  ;;  %v4486_v29 = vshll.u32 %v4224_v63, 16  ;;  %v4485_v27 = vrot.slane %v4483_v46, 4  ;;  %9510 = vst [vmem:[#allocation19_spill] sm:$0xff] %v8628_v33  ;;  %v7045_v58 = vld [vmem:[#allocation2 + $0x90] sm:$0xff]   ;;  %v6671_v33 = vpop.f32.mrf.mxu0 }
 0x14f   : > { %6868 = vmatprep.mubr.msk.bf16.mxu0 %vm1299_vm9, %v7043_v36  ;;  %v4476_v1 = vrot.slane %v4475_v8, 4  ;;  %v4502_v36 = vshll.u32 %v8616_v18, 16  ;;  %v4494_v57 = vrot.slane %v4492_v40, 5  ;;  %v8633_v13 = vadd.f32 %v1757_v53, %v1462_v51  ;;  %v8635_v20 = vld [vmem:[#allocation2 + $0xa4] sm:$0x1] }
 0x150   : > { %6902 = vmatprep.mubr.msk.bf16.mxu1 %vm1299_vm9, %v6218_v55  ;;  %v4471_v7 = vsel %vm7180_vm11, %v4466_v6, %v4470_v48  ;;  %v4488_v63 = vrot.slane %v4486_v29, 5  ;;  %v4498_v8 = vrot.slane %v4496_v10, 4  ;;  %v4507_v31 = vshrl.u32 %v4227_v16, 16  ;;  %v4230_v29 = vld [vmem:[#allocation2 + $0xa8] sm:$0xf] }
 0x151   : > { %9511 = vst [vmem:[#allocation20_spill] sm:$0xff] %v8633_v13  ;;  %v4481_v52 = vsel %vm7180_vm11, %v4476_v1, %v4480_v21  ;;  %v4504_v46 = vrot.slane %v4502_v36, 5  ;;  %v4510_v55 = vshll.u32 %v4227_v16, 16  ;;  %v4516_v18 = vshll.u32 %v8626_v5, 16  ;;  %v8646_v16 = vld [vmem:[#allocation2 + $0xac] sm:$0xf] }
 0x152   : > { %v6219_v59 = vcombine.low %v4471_v7, %v4481_v52  ;;  %v4489_v37 = vor.u32 %v4488_v63, %v4485_v27  ;;  %v4499_v48 = vor.u32 %v4498_v8, %v4494_v57  ;;  %v4509_v6 = vrot.slane %v4507_v31, 4  ;;  %9513 = vst [vmem:[#allocation22_spill] sm:$0xff] %v8646_v16  ;;  %v8652_v8 = vld [vmem:[#allocation2 + $0xb0] sm:$0x1] }
 0x153   : > { %v4520_v53 = vshrl.u32 %v8626_v5, 16  ;;  %v4526_v40 = vshll.u32 %v8635_v20, 16  ;;  %v4512_v1 = vrot.slane %v4510_v55, 5  ;;  %v4518_v10 = vrot.slane %v4516_v18, 5  ;;  %9514 = vst [vmem:[#allocation23_spill] sm:$0xff] %v8652_v8 }
 0x154   : > { %6903 = vmatmul.mubr.msk.bf16.gmra.mxu1 %vm1299_vm9, %v6219_v59  ;;  %v4490_v21 = vrot.slane %v4489_v37, 4  ;;  %v8644_v36 = vadd.f32 %v6705_v42, %v6671_v33  ;;  %v4500_v31 = vrot.slane %v4499_v48, 4  ;;  %v4531_v37 = vshrl.u32 %v4230_v29, 16  ;;  %v4233_v48 = vld [vmem:[#allocation2 + $0xb4] sm:$0xf] }
 0x155   : > { %v6708_v51 = vpop.f32.mrf.mxu1  ;;  %v4522_v7 = vrot.slane %v4520_v53, 4  ;;  %v4528_v63 = vrot.slane %v4526_v40, 5  ;;  %v4534_v59 = vshll.u32 %v4230_v29, 16  ;;  %v4540_v55 = vshll.u32 %v8646_v16, 16  ;;  %v7046_v53 = vld [vmem:[#allocation2 + $0x9c] sm:$0xff]  }
 0x156   : > { %6869 = vmatmul.mubr.msk.bf16.gmra.mxu0 %vm1299_vm9, %v7044_v25  ;;  %9512 = vst [vmem:[#allocation21_spill] sm:$0xff] %v8644_v36  ;;  %v4495_v52 = vsel %vm7180_vm11, %v4490_v21, %v4494_v57  ;;  %v4513_v25 = vor.u32 %v4512_v1, %v4509_v6  ;;  %v4505_v42 = vsel %vm7180_vm11, %v4500_v31, %v4504_v46  ;;  %v8658_v36 = vpop.f32.mrf.mxu0  ;;  %v4533_v57 = vrot.slane %v4531_v37, 4  ;;  %v8660_v21 = vld [vmem:[#allocation2 + $0xb8] sm:$0xf]  ;;  %v7047_v1 = vld [vmem:[#allocation2 + $0xa8] sm:$0xff]  }
 0x157   : > { %6872 = vmatprep.mubr.msk.bf16.mxu0 %vm1299_vm9, %v7045_v58  ;;  %v1773_v18 = vpop.f32.mrf.mxu1  ;;  %v4523_v33 = vor.u32 %v4522_v7, %v4518_v10  ;;  %v4544_v58 = vshrl.u32 %v8646_v16, 16  ;;  %v6220_v40 = vcombine.low %v4495_v52, %v4505_v42  ;;  %9515 = vst [vmem:[#allocation24_spill] sm:$0xff] %v8658_v36  ;;  %v4536_v6 = vrot.slane %v4534_v59, 5  ;;  %9516 = vst [vmem:[#allocation25_spill] sm:$0xff] %v8660_v21 }
 0x158   : > { %v4514_v27 = vrot.slane %v4513_v25, 4  ;;  %v4542_v13 = vrot.slane %v4540_v55, 5  ;;  %v4550_v46 = vshll.u32 %v8652_v8, 16  ;;  %v4555_v52 = vshrl.u32 %v4233_v48, 16 }
 0x159   : > { %v4524_v29 = vrot.slane %v4523_v33, 4  ;;  %v4546_v22 = vrot.slane %v4544_v58, 4  ;;  %6906 = vmatprep.mubr.msk.bf16.mxu1 %vm1299_vm9, %v6220_v40  ;;  %v4537_v7 = vor.u32 %v4536_v6, %v4533_v57  ;;  %v4558_v25 = vshll.u32 %v4233_v48, 16  ;;  %v6709_v42 = vpop.f32.mrf.mxu1  ;;  %v8668_v33 = vld [vmem:[#allocation2 + $0xbc] sm:$0x1] }
 0x15a   : > { %v4519_v31 = vsel %vm7180_vm11, %v4514_v27, %v4518_v10  ;;  %v4552_v36 = vrot.slane %v4550_v46, 5  ;;  %9517 = vst [vmem:[#allocation26_spill] sm:$0xff] %v8668_v33  ;;  %v4564_v55 = vshll.u32 %v8660_v21, 16  ;;  %v4236_v58 = vld [vmem:[#allocation2 + $0xc0] sm:$0xf]  ;;  %v4557_v10 = vrot.slane %v4555_v52, 4 }
 0x15b   : > { %v4529_v37 = vsel %vm7180_vm11, %v4524_v29, %v4528_v63  ;;  %v4547_v59 = vor.u32 %v4546_v22, %v4542_v13  ;;  %v4538_v16 = vrot.slane %v4537_v7, 4  ;;  %v4560_v27 = vrot.slane %v4558_v25, 5  ;;  %v8682_v7 = vld [vmem:[#allocation2 + $0xc4] sm:$0xf]  ;;  %v8688_v25 = vld [vmem:[#allocation2 + $0xc8] sm:$0x1] }
 0x15c   : > { %v6221_v40 = vcombine.low %v4519_v31, %v4529_v37  ;;  %v4566_v63 = vrot.slane %v4564_v55, 5  ;;  %v4568_v22 = vshrl.u32 %v8660_v21, 16  ;;  %v4574_v46 = vshll.u32 %v8668_v33, 16  ;;  %v8680_v31 = vpop.f32.mrf.mxu1  ;;  %9520 = vst [vmem:[#allocation29_spill] sm:$0xff] %v8682_v7  ;;  %9522 = vst [vmem:[#allocation31_spill] sm:$0xff] %v8688_v25  ;;  %v7049_v33 = vld [vmem:[#allocation2 + $0xc0] sm:$0xff]  }
 0x15d   : > { %v6674_v8 = vpop.f32.mrf.mxu0  ;;  %v4548_v57 = vrot.slane %v4547_v59, 4  ;;  %v4543_v6 = vsel %vm7180_vm11, %v4538_v16, %v4542_v13  ;;  %9519 = vst [vmem:[#allocation28_spill] sm:$0xff] %v8680_v31  ;;  %v4582_v37 = vshll.u32 %v4236_v58, 16  ;;  %v4239_v59 = vld [vmem:[#allocation2 + $0xcc] sm:$0xf]  ;;  %v7048_v13 = vld [vmem:[#allocation2 + $0xb4] sm:$0xff]  }
 0x15e   : > { %6873 = vmatmul.mubr.msk.bf16.gmra.mxu0 %vm1299_vm9, %v7046_v53  ;;  %v8673_v48 = vadd.f32 %v6708_v51, %v6674_v8  ;;  %6907 = vmatmul.mubr.msk.bf16.gmra.mxu1 %vm1299_vm9, %v6221_v40  ;;  %v4561_v53 = vor.u32 %v4560_v27, %v4557_v10  ;;  %v4570_v52 = vrot.slane %v4568_v22, 4  ;;  %v4576_v40 = vrot.slane %v4574_v46, 5 }
 0x15f   : > { %6876 = vmatprep.mubr.msk.bf16.mxu0 %vm1299_vm9, %v7047_v1  ;;  %v1478_v29 = vpop.f32.mrf.mxu0  ;;  %v4579_v1 = vshrl.u32 %v4236_v58, 16  ;;  %v4553_v51 = vsel %vm7180_vm11, %v4548_v57, %v4552_v36  ;;  %v4584_v21 = vrot.slane %v4582_v37, 5  ;;  %v4588_v36 = vshll.u32 %v8682_v7, 16 }
 0x160   : > { %9518 = vst [vmem:[#allocation27_spill] sm:$0xff] %v8673_v48  ;;  %v8686_v8 = vadd.f32 %v1773_v18, %v1478_v29  ;;  %v6222_v16 = vcombine.low %v4543_v6, %v4553_v51  ;;  %v4562_v55 = vrot.slane %v4561_v53, 4  ;;  %v4571_v31 = vor.u32 %v4570_v52, %v4566_v63  ;;  %v8697_v6 = vld [vmem:[#allocation2 + $0xd0] sm:$0xf]  ;;  %v8701_v51 = vld [vmem:[#allocation2 + $0xd4] sm:$0x1] }
 0x161   : > { %v6675_v10 = vpop.f32.mrf.mxu0  ;;  %v4581_v27 = vrot.slane %v4579_v1, 4  ;;  %v4592_v58 = vshrl.u32 %v8682_v7, 16  ;;  %v4598_v22 = vshll.u32 %v8688_v25, 16  ;;  %9524 = vst [vmem:[#allocation33_spill] sm:$0xff] %v8697_v6  ;;  %v4603_v29 = vshrl.u32 %v4239_v59, 16  ;;  %9525 = vst [vmem:[#allocation34_spill] sm:$0xff] %v8701_v51 }
 0x162   : > { %9521 = vst [vmem:[#allocation30_spill] sm:$0xff] %v8686_v8  ;;  %v8690_v48 = vadd.f32 %v6709_v42, %v6675_v10  ;;  %6910 = vmatprep.mubr.msk.bf16.mxu1 %vm1299_vm9, %v6222_v16  ;;  %v4567_v42 = vsel %vm7180_vm11, %v4562_v55, %v4566_v63  ;;  %v4572_v53 = vrot.slane %v4571_v31, 4  ;;  %v4590_v1 = vrot.slane %v4588_v36, 5 }
 0x163   : > { %v4585_v46 = vor.u32 %v4584_v21, %v4581_v27  ;;  %v4594_v52 = vrot.slane %v4592_v58, 4  ;;  %v4600_v37 = vrot.slane %v4598_v22, 5  ;;  %v4605_v10 = vrot.slane %v4603_v29, 4  ;;  %v4925_v58 = vld [vmem:[#allocation2 + $0x24] sm:$0xe]  ;;  %v8710_v22 = vpop.f32.mrf.mxu0 }
 0x164   : > { %9523 = vst [vmem:[#allocation32_spill] sm:$0xff] %v8690_v48  ;;  %v6712_v57 = vpop.f32.mrf.mxu1  ;;  %v4606_v18 = vshll.u32 %v4239_v59, 16  ;;  %v4924_v48 = vld [vmem:[#allocation2 + $0x18] sm:$0xe]  ;;  %v4577_v8 = vsel %vm7180_vm11, %v4572_v53, %v4576_v40  ;;  %v4612_v63 = vshll.u32 %v8697_v6, 16  ;;  %v4616_v21 = vshrl.u32 %v8697_v6, 16 }
 0x165   : > { %v4586_v25 = vrot.slane %v4585_v46, 4  ;;  %v6223_v31 = vcombine.low %v4567_v42, %v4577_v8  ;;  %v4595_v55 = vor.u32 %v4594_v52, %v4590_v1  ;;  %9526 = vst [vmem:[#allocation35_spill] sm:$0xff] %v8710_v22  ;;  %v7050_v53 = vld [vmem:[#allocation2 + $0xcc] sm:$0xff]   ;;  %v6244_v22 = vrot.slane %v4925_v58, 9 }
 0x166   : > { %6877 = vmatmul.mubr.msk.bf16.gmra.mxu0 %vm1299_vm9, %v7048_v13  ;;  %v1789_v16 = vpop.f32.mrf.mxu1  ;;  %v4608_v27 = vrot.slane %v4606_v18, 5  ;;  %v4622_v13 = vshll.u32 %v8701_v51, 16  ;;  %v4614_v40 = vrot.slane %v4612_v63, 5  ;;  %v4618_v29 = vrot.slane %v4616_v21, 4 }
 0x167   : > { %6880 = vmatprep.mubr.msk.bf16.mxu0 %vm1299_vm9, %v7049_v33  ;;  %v4591_v59 = vsel %vm7180_vm11, %v4586_v25, %v4590_v1  ;;  %v6243_v33 = vrot.slane %v4924_v48, 9  ;;  %6911 = vmatmul.mubr.msk.bf16.gmra.mxu1 %vm1299_vm9, %v6223_v31  ;;  %v4596_v46 = vrot.slane %v4595_v55, 4  ;;  %v4990_v18 = vrot.slane %v8366_v54, 5  ;;  %v4926_v31 = vld [vmem:[#allocation2 + $0x30] sm:$0xe] }
 0x168   : > { %v6713_v36 = vpop.f32.mrf.mxu1  ;;  %v4609_v6 = vor.u32 %v4608_v27, %v4605_v10  ;;  %v4624_v8 = vrot.slane %v4622_v13, 5  ;;  %v4619_v52 = vor.u32 %v4618_v29, %v4614_v40  ;;  %v4993_v51 = vrot.slane %v8368_v43, 5 }
 0x169   : > { %v9527_v7 = vrot.slane %v8390_v62, 5  ;;  %v4601_v48 = vsel %vm7180_vm11, %v4596_v46, %v4600_v37  ;;  %v4991_v63 = vsel %vm7586_vm15, %v6243_v33, %v4990_v18  ;;  %v4992_v10 = vrot.slane %v4990_v18, 4  ;;  %v4927_v37 = vld [vmem:[#allocation2 + $0x3c] sm:$0xe] }
 0x16a   : > { %v8715_v42 = vpop.f32.mrf.mxu1  ;;  %v4610_v1 = vrot.slane %v4609_v6, 4  ;;  %v6224_v54 = vcombine.low %v4591_v59, %v4601_v48  ;;  %v4620_v27 = vrot.slane %v4619_v52, 4  ;;  %v6245_v18 = vrot.slane %v4926_v31, 9  ;;  %v4929_v52 = vld [vmem:[#allocation2 + $0x54] sm:$0xe] }
 0x16b   : > { %v4999_v25 = vrot.slane %v9527_v7, 4  ;;  %v9528_v43 = vmov %v9527_v7  ;;  %v9529_v7 = vrot.slane %v8396_v0, 5  ;;  %v4994_v59 = vsel %vm7586_vm15, %v4992_v10, %v4993_v51 }
 0x16c   : > { %v8725_v21 = vpop.f32.mrf.mxu1  ;;  %v4998_v13 = vsel %vm7586_vm15, %v6244_v22, %v9528_v43  ;;  %v4615_v29 = vsel %vm7180_vm11, %v4610_v1, %v4614_v40  ;;  %v4928_v22 = vld [vmem:[#allocation2 + $0x48] sm:$0xe]  ;;  %6914 = vmatprep.mubr.msk.bf16.mxu1 %vm1299_vm9, %v6224_v54  ;;  %v4625_v46 = vsel %vm7180_vm11, %v4620_v27, %v4624_v8  ;;  %v5007_v51 = vrot.slane %v8436_v4, 5  ;;  %v4930_v27 = vld [vmem:[#allocation2 + $0x60] sm:$0xe] }
 0x16d   : > { %v6678_v55 = vpop.f32.mrf.mxu0  ;;  %v5001_v6 = vsel %vm7586_vm15, %v4999_v25, %v9529_v7  ;;  %v6225_v40 = vcombine.low %v4615_v29, %v4625_v46  ;;  %v6246_v1 = vrot.slane %v4927_v37, 9  ;;  %v5011_v8 = vrot.slane %v8447_v60, 5 }
 0x16e   : > { %v8735_v58 = vadd.f32 %v6712_v57, %v6678_v55  ;;  %6881 = vmatmul.mubr.msk.bf16.gmra.mxu0 %vm1299_vm9, %v7050_v53  ;;  %v6262_v62 = vcombine.low %v4998_v13, %v5001_v6  ;;  %v8742_v33 = vpop.f32.mrf.mxu1  ;;  %v6261_v57 = vcombine.low %v4991_v63, %v4994_v59  ;;  %v5004_v53 = vrot.slane %v8424_v17, 5  ;;  %v4931_v59 = vld [vmem:[#allocation2 + $0x6c] sm:$0xe] }
 0x16f   : > { %v1494_v0 = vpop.f32.mrf.mxu0  ;;  %v6247_v63 = vrot.slane %v4928_v22, 9  ;;  %6915 = vmatmul.mubr.msk.bf16.gmra.mxu1 %vm1299_vm9, %v6225_v40  ;;  %v5018_v31 = vrot.slane %v8471_v14, 5  ;;  %v5021_v4 = vrot.slane %v8479_v2, 5  ;;  %v6248_v54 = vrot.slane %v4929_v52, 9 }
 0x170   : > { %v8748_v25 = vadd.f32 %v1789_v16, %v1494_v0  ;;  %v6753_v48 = vpop.f32.mrf.mxu1  ;;  %6920 = vmatprep.mubr.msk.bf16.mxu0 %vm1299_vm9, %v6261_v57  ;;  %v5005_v55 = vsel %vm7586_vm15, %v6245_v18, %v5004_v53  ;;  %v5006_v44 = vrot.slane %v5004_v53, 4  ;;  %v5028_v43 = vrot.slane %v8504_v26, 5 }
 0x171   : > { %v6679_v10 = vpop.f32.mrf.mxu0  ;;  %v5013_v7 = vrot.slane %v5011_v8, 4  ;;  %v5025_v6 = vrot.slane %v8495_v34, 5  ;;  %v5019_v29 = vsel %vm7586_vm15, %v6247_v63, %v5018_v31  ;;  %v5020_v14 = vrot.slane %v5018_v31, 4 }
 0x172   : > { %v8756_v17 = vadd.f32 %v6713_v36, %v6679_v10  ;;  %v8758_v16 = vpop.f32.mrf.mxu1  ;;  %v5008_v60 = vsel %vm7586_vm15, %v5006_v44, %v5007_v51  ;;  %v5012_v22 = vsel %vm7586_vm15, %v6246_v1, %v5011_v8  ;;  %v6249_v46 = vrot.slane %v4930_v27, 9  ;;  %v4933_v8 = vld [vmem:[#allocation2 + $0x84] sm:$0xe] }
 0x173   : > { %v8763_v13 = vpop.f32.mrf.mxu0  ;;  %v6263_v36 = vcombine.low %v5005_v55, %v5008_v60  ;;  %v8774_v26 = vsel %vm7586_vm15, %v6248_v54, %v5025_v6  ;;  %v5027_v0 = vrot.slane %v5025_v6, 4  ;;  %v9530_v34 = vrot.slane %v8453_v19, 5 }
 0x174   : > { %v6756_v37 = vpop.f32.mrf.mxu1  ;;  %v5022_v52 = vsel %vm7586_vm15, %v5020_v14, %v5021_v4  ;;  %v5032_v40 = vrot.slane %v8526_v47, 5  ;;  %v6250_v19 = vrot.slane %v4931_v59, 9  ;;  %v5042_v63 = vrot.slane %v8555_v49, 5 }
 0x175   : > { %v6718_v2 = vpop.f32.mrf.mxu0  ;;  %v5015_v18 = vsel %vm7586_vm15, %v5013_v7, %v9530_v34  ;;  %v6265_v1 = vcombine.low %v5019_v29, %v5022_v52  ;;  %v5053_v59 = vrot.slane %v8595_v39, 5  ;;  %v5046_v52 = vrot.slane %v8571_v61, 5 }
 0x176   : > { %v2235_v57 = vadd.f32 %v6718_v2, %v8364_v35  ;;  %6921 = vmatmul.mubr.msk.bf16.vlgmr.msra.gmra.mxu0 %vm1299_vm9, %v6262_v62  ;;  %v2484_v53 = vpop.f32.mrf.mxu1  ;;  %v8788_v35 = vsel %vm7586_vm15, %v5027_v0, %v5028_v43  ;;  %v5035_v62 = vrot.slane %v8534_v45, 5  ;;  %v5033_v4 = vsel %vm7586_vm15, %v6249_v46, %v5032_v40 }
 0x177   : > { %v2106_v51 = vpop.f32.mrf.mxu0  ;;  %6924 = vmatprep.mubr.msk.bf16.mxu0 %vm1299_vm9, %v6263_v36  ;;  %v6266_v47 = vcombine.low %v8774_v26, %v8788_v35  ;;  %v5034_v54 = vrot.slane %v5032_v40, 4  ;;  %v5039_v45 = vrot.slane %v8545_v30, 5  ;;  %v6252_v36 = vrot.slane %v4933_v8, 9 }
 0x178   : > { %v2233_v10 = vadd.f32 %v2106_v51, %v8394_v3  ;;  %v8793_v55 = vadd.f32 %v8725_v21, %v2235_v57  ;;  %v6757_v44 = vpop.f32.mrf.mxu1  ;;  %v6264_v21 = vcombine.low %v5012_v22, %v5015_v18  ;;  %v5056_v2 = vrot.slane %v8599_v38, 5  ;;  %v4935_v22 = vld [vmem:[#allocation2 + $0x9c] sm:$0xe] }
 0x179   : > { %v6719_v31 = vpop.f32.mrf.mxu0  ;;  %v5036_v49 = vsel %vm7586_vm15, %v5034_v54, %v5035_v62  ;;  %v8813_v7 = vsel %vm7586_vm15, %v6250_v19, %v5039_v45  ;;  %v5041_v6 = vrot.slane %v5039_v45, 4  ;;  %v8830_v57 = vsel %vm7586_vm15, %v6252_v36, %v5053_v59 }
 0x17a   : > { %v2236_v27 = vadd.f32 %v6719_v31, %v8412_v32  ;;  %v8803_v3 = vadd.f32 %v8742_v33, %v2233_v10  ;;  %v8805_v43 = vpop.f32.mrf.mxu1  ;;  %v6267_v29 = vcombine.low %v5033_v4, %v5036_v49  ;;  %v5055_v34 = vrot.slane %v5053_v59, 4  ;;  %v9531_v59 = vld [vmem:[#allocation7_spill] sm:$0xff] }
 0x17b   : > { %v8807_v60 = vpop.f32.mrf.mxu0  ;;  %v8819_v14 = vsel %vm7586_vm15, %v5041_v6, %v5042_v63  ;;  %v6254_v40 = vrot.slane %v4935_v22, 9  ;;  %v5049_v4 = vrot.slane %v8573_v50, 5 }
 0x17c   : > { %v8815_v30 = vadd.f32 %v6753_v48, %v2236_v27  ;;  %v6760_v32 = vpop.f32.mrf.mxu1  ;;  %v6268_v48 = vcombine.low %v8813_v7, %v8819_v14  ;;  %v8838_v35 = vsel %vm7586_vm15, %v5055_v34, %v5056_v2 }
 0x17d   : > { %v6722_v33 = vpop.f32.mrf.mxu0 }
 0x17e   : > { %v2239_v26 = vadd.f32 %v6722_v33, %v8422_v23  ;;  %6925 = vmatmul.mubr.msk.bf16.gmra.mxu0 %vm1299_vm9, %v6264_v21  ;;  %v2500_v0 = vpop.f32.mrf.mxu1  ;;  %v4932_v23 = vld [vmem:[#allocation2 + $0x78] sm:$0xe]  ;;  %v5060_v33 = vrot.slane %v8610_v12, 5 }
 0x17f   : > { %v2122_v46 = vpop.f32.mrf.mxu0  ;;  %6928 = vmatprep.mubr.msk.bf16.mxu0 %vm1299_vm9, %v6265_v1  ;;  %v5067_v1 = vrot.slane %v8626_v5, 5  ;;  %v6251_v8 = vrot.slane %v4932_v23, 9 }
 0x180   : > { %v2237_v39 = vadd.f32 %v2122_v46, %v8459_v41  ;;  %v8833_v38 = vadd.f32 %v6756_v37, %v2239_v26  ;;  %v6761_v18 = vpop.f32.mrf.mxu1  ;;  %v6270_v41 = vcombine.low %v8830_v57, %v8838_v35  ;;  %v5070_v37 = vrot.slane %v8635_v20, 5  ;;  %v7051_v20 = vld [vmem:[%s9465_s3] sm:$0xff]  }
 0x181   : > { %v6723_v51 = vpop.f32.mrf.mxu0  ;;  %v8853_v63 = vsel %vm7586_vm15, %v6254_v40, %v5067_v1  ;;  %v5069_v31 = vrot.slane %v5067_v1, 4  ;;  %v5047_v50 = vsel %vm7586_vm15, %v6251_v8, %v5046_v52  ;;  %6952 = vmatprep.subr.bf16.mxu1 %v7051_v20  ;;  %v5062_v12 = vrot.slane %v5060_v33, 4  ;;  %v9533_v1 = vld [vmem:[#allocation8_spill] sm:$0xff] }
 0x182   : > { %v2240_v62 = vadd.f32 %v6723_v51, %v8477_v15  ;;  %v8842_v19 = vadd.f32 %v2484_v53, %v2237_v39  ;;  %v8844_v10 = vpop.f32.mrf.mxu1  ;;  %v5048_v53 = vrot.slane %v5046_v52, 4  ;;  %6953 = vmatpush3.bf16.msra.mxu1 %v7051_v20  ;;  %v9532_v52 = vld [vmem:[#allocation17_spill] sm:$0xff]  ;;  %v4938_v35 = vld [vmem:[#allocation2 + $0xc0] sm:$0xe] }
 0x183   : > { %v8849_v61 = vpop.f32.mrf.mxu0  ;;  %v8860_v45 = vsel %vm7586_vm15, %v5069_v31, %v5070_v37  ;;  %v5063_v40 = vrot.slane %v9532_v52, 5  ;;  %v9534_v37 = vld [vmem:[#allocation9_spill] sm:$0xff] }
 0x184   : > { %v8855_v5 = vadd.f32 %v6757_v44, %v2240_v62  ;;  %v6764_v15 = vpop.f32.mrf.mxu1  ;;  %v6272_v44 = vcombine.low %v8853_v63, %v8860_v45 }
 0x185   : > { %v6726_v54 = vpop.f32.mrf.mxu0 }
 0x186   : > { %v2243_v27 = vadd.f32 %v6726_v54, %v8489_v28  ;;  %6929 = vmatmul.mubr.msk.bf16.gmra.mxu0 %vm1299_vm9, %v6266_v47  ;;  %v2516_v21 = vpop.f32.mrf.mxu1  ;;  %v5050_v28 = vsel %vm7586_vm15, %v5048_v53, %v5049_v4  ;;  %v4934_v47 = vld [vmem:[#allocation2 + $0x90] sm:$0xe]  ;;  %v5064_v53 = vsel %vm7586_vm15, %v5062_v12, %v5063_v40  ;;  %v4936_v4 = vld [vmem:[#allocation2 + $0xa8] sm:$0xe] }
 0x187   : > { %v2138_v49 = vpop.f32.mrf.mxu0  ;;  %6932 = vmatprep.mubr.msk.bf16.mxu0 %vm1299_vm9, %v6267_v29  ;;  %v1713_v29 = vadd.f32 %v8400_v11, %v8439_v24  ;;  %v6253_v46 = vrot.slane %v4934_v47, 9  ;;  %v9535_v54 = vld [vmem:[#allocation22_spill] sm:$0xff]  ;;  %v9539_v12 = vld [vmem:[#allocation13_spill] sm:$0xff] }
 0x188   : > { %v2241_v7 = vadd.f32 %v2138_v49, %v8502_v56  ;;  %v8873_v6 = vadd.f32 %v6760_v32, %v2243_v27  ;;  %v6765_v36 = vpop.f32.mrf.mxu1  ;;  %v6269_v32 = vcombine.low %v5047_v50, %v5050_v28  ;;  %v5074_v20 = vrot.slane %v9535_v54, 5  ;;  %v9543_v54 = vld [vmem:[#allocation14_spill] sm:$0xff] }
 0x189   : > { %v6727_v14 = vpop.f32.mrf.mxu0  ;;  %v5061_v62 = vsel %vm7586_vm15, %v6253_v46, %v5060_v33  ;;  %v6255_v33 = vrot.slane %v4936_v4, 9 }
 0x18a   : > { %v2244_v2 = vadd.f32 %v6727_v14, %v9531_v59  ;;  %v8881_v22 = vadd.f32 %v2500_v0, %v2241_v7  ;;  %v8883_v26 = vpop.f32.mrf.mxu1  ;;  %v6271_v47 = vcombine.low %v5061_v62, %v5064_v53  ;;  %v9537_v14 = vld [vmem:[#allocation12_spill] sm:$0xff] }
 0x18b   : > { %v2141_v56 = vpop.f32.mrf.mxu0 }
 0x18c   : > { %v8885_v34 = vadd.f32 %v2141_v56, %v1713_v29  ;;  %v8887_v39 = vadd.f32 %v6761_v18, %v2244_v2  ;;  %v6768_v23 = vpop.f32.mrf.mxu1  ;;  %v5076_v2 = vrot.slane %v5074_v20, 4  ;;  %v9538_v56 = vld [vmem:[#allocation23_spill] sm:$0xff] }
 0x18d   : > { %v6730_v51 = vpop.f32.mrf.mxu0 }
 0x18e   : > { %v2247_v11 = vadd.f32 %v6730_v51, %v9533_v1  ;;  %6933 = vmatmul.mubr.msk.bf16.gmra.mxu0 %vm1299_vm9, %v6268_v48  ;;  %v2532_v24 = vpop.f32.mrf.mxu1  ;;  %v9536_v48 = vld [vmem:[#allocation11_spill] sm:$0xff]  ;;  %v4937_v51 = vld [vmem:[#allocation2 + $0xb4] sm:$0xe]  ;;  %v9540_v1 = vld [vmem:[#allocation25_spill] sm:$0xff] }
 0x18f   : > { %v2154_v0 = vpop.f32.mrf.mxu0  ;;  %6936 = vmatprep.mubr.msk.bf16.mxu0 %vm1299_vm9, %v6269_v32  ;;  %v5077_v32 = vrot.slane %v9538_v56, 5 }
 0x190   : > { %v2245_v8 = vadd.f32 %v2154_v0, %v9534_v37  ;;  %v8896_v18 = vadd.f32 %v6764_v15, %v2247_v11  ;;  %v6769_v31 = vpop.f32.mrf.mxu1  ;;  %v5081_v11 = vrot.slane %v9540_v1, 5  ;;  %v9541_v0 = vld [vmem:[#allocation15_spill] sm:$0xff] }
 0x191   : > { %v6731_v27 = vpop.f32.mrf.mxu0  ;;  %v5078_v57 = vsel %vm7586_vm15, %v5076_v2, %v5077_v32 }
 0x192   : > { %v2248_v49 = vadd.f32 %v6731_v27, %v9536_v48  ;;  %v8902_v50 = vadd.f32 %v2516_v21, %v2245_v8  ;;  %v2535_v7 = vpop.f32.mrf.mxu1  ;;  %v9544_v27 = vld [vmem:[#allocation10_spill] sm:$0xff]  ;;  %v5083_v56 = vrot.slane %v5081_v11, 4 }
 0x193   : > { %v2157_v28 = vpop.f32.mrf.mxu0  ;;  %v1745_v48 = vadd.f32 %v9544_v27, %v9543_v54  ;;  %v9548_v27 = vld [vmem:[#allocation18_spill] sm:$0xff] }
 0x194   : > { %v8905_v29 = vadd.f32 %v2157_v28, %v9537_v14  ;;  %v8907_v15 = vadd.f32 %v6765_v36, %v2248_v49  ;;  %v6772_v59 = vpop.f32.mrf.mxu1  ;;  %v5075_v36 = vsel %vm7586_vm15, %v6255_v33, %v5074_v20  ;;  %v9545_v49 = vld [vmem:[#allocation16_spill] sm:$0xff]  ;;  %v6256_v33 = vrot.slane %v4937_v51, 9 }
 0x195   : > { %v6734_v46 = vpop.f32.mrf.mxu0 }
 0x196   : > { %v2251_v52 = vadd.f32 %v6734_v46, %v9539_v12  ;;  %6937 = vmatmul.mubr.msk.bf16.gmra.mxu0 %vm1299_vm9, %v6270_v41  ;;  %v2548_v21 = vpop.f32.mrf.mxu1  ;;  %v9542_v41 = vld [vmem:[#allocation29_spill] sm:$0xff]  ;;  %v9546_v46 = vld [vmem:[#allocation26_spill] sm:$0xff] }
 0x197   : > { %v2170_v40 = vpop.f32.mrf.mxu0  ;;  %6940 = vmatprep.mubr.msk.bf16.mxu0 %vm1299_vm9, %v6271_v47  ;;  %v5088_v53 = vrot.slane %v9542_v41, 5  ;;  %v5084_v12 = vrot.slane %v9546_v46, 5  ;;  %v9554_v46 = vld [vmem:[#allocation21_spill] sm:$0xff] }
 0x198   : > { %v2249_v62 = vadd.f32 %v2170_v40, %v9541_v0  ;;  %v8920_v37 = vadd.f32 %v6768_v23, %v2251_v52  ;;  %v6773_v8 = vpop.f32.mrf.mxu1  ;;  %v6273_v23 = vcombine.low %v5075_v36, %v5078_v57  ;;  %v6257_v52 = vrot.slane %v4938_v35, 9  ;;  %v9547_v0 = vld [vmem:[#allocation31_spill] sm:$0xff]  ;;  %v9549_v57 = vld [vmem:[#allocation33_spill] sm:$0xff] }
 0x199   : > { %v6735_v4 = vpop.f32.mrf.mxu0  ;;  %v5090_v1 = vrot.slane %v5088_v53, 4  ;;  %v5091_v41 = vrot.slane %v9547_v0, 5  ;;  %v5095_v35 = vrot.slane %v9549_v57, 5 }
 0x19a   : > { %v2252_v20 = vadd.f32 %v6735_v4, %v9545_v49  ;;  %v8928_v28 = vadd.f32 %v2532_v24, %v2249_v62  ;;  %v2551_v47 = vpop.f32.mrf.mxu1  ;;  %v5085_v62 = vsel %vm7586_vm15, %v5083_v56, %v5084_v12  ;;  %v5089_v63 = vsel %vm7586_vm15, %v6257_v52, %v5088_v53 }
 0x19b   : > { %v2173_v14 = vpop.f32.mrf.mxu0  ;;  %v5092_v45 = vsel %vm7586_vm15, %v5090_v1, %v5091_v41 }
 0x19c   : > { %v2250_v2 = vadd.f32 %v2173_v14, %v1745_v48  ;;  %v8931_v32 = vadd.f32 %v6769_v31, %v2252_v20  ;;  %v6776_v40 = vpop.f32.mrf.mxu1  ;;  %v5082_v31 = vsel %vm7586_vm15, %v6256_v33, %v5081_v11  ;;  %v9550_v48 = vld [vmem:[#allocation20_spill] sm:$0xff]  ;;  %v9553_v11 = vld [vmem:[#allocation19_spill] sm:$0xff] }
 0x19d   : > { %v6738_v54 = vpop.f32.mrf.mxu0 }
 0x19e   : > { %v2255_v4 = vadd.f32 %v6738_v54, %v9548_v27  ;;  %v8935_v24 = vadd.f32 %v2535_v7, %v2250_v2  ;;  %6941 = vmatmul.mubr.msk.bf16.gmra.mxu0 %vm1299_vm9, %v6272_v44  ;;  %v2564_v36 = vpop.f32.mrf.mxu1  ;;  %v4939_v44 = vld [vmem:[#allocation2 + $0xcc] sm:$0xe]  ;;  %v6274_v2 = vcombine.low %v5082_v31, %v5085_v62  ;;  %v6275_v54 = vcombine.low %v5089_v63, %v5092_v45 }
 0x19f   : > { %v2186_v51 = vpop.f32.mrf.mxu0  ;;  %6944 = vmatprep.mubr.msk.bf16.mxu0 %vm1299_vm9, %v6273_v23  ;;  %v9552_v23 = vld [vmem:[#allocation24_spill] sm:$0xff]  ;;  %v6258_v27 = vrot.slane %v4939_v44, 9 }
 0x1a0   : > { %v2253_v7 = vadd.f32 %v2186_v51, %v9550_v48  ;;  %v8948_v49 = vadd.f32 %v6772_v59, %v2255_v4  ;;  %v6777_v20 = vpop.f32.mrf.mxu1  ;;  %v1761_v33 = vadd.f32 %v9553_v11, %v9552_v23  ;;  %v5097_v4 = vrot.slane %v5095_v35, 4  ;;  %v9555_v51 = vld [vmem:[#allocation34_spill] sm:$0xff]  ;;  %v9556_v48 = vld [vmem:[#allocation27_spill] sm:$0xff]  ;;  %v9559_v11 = vld [vmem:[#allocation28_spill] sm:$0xff] }
 0x1a1   : > { %v6739_v14 = vpop.f32.mrf.mxu0  ;;  %v5098_v53 = vrot.slane %v9555_v51, 5  ;;  %v5096_v62 = vsel %vm7586_vm15, %v6258_v27, %v5095_v35 }
 0x1a2   : > { %9551 = vst [vmem:[#allocation7_spill] sm:$0xff] %v8948_v49  ;;  %v2256_v56 = vadd.f32 %v6739_v14, %v9554_v46  ;;  %v8957_v12 = vadd.f32 %v2548_v21, %v2253_v7  ;;  %v2567_v0 = vpop.f32.mrf.mxu1  ;;  %v9560_v46 = vld [vmem:[#allocation32_spill] sm:$0xff] }
 0x1a3   : > { %v2189_v59 = vpop.f32.mrf.mxu0  ;;  %v5099_v7 = vsel %vm7586_vm15, %v5097_v4, %v5098_v53 }
 0x1a4   : > { %v2254_v52 = vadd.f32 %v2189_v59, %v1761_v33  ;;  %v8960_v57 = vadd.f32 %v6773_v8, %v2256_v56  ;;  %v6780_v1 = vpop.f32.mrf.mxu1  ;;  %v9557_v8 = vld [vmem:[#allocation30_spill] sm:$0xff]  ;;  %v6276_v59 = vcombine.low %v5096_v62, %v5099_v7 }
 0x1a5   : > { %v6742_v41 = vpop.f32.mrf.mxu0 }
 0x1a6   : > { %v2259_v49 = vadd.f32 %v6742_v41, %v9556_v48  ;;  %v8963_v23 = vadd.f32 %v2551_v47, %v2254_v52  ;;  %6945 = vmatmul.mubr.msk.bf16.gmra.mxu0 %vm1299_vm9, %v6274_v2  ;;  %v2580_v21 = vpop.f32.mrf.mxu1  ;;  %v9558_v47 = vld [vmem:[#allocation35_spill] sm:$0xff] }
 0x1a7   : > { %v2202_v31 = vpop.f32.mrf.mxu0  ;;  %6948 = vmatprep.mubr.msk.bf16.mxu0 %vm1299_vm9, %v6275_v54  ;;  %v1777_v33 = vadd.f32 %v9559_v11, %v9558_v47 }
 0x1a8   : > { %v2257_v63 = vadd.f32 %v2202_v31, %v9557_v8  ;;  %v8972_v45 = vadd.f32 %v6776_v40, %v2259_v49  ;;  %v6781_v44 = vpop.f32.mrf.mxu1  ;;  %v9561_v8 = vld [vmem:[#allocation4_spill] sm:$0xff] }
 0x1a9   : > { %v6743_v14 = vpop.f32.mrf.mxu0 }
 0x1aa   : > { %v2260_v56 = vadd.f32 %v6743_v14, %v9560_v46  ;;  %v8977_v2 = vadd.f32 %v2564_v36, %v2257_v63  ;;  %v2583_v54 = vpop.f32.mrf.mxu1  ;;  %v9562_v63 = vld [vmem:[#allocation3_spill] sm:$0xff] }
 0x1ab   : > { %v2205_v51 = vpop.f32.mrf.mxu0  ;;  %v1681_v14 = vadd.f32 %v9562_v63, %v9561_v8 }
 0x1ac   : > { %v2258_v35 = vadd.f32 %v2205_v51, %v1777_v33  ;;  %v8979_v27 = vadd.f32 %v6777_v20, %v2260_v56  ;;  %v6820_v9 = vpop.f32.mrf.mxu1  ;;  %v1793_v20 = vadd.f32 %v8715_v42, %v8763_v13 }
 0x1ad   : > { %v2234_v33 = vadd.f32 %v8807_v60, %v1681_v14 }
 0x1ae   : > { %v6746_v4 = vpop.f32.mrf.mxu0  ;;  %v8982_v49 = vadd.f32 %v2567_v0, %v2258_v35  ;;  %6949 = vmatmul.mubr.msk.bf16.gmra.mxu0 %vm1299_vm9, %v6276_v59  ;;  %v3672_v53 = vpop.f32.mrf.mxu1 }
 0x1af   : > { %v2263_v40 = vadd.f32 %v6746_v4, %v8735_v58 }
 0x1b0   : > { %v2218_v52 = vpop.f32.mrf.mxu0  ;;  %v8988_v48 = vpop.f32.mrf.mxu1 }
 0x1b1   : > { %v2261_v41 = vadd.f32 %v2218_v52, %v8748_v25  ;;  %v8986_v36 = vadd.f32 %v6780_v1, %v2263_v40  ;;  %v9564_v40 = vld [vmem:[#allocation5_spill] sm:$0xff] }
 0x1b2   : > { %v6747_v31 = vpop.f32.mrf.mxu0  ;;  %v8995_v58 = vpop.f32.mrf.mxu1 }
 0x1b3   : > { %v2264_v62 = vadd.f32 %v6747_v31, %v8756_v17  ;;  %v8993_v7 = vadd.f32 %v2580_v21, %v2261_v41 }
 0x1b4   : > { %v2221_v0 = vpop.f32.mrf.mxu0  ;;  %v6824_v1 = vpop.f32.mrf.mxu1 }
 0x1b5   : > { %v2262_v47 = vadd.f32 %v2221_v0, %v1793_v20  ;;  %v8999_v25 = vadd.f32 %v6781_v44, %v2264_v62  ;;  %v2596_v44 = vadd.f32 %v8758_v16, %v2234_v33 }
 0x1b6   : > { %v6786_v11 = vpop.f32.mrf.mxu0  ;;  %v3688_v17 = vpop.f32.mrf.mxu1 }
 0x1b7   : > { %v9002_v46 = vadd.f32 %v2583_v54, %v2262_v47  ;;  %v3327_v42 = vadd.f32 %v6786_v11, %v8793_v55  ;;  %v9563_v55 = vld [vmem:[#allocation6_spill] sm:$0xff] }
 0x1b8   : > { %v3198_v13 = vpop.f32.mrf.mxu0  ;;  %v9008_v59 = vpop.f32.mrf.mxu1  ;;  %v1697_v52 = vadd.f32 %v9564_v40, %v9563_v55 }
 0x1b9   : > { %v3325_v21 = vadd.f32 %v3198_v13, %v8803_v3  ;;  %v9006_v56 = vadd.f32 %v6820_v9, %v3327_v42 }
 0x1ba   : > { %v6787_v51 = vpop.f32.mrf.mxu0  ;;  %v9016_v60 = vpop.f32.mrf.mxu1  ;;  %v2238_v31 = vadd.f32 %v8849_v61, %v1697_v52 }
 0x1bb   : > { %v9012_v35 = vadd.f32 %v6787_v51, %v8815_v30  ;;  %v9014_v4 = vadd.f32 %v3672_v53, %v3325_v21 }
 0x1bc   : > { %v3201_v54 = vpop.f32.mrf.mxu0  ;;  %v6828_v3 = vpop.f32.mrf.mxu1  ;;  %v2600_v63 = vadd.f32 %v8805_v43, %v2238_v31 }
 0x1bd   : > { %v9020_v41 = vadd.f32 %v3201_v54, %v2596_v44 }
 0x1be   : > { %v6790_v9 = vpop.f32.mrf.mxu0  ;;  %v3704_v16 = vpop.f32.mrf.mxu1 }
 0x1bf   : > { %v3331_v20 = vadd.f32 %v6790_v9, %v8833_v38 }
 0x1c0   : > { %v3214_v62 = vpop.f32.mrf.mxu0  ;;  %v9027_v0 = vpop.f32.mrf.mxu1 }
 0x1c1   : > { %v3329_v30 = vadd.f32 %v3214_v62, %v8842_v19  ;;  %v9025_v53 = vadd.f32 %v6824_v1, %v3331_v20 }
 0x1c2   : > { %v6791_v8 = vpop.f32.mrf.mxu0  ;;  %v9035_v11 = vpop.f32.mrf.mxu1 }
 0x1c3   : > { %v9031_v14 = vadd.f32 %v6791_v8, %v8855_v5  ;;  %v9033_v47 = vadd.f32 %v3688_v17, %v3329_v30  ;;  %v2604_v17 = vadd.f32 %v8844_v10, %v8885_v34 }
 0x1c4   : > { %v3217_v61 = vpop.f32.mrf.mxu0  ;;  %v6832_v33 = vpop.f32.mrf.mxu1 }
 0x1c5   : > { %v9037_v38 = vadd.f32 %v3217_v61, %v2600_v63 }
 0x1c6   : > { %v6794_v42 = vpop.f32.mrf.mxu0  ;;  %v3720_v1 = vpop.f32.mrf.mxu1 }
 0x1c7   : > { %v3335_v19 = vadd.f32 %v6794_v42, %v8873_v6 }
 0x1c8   : > { %v3230_v13 = vpop.f32.mrf.mxu0  ;;  %v9043_v43 = vpop.f32.mrf.mxu1 }
 0x1c9   : > { %v3333_v21 = vadd.f32 %v3230_v13, %v8881_v22  ;;  %v9041_v51 = vadd.f32 %v6828_v3, %v3335_v19 }
 0x1ca   : > { %v6795_v5 = vpop.f32.mrf.mxu0  ;;  %v9052_v55 = vpop.f32.mrf.mxu1 }
 0x1cb   : > { %v9048_v44 = vadd.f32 %v6795_v5, %v8887_v39  ;;  %v9050_v54 = vadd.f32 %v3704_v16, %v3333_v21  ;;  %v2608_v39 = vadd.f32 %v8883_v26, %v8905_v29 }
 0x1cc   : > { %v3233_v6 = vpop.f32.mrf.mxu0  ;;  %v6836_v52 = vpop.f32.mrf.mxu1 }
 0x1cd   : > { %v9054_v40 = vadd.f32 %v3233_v6, %v2604_v17 }
 0x1ce   : > { %v6798_v22 = vpop.f32.mrf.mxu0  ;;  %v3736_v9 = vpop.f32.mrf.mxu1 }
 0x1cf   : > { %v3339_v3 = vadd.f32 %v6798_v22, %v8896_v18 }
 0x1d0   : > { %v3246_v31 = vpop.f32.mrf.mxu0  ;;  %v9060_v10 = vpop.f32.mrf.mxu1 }
 0x1d1   : > { %v3337_v20 = vadd.f32 %v3246_v31, %v8902_v50  ;;  %v9058_v62 = vadd.f32 %v6832_v33, %v3339_v3  ;;  %v9567_v3 = vld [vmem:[#allocation7_spill] sm:$0xff] }
 0x1d2   : > { %v6799_v34 = vpop.f32.mrf.mxu0  ;;  %v9069_v8 = vpop.f32.mrf.mxu1 }
 0x1d3   : > { %v9065_v16 = vadd.f32 %v6799_v34, %v8907_v15  ;;  %v9067_v30 = vadd.f32 %v3720_v1, %v3337_v20 }
 0x1d4   : > { %v3249_v18 = vpop.f32.mrf.mxu0  ;;  %v6840_v61 = vpop.f32.mrf.mxu1 }
 0x1d5   : > { %v9071_v63 = vadd.f32 %v3249_v18, %v2608_v39 }
 0x1d6   : > { %v6802_v50 = vpop.f32.mrf.mxu0  ;;  %v3752_v42 = vpop.f32.mrf.mxu1 }
 0x1d7   : > { %v3343_v33 = vadd.f32 %v6802_v50, %v8920_v37 }
 0x1d8   : > { %v3262_v19 = vpop.f32.mrf.mxu0  ;;  %v9077_v26 = vpop.f32.mrf.mxu1 }
 0x1d9   : > { %v3341_v13 = vadd.f32 %v3262_v19, %v8928_v28  ;;  %v9075_v21 = vadd.f32 %v6836_v52, %v3343_v33  ;;  %9565 = vst [vmem:[#allocation17_spill] sm:$0xff] %v9077_v26 }
 0x1da   : > { %v6803_v29 = vpop.f32.mrf.mxu0  ;;  %v9084_v5 = vpop.f32.mrf.mxu1 }
 0x1db   : > { %v9080_v15 = vadd.f32 %v6803_v29, %v8931_v32  ;;  %v9082_v1 = vadd.f32 %v3736_v9, %v3341_v13  ;;  %9566 = vst [vmem:[#allocation8_spill] sm:$0xff] %v9084_v5 }
 0x1dc   : > { %v3265_v17 = vpop.f32.mrf.mxu0  ;;  %v6844_v37 = vpop.f32.mrf.mxu1 }
 0x1dd   : > { %v9087_v6 = vadd.f32 %v3265_v17, %v8935_v24 }
 0x1de   : > { %v6806_v22 = vpop.f32.mrf.mxu0  ;;  %v3768_v34 = vpop.f32.mrf.mxu1 }
 0x1df   : > { %v3347_v28 = vadd.f32 %v6806_v22, %v9567_v3 }
 0x1e0   : > { %v3278_v52 = vpop.f32.mrf.mxu0  ;;  %v9101_v50 = vpop.f32.mrf.mxu1 }
 0x1e1   : > { %v3345_v31 = vadd.f32 %v3278_v52, %v8957_v12  ;;  %v9091_v20 = vadd.f32 %v6840_v61, %v3347_v28  ;;  %9570 = vst [vmem:[#allocation11_spill] sm:$0xff] %v9101_v50 }
 0x1e2   : > { %v6807_v32 = vpop.f32.mrf.mxu0  ;;  %v9107_v29 = vpop.f32.mrf.mxu1 }
 0x1e3   : > { %v9094_v9 = vadd.f32 %v6807_v32, %v8960_v57  ;;  %v9096_v39 = vadd.f32 %v3752_v42, %v3345_v31  ;;  %9571 = vst [vmem:[#allocation12_spill] sm:$0xff] %v9107_v29 }
 0x1e4   : > { %v3281_v18 = vpop.f32.mrf.mxu0 }
 0x1e5   : > { %9568 = vst [vmem:[#allocation9_spill] sm:$0xff] %v9094_v9  ;;  %v9099_v24 = vadd.f32 %v3281_v18, %v8963_v23 }
 0x1e6   : > { %v6810_v33 = vpop.f32.mrf.mxu0 }
 0x1e7   : > { %9569 = vst [vmem:[#allocation22_spill] sm:$0xff] %v9099_v24  ;;  %v3351_v19 = vadd.f32 %v6810_v33, %v8972_v45 }
 0x1e8   : > { %v3294_v13 = vpop.f32.mrf.mxu0 }
 0x1e9   : > { %v3349_v12 = vadd.f32 %v3294_v13, %v8977_v2  ;;  %v9105_v61 = vadd.f32 %v6844_v37, %v3351_v19 }
 0x1ea   : > { %v6811_v57 = vpop.f32.mrf.mxu0 }
 0x1eb   : > { %v9110_v42 = vadd.f32 %v6811_v57, %v8979_v27  ;;  %v9112_v17 = vadd.f32 %v3768_v34, %v3349_v12 }
 0x1ec   : > { %v3297_v23 = vpop.f32.mrf.mxu0  ;;  %v6848_v3 = vpop.f32.mrf.mxu1 }
 0x1ed   : > { %9572 = vst [vmem:[#allocation23_spill] sm:$0xff] %v9110_v42  ;;  %v9115_v22 = vadd.f32 %v3297_v23, %v8982_v49 }
 0x1ee   : > { %v6814_v28 = vpop.f32.mrf.mxu0  ;;  %v3784_v45 = vpop.f32.mrf.mxu1 }
 0x1ef   : > { %9573 = vst [vmem:[#allocation13_spill] sm:$0xff] %v9115_v22  ;;  %v3355_v52 = vadd.f32 %v6814_v28, %v8986_v36 }
 0x1f0   : > { %v3310_v2 = vpop.f32.mrf.mxu0  ;;  %v9118_v37 = vpop.f32.mrf.mxu1 }
 0x1f1   : > { %9574 = vst [vmem:[#allocation25_spill] sm:$0xff] %v9118_v37  ;;  %v3353_v31 = vadd.f32 %v3310_v2, %v8993_v7  ;;  %v9121_v32 = vadd.f32 %v6848_v3, %v3355_v52 }
 0x1f2   : > { %v6815_v27 = vpop.f32.mrf.mxu0  ;;  %v9123_v18 = vpop.f32.mrf.mxu1 }
 0x1f3   : > { %9575 = vst [vmem:[#allocation15_spill] sm:$0xff] %v9123_v18  ;;  %v9126_v34 = vadd.f32 %v6815_v27, %v8999_v25  ;;  %v9128_v49 = vadd.f32 %v3784_v45, %v3353_v31 }
 0x1f4   : > { %v3313_v33 = vpop.f32.mrf.mxu0  ;;  %v9130_v19 = vpop.f32.mrf.mxu1 }
 0x1f5   : > { %9576 = vst [vmem:[#allocation29_spill] sm:$0xff] %v9126_v34  ;;  %v9133_v36 = vadd.f32 %v3313_v33, %v9002_v46 }
 0x1f6   : > { %v6854_v13 = vpop.f32.mrf.mxu0  ;;  %v9138_v57 = vpop.f32.mrf.mxu1 }
 0x1f7   : > { %9577 = vst [vmem:[#allocation14_spill] sm:$0xff] %v9133_v36  ;;  %v9136_v12 = vadd.f32 %v6854_v13, %v9006_v56 }
 0x1f8   : > { %v4035_v7 = vpop.f32.mrf.mxu0  ;;  %v9145_v28 = vpop.f32.mrf.mxu1 }
 0x1f9   : > { %v9141_v23 = vadd.f32 %v4035_v7, %v9014_v4 }
 0x1fa   : > { %v6855_v25 = vpop.f32.mrf.mxu0  ;;  %v9150_v46 = vpop.f32.mrf.mxu1 }
 0x1fc   : > { %v9143_v3 = vpop.f32.mrf.mxu0  ;;  %v9157_v27 = vpop.f32.mrf.mxu1 }
 0x1fe   : > { %v6858_v45 = vpop.f32.mrf.mxu0  ;;  %v9164_v7 = vpop.f32.mrf.mxu1 }
 0x1ff   : > { %v9148_v52 = vadd.f32 %v6858_v45, %v9025_v53 }
 0x200   : > { %v4051_v2 = vpop.f32.mrf.mxu0 }
 0x201   : > { %v9153_v56 = vadd.f32 %v4051_v2, %v9033_v47  ;;  %v9171_v47 = vpop.f32.mrf.mxu1 }
 0x202   : > { %v9155_v31 = vpop.f32.mrf.mxu0 }
 0x203   : > { %v9178_v34 = vpop.f32.mrf.mxu1 }
 0x204   : > { %v9159_v4 = vpop.f32.mrf.mxu0 }
 0x206   : > { %v6862_v33 = vpop.f32.mrf.mxu0 }
 0x207   : > { %v9162_v13 = vadd.f32 %v6862_v33, %v9041_v51 }
 0x208   : > { %v4067_v53 = vpop.f32.mrf.mxu0 }
 0x209   : > { %v9167_v45 = vadd.f32 %v4067_v53, %v9050_v54  ;;  %v9185_v54 = vpop.f32.mrf.mxu1 }
 0x20a   : > { %v9169_v18 = vpop.f32.mrf.mxu0 }
 0x20b   : > { %v9192_v42 = vpop.f32.mrf.mxu1 }
 0x20c   : > { %v9173_v2 = vpop.f32.mrf.mxu0 }
 0x20e   : > { %v6866_v36 = vpop.f32.mrf.mxu0 }
 0x20f   : > { %v9176_v37 = vadd.f32 %v6866_v36, %v9058_v62 }
 0x210   : > { %v4083_v51 = vpop.f32.mrf.mxu0 }
 0x211   : > { %v9181_v33 = vadd.f32 %v4083_v51, %v9067_v30  ;;  %v9199_v30 = vpop.f32.mrf.mxu1 }
 0x212   : > { %v9183_v29 = vpop.f32.mrf.mxu0 }
 0x213   : > { %v9206_v9 = vpop.f32.mrf.mxu1 }
 0x214   : > { %v9187_v53 = vpop.f32.mrf.mxu0 }
 0x216   : > { %v6870_v22 = vpop.f32.mrf.mxu0 }
 0x217   : > { %v9190_v50 = vadd.f32 %v6870_v22, %v9075_v21 }
 0x218   : > { %v4099_v62 = vpop.f32.mrf.mxu0 }
 0x219   : > { %9578 = vst [vmem:[#allocation10_spill] sm:$0xff] %v9190_v50  ;;  %v9195_v36 = vadd.f32 %v4099_v62, %v9082_v1  ;;  %v9213_v1 = vpop.f32.mrf.mxu1 }
 0x21a   : > { %v9197_v5 = vpop.f32.mrf.mxu0 }
 0x21b   : > { %9579 = vst [vmem:[#allocation16_spill] sm:$0xff] %v9195_v36  ;;  %9580 = vst [vmem:[#allocation26_spill] sm:$0xff] %v9197_v5 }
 0x21c   : > { %v9201_v51 = vpop.f32.mrf.mxu0 }
 0x21d   : > { %9581 = vst [vmem:[#allocation31_spill] sm:$0xff] %v9201_v51  ;;  %v9220_v51 = vpop.f32.mrf.mxu1 }
 0x21e   : > { %v6874_v24 = vpop.f32.mrf.mxu0 }
 0x21f   : > { %v9204_v26 = vadd.f32 %v6874_v24, %v9091_v20 }
 0x220   : > { %v4115_v21 = vpop.f32.mrf.mxu0 }
 0x221   : > { %9582 = vst [vmem:[#allocation18_spill] sm:$0xff] %v9204_v26  ;;  %v9209_v22 = vadd.f32 %v4115_v21, %v9096_v39  ;;  %v9227_v39 = vpop.f32.mrf.mxu1 }
 0x222   : > { %v9211_v50 = vpop.f32.mrf.mxu0 }
 0x223   : > { %9583 = vst [vmem:[#allocation33_spill] sm:$0xff] %v9209_v22  ;;  %9584 = vst [vmem:[#allocation20_spill] sm:$0xff] %v9211_v50 }
 0x224   : > { %v9215_v62 = vpop.f32.mrf.mxu0 }
 0x225   : > { %9585 = vst [vmem:[#allocation24_spill] sm:$0xff] %v9215_v62  ;;  %v9234_v62 = vpop.f32.mrf.mxu1 }
 0x226   : > { %v6878_v36 = vpop.f32.mrf.mxu0 }
 0x227   : > { %v9218_v5 = vadd.f32 %v6878_v36, %v9105_v61 }
 0x228   : > { %v4131_v20 = vpop.f32.mrf.mxu0 }
 0x229   : > { %9586 = vst [vmem:[#allocation19_spill] sm:$0xff] %v9218_v5  ;;  %v9223_v24 = vadd.f32 %v4131_v20, %v9112_v17  ;;  %v3802_v17 = vadd.f32 %v8988_v48, %v9012_v35  ;;  %v9243_v20 = vpop.f32.mrf.mxu1  ;;  %v9259_v48 = vld [vmem:[%s9464_s2] ss:$0 sm:$0xff] }
 0x22a   : > { %v9225_v26 = vpop.f32.mrf.mxu0 }
 0x22b   : > { %9587 = vst [vmem:[#allocation21_spill] sm:$0xff] %v9223_v24 }
 0x22c   : > { %v9229_v21 = vpop.f32.mrf.mxu0 }
 0x22d   : > { %9588 = vst [vmem:[#allocation34_spill] sm:$0xff] %v9229_v21  ;;  %v3800_v21 = vadd.f32 %v8995_v58, %v9020_v41 }
 0x22e   : > { %v6882_v22 = vpop.f32.mrf.mxu0 }
 0x22f   : > { %v9232_v50 = vadd.f32 %v6882_v22, %v9121_v32  ;;  %v4894_v32 = vadd.f32 %v9130_v19, %v9136_v12  ;;  %v4165_v22 = vadd.f32 %v6855_v25, %v3802_v17  ;;  %v3806_v19 = vadd.f32 %v9008_v59, %v9031_v14 }
 0x230   : > { %v4147_v61 = vpop.f32.mrf.mxu0  ;;  %v3804_v25 = vadd.f32 %v9016_v60, %v9037_v38 }
 0x231   : > { %9589 = vst [vmem:[#allocation27_spill] sm:$0xff] %v9232_v50  ;;  %v9237_v36 = vadd.f32 %v4147_v61, %v9128_v49  ;;  %v4892_v49 = vadd.f32 %v9138_v57, %v9141_v23  ;;  %v4163_v61 = vadd.f32 %v9143_v3, %v3800_v21  ;;  %v4895_v58 = vadd.f32 %v9145_v28, %v4165_v22 }
 0x232   : > { %v9239_v5 = vpop.f32.mrf.mxu0  ;;  %v4169_v3 = vadd.f32 %v9155_v31, %v3806_v19  ;;  %v4898_v28 = vadd.f32 %v9157_v27, %v9148_v52 }
 0x233   : > { %9590 = vst [vmem:[#allocation30_spill] sm:$0xff] %v9237_v36  ;;  %9591 = vst [vmem:[#allocation35_spill] sm:$0xff] %v9239_v5  ;;  %v9254_v5 = vpop.f32.mrf.mxu1  ;;  %v4893_v57 = vadd.f32 %v9150_v46, %v4163_v61  ;;  %v4896_v46 = vadd.f32 %v9164_v7, %v9153_v56  ;;  %v3810_v56 = vadd.f32 %v9027_v0, %v9048_v44 }
 0x234   : > { %v9245_v24 = vpop.f32.mrf.mxu0  ;;  %v4899_v61 = vadd.f32 %v9171_v47, %v4169_v3  ;;  %v3808_v47 = vadd.f32 %v9035_v11, %v9054_v40 }
 0x235   : > { %v9269_v21 = vpop.f32.mrf.mxu1 }
 0x236   : > { %v6922_v50 = vpop.f32.mrf.mxu0  ;;  %v4171_v11 = vadd.f32 %v9173_v2, %v3808_v47 }
 0x237   : > { %v5368_v36 = vadd.f32 %v6922_v50, %v4894_v32 }
 0x238   : > { %v5239_v35 = vpop.f32.mrf.mxu0  ;;  %v4901_v2 = vadd.f32 %v9206_v9, %v4171_v11 }
 0x239   : > { %v5366_v41 = vadd.f32 %v5239_v35, %v4892_v49  ;;  %v5407_v23 = vadd.f32 %v9259_v48, %v5368_v36  ;;  %v4167_v36 = vadd.f32 %v9159_v4, %v3804_v25  ;;  %v9280_v35 = vpop.f32.mrf.mxu1 }
 0x23a   : > { %v6923_v12 = vpop.f32.mrf.mxu0 }
 0x23b   : > { %v5369_v50 = vadd.f32 %v6923_v12, %v4895_v58  ;;  %v5405_v32 = vadd.f32 %v9259_v48, %v5366_v41  ;;  %v5439_v60 = vmax.f32 %v5407_v23, 0.0  ;;  %v4897_v4 = vadd.f32 %v9178_v34, %v4167_v36  ;;  %v9289_v25 = vpop.f32.mrf.mxu1 }
 0x23c   : > { %v5242_v17 = vpop.f32.mrf.mxu0 }
 0x23d   : > { %v5408_v59 = vadd.f32 %v9259_v48, %v5369_v50  ;;  %v5367_v14 = vadd.f32 %v5242_v17, %v4893_v57  ;;  %v5437_v27 = vmax.f32 %v5405_v32, 0.0  ;;  %v4173_v50 = vadd.f32 %v9169_v18, %v3810_v56 }
 0x23e   : > { %v6926_v22 = vpop.f32.mrf.mxu0  ;;  %v4902_v17 = vadd.f32 %v9185_v54, %v9162_v13 }
 0x23f   : > { %v5440_v38 = vmax.f32 %v5408_v59, 0.0  ;;  %v5406_v31 = vadd.f32 %v9259_v48, %v5367_v14  ;;  %v5372_v49 = vadd.f32 %v6926_v22, %v4898_v28  ;;  %v4900_v28 = vadd.f32 %v9192_v42, %v9167_v45  ;;  %v9302_v14 = vpop.f32.mrf.mxu1 }
 0x240   : > { %v5255_v52 = vpop.f32.mrf.mxu0  ;;  %v4903_v54 = vadd.f32 %v9199_v30, %v4173_v50  ;;  %v3814_v42 = vadd.f32 %v9043_v43, %v9065_v16  ;;  %v3812_v30 = vadd.f32 %v9052_v55, %v9071_v63 }
 0x241   : > { %v5470_v58 = vpack.c.bf16 %v5440_v38, %v5439_v60  ;;  %v5438_v41 = vmax.f32 %v5406_v31, 0.0  ;;  %v5370_v19 = vadd.f32 %v5255_v52, %v4896_v46  ;;  %v5411_v57 = vadd.f32 %v9259_v48, %v5372_v49 }
 0x242   : > { %v6927_v7 = vpop.f32.mrf.mxu0  ;;  %v4177_v52 = vadd.f32 %v9183_v29, %v3814_v42  ;;  %v4175_v55 = vadd.f32 %v9187_v53, %v3812_v30 }
 0x243   : > { %v5469_v12 = vpack.c.bf16 %v5438_v41, %v5437_v27  ;;  %v5373_v23 = vadd.f32 %v6927_v7, %v4899_v61  ;;  %v5409_v0 = vadd.f32 %v9259_v48, %v5370_v19  ;;  %v5443_v18 = vmax.f32 %v5411_v57, 0.0  ;;  %v9311_v27 = vpop.f32.mrf.mxu1 }
 0x244   : > { %v5258_v3 = vpop.f32.mrf.mxu0  ;;  %v4906_v41 = vadd.f32 %v9213_v1, %v9176_v37  ;;  %v4904_v19 = vadd.f32 %v9220_v51, %v9181_v33  ;;  %v4907_v1 = vadd.f32 %v9227_v39, %v4177_v52  ;;  %v3818_v33 = vadd.f32 %v9060_v10, %v9080_v15 }
 0x245   : > { %v5412_v44 = vadd.f32 %v9259_v48, %v5373_v23  ;;  %v5371_v34 = vadd.f32 %v5258_v3, %v4897_v4  ;;  %6954 = vmatprep.mubr.msk.bf16.mxu1 %vm1299_vm9, %v5469_v12  ;;  %v5441_v36 = vmax.f32 %v5409_v0, 0.0  ;;  %v9324_v4 = vpop.f32.mrf.mxu1  ;;  %v4905_v51 = vadd.f32 %v9234_v62, %v4175_v55  ;;  %v9594_v62 = vld [vmem:[#allocation16_spill] sm:$0xff] }
 0x246   : > { %v6930_v40 = vpop.f32.mrf.mxu0  ;;  %6955 = vmatmul.mubr.msk.bf16.vlgmr.msra.gmra.mxu1 %vm1299_vm9, %v5470_v58  ;;  %v3816_v39 = vadd.f32 %v9069_v8, %v9087_v6 }
 0x247   : > { %v5444_v32 = vmax.f32 %v5412_v44, 0.0  ;;  %v5410_v59 = vadd.f32 %v9259_v48, %v5371_v34  ;;  %v5376_v13 = vadd.f32 %v6930_v40, %v4902_v17  ;;  %v9592_v44 = vld [vmem:[#allocation26_spill] sm:$0xff] }
 0x248   : > { %v5271_v46 = vpop.f32.mrf.mxu0  ;;  %v4181_v34 = vadd.f32 %v9592_v44, %v3818_v33  ;;  %v9593_v40 = vld [vmem:[#allocation10_spill] sm:$0xff] }
 0x249   : > { %v5472_v22 = vpack.c.bf16 %v5444_v32, %v5443_v18  ;;  %v5442_v60 = vmax.f32 %v5410_v59, 0.0  ;;  %v5374_v38 = vadd.f32 %v5271_v46, %v4900_v28  ;;  %v5415_v49 = vadd.f32 %v9259_v48, %v5376_v13  ;;  %v6912_v28 = vpop.f32.mrf.mxu1  ;;  %v9595_v13 = vld [vmem:[#allocation31_spill] sm:$0xff] }
 0x24a   : > { %v6931_v45 = vpop.f32.mrf.mxu0  ;;  %v4910_v18 = vadd.f32 %v9243_v20, %v9593_v40  ;;  %v4908_v59 = vadd.f32 %v9254_v5, %v9594_v62  ;;  %v9597_v5 = vld [vmem:[#allocation17_spill] sm:$0xff]  ;;  %v9604_v40 = vld [vmem:[#allocation23_spill] sm:$0xff] }
 0x24b   : > { %v5471_v31 = vpack.c.bf16 %v5442_v60, %v5441_v36  ;;  %v5377_v61 = vadd.f32 %v6931_v45, %v4903_v54  ;;  %v5413_v43 = vadd.f32 %v9259_v48, %v5374_v38  ;;  %v5447_v29 = vmax.f32 %v5415_v49, 0.0  ;;  %v4861_v60 = vpop.f32.mrf.mxu1  ;;  %v9596_v49 = vld [vmem:[#allocation9_spill] sm:$0xff] }
 0x24c   : > { %v5274_v58 = vpop.f32.mrf.mxu0  ;;  %v4179_v54 = vadd.f32 %v9595_v13, %v3816_v39  ;;  %v9606_v13 = vld [vmem:[#allocation13_spill] sm:$0xff] }
 0x24d   : > { %v5416_v16 = vadd.f32 %v9259_v48, %v5377_v61  ;;  %v5375_v9 = vadd.f32 %v5274_v58, %v4901_v2  ;;  %6958 = vmatprep.mubr.msk.bf16.mxu1 %vm1299_vm9, %v5471_v31  ;;  %v5445_v57 = vmax.f32 %v5413_v43, 0.0  ;;  %v3822_v61 = vadd.f32 %v9597_v5, %v9596_v49 }
 0x24e   : > { %v6934_v63 = vpop.f32.mrf.mxu0  ;;  %6959 = vmatmul.mubr.msk.bf16.gmra.mxu1 %vm1299_vm9, %v5472_v22  ;;  %v4911_v22 = vadd.f32 %v9269_v21, %v4181_v34  ;;  %v4909_v52 = vadd.f32 %v9280_v35, %v4179_v54  ;;  %v9600_v21 = vld [vmem:[#allocation20_spill] sm:$0xff]  ;;  %v9602_v35 = vld [vmem:[#allocation33_spill] sm:$0xff] }
 0x24f   : > { %v5448_v56 = vmax.f32 %v5416_v16, 0.0  ;;  %v5414_v7 = vadd.f32 %v9259_v48, %v5375_v9  ;;  %v5380_v37 = vadd.f32 %v6934_v63, %v4906_v41  ;;  %v9598_v16 = vld [vmem:[#allocation22_spill] sm:$0xff]  ;;  %v9599_v9 = vld [vmem:[#allocation8_spill] sm:$0xff]  ;;  %v4185_v55 = vadd.f32 %v9600_v21, %v3822_v61  ;;  %v6913_v63 = vpop.f32.mrf.mxu1  ;;  %v9612_v21 = vld [vmem:[#allocation25_spill] sm:$0xff] }
 0x250   : > { %v5287_v12 = vpop.f32.mrf.mxu0  ;;  %v9607_v54 = vld [vmem:[#allocation12_spill] sm:$0xff] }
 0x251   : > { %v5474_v23 = vpack.c.bf16 %v5448_v56, %v5447_v29  ;;  %v5446_v47 = vmax.f32 %v5414_v7, 0.0  ;;  %v5378_v50 = vadd.f32 %v5287_v12, %v4904_v19  ;;  %v5419_v17 = vadd.f32 %v9259_v48, %v5380_v37  ;;  %v9601_v56 = vld [vmem:[#allocation18_spill] sm:$0xff] }
 0x252   : > { %v6935_v53 = vpop.f32.mrf.mxu0  ;;  %v3820_v19 = vadd.f32 %v9599_v9, %v9598_v16  ;;  %v4914_v7 = vadd.f32 %v9289_v25, %v9601_v56 }
 0x253   : > { %v5473_v3 = vpack.c.bf16 %v5446_v47, %v5445_v57  ;;  %v5381_v0 = vadd.f32 %v6935_v53, %v4907_v1  ;;  %v5417_v32 = vadd.f32 %v9259_v48, %v5378_v50  ;;  %v5451_v6 = vmax.f32 %v5419_v17, 0.0  ;;  %v4864_v17 = vpop.f32.mrf.mxu1 }
 0x254   : > { %v5290_v11 = vpop.f32.mrf.mxu0  ;;  %v4912_v57 = vadd.f32 %v9302_v14, %v9602_v35  ;;  %v9605_v14 = vld [vmem:[#allocation11_spill] sm:$0xff] }
 0x255   : > { %v5420_v10 = vadd.f32 %v9259_v48, %v5381_v0  ;;  %v5379_v15 = vadd.f32 %v5290_v11, %v4905_v51  ;;  %6962 = vmatprep.mubr.msk.bf16.mxu1 %vm1299_vm9, %v5473_v3  ;;  %v5449_v42 = vmax.f32 %v5417_v32, 0.0  ;;  %v4915_v3 = vadd.f32 %v9311_v27, %v4185_v55 }
 0x256   : > { %v6938_v8 = vpop.f32.mrf.mxu0  ;;  %6963 = vmatmul.mubr.msk.bf16.gmra.mxu1 %vm1299_vm9, %v5474_v23  ;;  %v9603_v23 = vld [vmem:[#allocation24_spill] sm:$0xff] }
 0x257   : > { %v5452_v46 = vmax.f32 %v5420_v10, 0.0  ;;  %v5418_v36 = vadd.f32 %v9259_v48, %v5379_v15  ;;  %v5384_v20 = vadd.f32 %v6938_v8, %v4910_v18  ;;  %v4183_v47 = vadd.f32 %v9603_v23, %v3820_v19  ;;  %v9611_v19 = vld [vmem:[#allocation29_spill] sm:$0xff] }
 0x258   : > { %v5303_v38 = vpop.f32.mrf.mxu0  ;;  %v3826_v18 = vadd.f32 %v9605_v14, %v9604_v40  ;;  %v3824_v8 = vadd.f32 %v9607_v54, %v9606_v13 }
 0x259   : > { %v5476_v45 = vpack.c.bf16 %v5452_v46, %v5451_v6  ;;  %v5450_v2 = vmax.f32 %v5418_v36, 0.0  ;;  %v5382_v31 = vadd.f32 %v5303_v38, %v4908_v59  ;;  %v5423_v41 = vadd.f32 %v9259_v48, %v5384_v20  ;;  %v6916_v6 = vpop.f32.mrf.mxu1  ;;  %v9608_v36 = vld [vmem:[#allocation19_spill] sm:$0xff] }
 0x25a   : > { %v6939_v30 = vpop.f32.mrf.mxu0  ;;  %v4913_v10 = vadd.f32 %v9324_v4, %v4183_v47  ;;  %v4189_v27 = vadd.f32 %v9225_v26, %v3826_v18  ;;  %v4918_v20 = vadd.f32 %v6912_v28, %v9608_v36  ;;  %v9609_v4 = vld [vmem:[#allocation21_spill] sm:$0xff] }
 0x25b   : > { %v5475_v58 = vpack.c.bf16 %v5450_v2, %v5449_v42  ;;  %v5385_v43 = vadd.f32 %v6939_v30, %v4911_v22  ;;  %v5421_v37 = vadd.f32 %v9259_v48, %v5382_v31  ;;  %v5455_v33 = vmax.f32 %v5423_v41, 0.0  ;;  %v9610_v2 = vld [vmem:[#allocation34_spill] sm:$0xff] }
 0x25c   : > { %v5306_v29 = vpop.f32.mrf.mxu0  ;;  %v4187_v31 = vadd.f32 %v9610_v2, %v3824_v8  ;;  %v4919_v28 = vadd.f32 %v6913_v63, %v4189_v27 }
 0x25d   : > { %v5424_v1 = vadd.f32 %v9259_v48, %v5385_v43  ;;  %v5383_v12 = vadd.f32 %v5306_v29, %v4909_v52  ;;  %6966 = vmatprep.mubr.msk.bf16.mxu1 %vm1299_vm9, %v5475_v58  ;;  %v5453_v39 = vmax.f32 %v5421_v37, 0.0  ;;  %v4877_v52 = vpop.f32.mrf.mxu1 }
 0x25e   : > { %v6942_v50 = vpop.f32.mrf.mxu0  ;;  %6967 = vmatmul.mubr.msk.bf16.gmra.mxu1 %vm1299_vm9, %v5476_v45  ;;  %v4916_v45 = vadd.f32 %v4861_v60, %v9609_v4  ;;  %v3830_v60 = vadd.f32 %v9612_v21, %v9611_v19  ;;  %v4917_v29 = vadd.f32 %v4864_v17, %v4187_v31 }
 0x25f   : > { %v5456_v53 = vmax.f32 %v5424_v1, 0.0  ;;  %v5422_v51 = vadd.f32 %v9259_v48, %v5383_v12  ;;  %v5388_v25 = vadd.f32 %v6942_v50, %v4914_v7  ;;  %v9613_v1 = vld [vmem:[#allocation14_spill] sm:$0xff]  ;;  %v9614_v12 = vld [vmem:[#allocation15_spill] sm:$0xff]  ;;  %v6917_v23 = vpop.f32.mrf.mxu1 }
 0x260   : > { %v5319_v0 = vpop.f32.mrf.mxu0  ;;  %v3828_v35 = vadd.f32 %v9614_v12, %v9613_v1  ;;  %v9616_v50 = vld [vmem:[#allocation27_spill] sm:$0xff] }
 0x261   : > { %v5478_v44 = vpack.c.bf16 %v5456_v53, %v5455_v33  ;;  %v5454_v34 = vmax.f32 %v5422_v51, 0.0  ;;  %v5386_v11 = vadd.f32 %v5319_v0, %v4912_v57  ;;  %v5427_v62 = vadd.f32 %v9259_v48, %v5388_v25  ;;  %v9615_v57 = vld [vmem:[#allocation35_spill] sm:$0xff]  ;;  %v4880_v18 = vpop.f32.mrf.mxu1 }
 0x262   : > { %v6943_v32 = vpop.f32.mrf.mxu0  ;;  %v4193_v63 = vadd.f32 %v9615_v57, %v3830_v60  ;;  %v4922_v33 = vadd.f32 %v6916_v6, %v9616_v50  ;;  %v4191_v0 = vadd.f32 %v9245_v24, %v3828_v35 }
 0x263   : > { %v5477_v15 = vpack.c.bf16 %v5454_v34, %v5453_v39  ;;  %v5389_v59 = vadd.f32 %v6943_v32, %v4915_v3  ;;  %v5425_v22 = vadd.f32 %v9259_v48, %v5386_v11  ;;  %v5459_v5 = vmax.f32 %v5427_v62, 0.0  ;;  %v9617_v3 = vld [vmem:[#allocation30_spill] sm:$0xff] }
 0x264   : > { %v5322_v46 = vpop.f32.mrf.mxu0  ;;  %v4920_v17 = vadd.f32 %v4877_v52, %v9617_v3  ;;  %v4923_v14 = vadd.f32 %v6917_v23, %v4193_v63  ;;  %v4921_v54 = vadd.f32 %v4880_v18, %v4191_v0 }
 0x265   : > { %v5428_v38 = vadd.f32 %v9259_v48, %v5389_v59  ;;  %v5387_v42 = vadd.f32 %v5322_v46, %v4913_v10  ;;  %6970 = vmatprep.mubr.msk.bf16.mxu1 %vm1299_vm9, %v5477_v15  ;;  %v5457_v41 = vmax.f32 %v5425_v22, 0.0 }
 0x266   : > { %v6946_v49 = vpop.f32.mrf.mxu0  ;;  %6971 = vmatmul.mubr.msk.bf16.gmra.mxu1 %vm1299_vm9, %v5478_v44 }
 0x267   : > { %v5460_v26 = vmax.f32 %v5428_v38, 0.0  ;;  %v5426_v61 = vadd.f32 %v9259_v48, %v5387_v42  ;;  %v5392_v30 = vadd.f32 %v6946_v49, %v4918_v20 }
 0x268   : > { %v5335_v58 = vpop.f32.mrf.mxu0 }
 0x269   : > { %v5480_v43 = vpack.c.bf16 %v5460_v26, %v5459_v5  ;;  %v5458_v16 = vmax.f32 %v5426_v61, 0.0  ;;  %v5390_v9 = vadd.f32 %v5335_v58, %v4916_v45  ;;  %v5431_v7 = vadd.f32 %v9259_v48, %v5392_v30  ;;  %v9402_v5 = vld [vmem:[%s9466_s4] ss:$0 sm:$0xff] }
 0x26a   : > { %v6947_v55 = vpop.f32.mrf.mxu0 }
 0x26b   : > { %v5479_v56 = vpack.c.bf16 %v5458_v16, %v5457_v41  ;;  %v5393_v37 = vadd.f32 %v6947_v55, %v4919_v28  ;;  %v5429_v53 = vadd.f32 %v9259_v48, %v5390_v9  ;;  %v5463_v44 = vmax.f32 %v5431_v7, 0.0 }
 0x26c   : > { %v5338_v47 = vpop.f32.mrf.mxu0 }
 0x26d   : > { %v5432_v51 = vadd.f32 %v9259_v48, %v5393_v37  ;;  %v5391_v25 = vadd.f32 %v5338_v47, %v4917_v29  ;;  %6974 = vmatprep.mubr.msk.bf16.mxu1 %vm1299_vm9, %v5479_v56  ;;  %v5461_v10 = vmax.f32 %v5429_v53, 0.0 }
 0x26e   : > { %v6950_v39 = vpop.f32.mrf.mxu0  ;;  %6975 = vmatmul.mubr.msk.bf16.gmra.mxu1 %vm1299_vm9, %v5480_v43 }
 0x26f   : > { %v5464_v34 = vmax.f32 %v5432_v51, 0.0  ;;  %v5430_v11 = vadd.f32 %v9259_v48, %v5391_v25  ;;  %v5396_v40 = vadd.f32 %v6950_v39, %v4922_v33 }
 0x270   : > { %v5351_v32 = vpop.f32.mrf.mxu0 }
 0x271   : > { %v5482_v15 = vpack.c.bf16 %v5464_v34, %v5463_v44  ;;  %v5462_v62 = vmax.f32 %v5430_v11, 0.0  ;;  %v5394_v59 = vadd.f32 %v5351_v32, %v4920_v17  ;;  %v5435_v24 = vadd.f32 %v9259_v48, %v5396_v40 }
 0x272   : > { %v6951_v13 = vpop.f32.mrf.mxu0 }
 0x273   : > { %v5481_v8 = vpack.c.bf16 %v5462_v62, %v5461_v10  ;;  %v5397_v27 = vadd.f32 %v6951_v13, %v4923_v14  ;;  %v5433_v46 = vadd.f32 %v9259_v48, %v5394_v59  ;;  %v5467_v22 = vmax.f32 %v5435_v24, 0.0 }
 0x274   : > { %v5354_v6 = vpop.f32.mrf.mxu0 }
 0x275   : > { %v5436_v36 = vadd.f32 %v9259_v48, %v5397_v27  ;;  %v5395_v20 = vadd.f32 %v5354_v6, %v4921_v54  ;;  %6978 = vmatprep.mubr.msk.bf16.mxu1 %vm1299_vm9, %v5481_v8  ;;  %v5465_v4 = vmax.f32 %v5433_v46, 0.0 }
 0x276   : > { %6979 = vmatmul.mubr.msk.bf16.gmra.mxu1 %vm1299_vm9, %v5482_v15 }
 0x277   : > { %v5468_v38 = vmax.f32 %v5436_v36, 0.0  ;;  %v5434_v42 = vadd.f32 %v9259_v48, %v5395_v20 }
 0x279   : > { %v5484_v45 = vpack.c.bf16 %v5468_v38, %v5467_v22  ;;  %v5466_v2 = vmax.f32 %v5434_v42, 0.0 }
 0x27b   : > { %v5483_v31 = vpack.c.bf16 %v5466_v2, %v5465_v4 }
 0x27d   : > { %6982 = vmatprep.mubr.msk.bf16.mxu1 %vm1299_vm9, %v5483_v31 }
 0x27e   : > { %6983 = vmatmul.mubr.msk.bf16.gmra.mxu1 %vm1299_vm9, %v5484_v45 }
 0x306   : > { %v6956_v49 = vpop.f32.mrf.mxu1 }
 0x307   : > { %v5591_v30 = vadd.f32 %v6956_v49, %v9402_v5 }
 0x308   : > { %v5582_v26 = vpop.f32.mrf.mxu1 }
 0x309   : > { %v5583_v52 = vadd.f32 %v9402_v5, %v5582_v26 }
 0x30a   : > { %v6957_v61 = vpop.f32.mrf.mxu1 }
 0x30b   : > { %v5594_v48 = vadd.f32 %v6957_v61, %v9402_v5 }
 0x30c   : > { %v5585_v28 = vpop.f32.mrf.mxu1 }
 0x30d   : > { %v6389_v58 = vpack.c.bf16 %v5594_v48, %v5591_v30  ;;  %v5586_v41 = vadd.f32 %v9402_v5, %v5585_v28 }
 0x30e   : > { %v6960_v43 = vpop.f32.mrf.mxu1 }
 0x30f   : > { %6461 = vst [vmem:[%s9411_s30 + $0x8] sm:$0xff] %v6389_v58   ;;  %v6384_v16 = vpack.c.bf16 %v5586_v41, %v5583_v52  ;;  %v5607_v21 = vadd.f32 %v6960_v43, %v9402_v5 }
 0x310   : > { %v5598_v9 = vpop.f32.mrf.mxu1 }
 0x311   : > { %6385 = vst [vmem:[%s9411_s30] sm:$0xff] %v6384_v16   ;;  %v5599_v29 = vadd.f32 %v9402_v5, %v5598_v9 }
 0x312   : > { %v6961_v19 = vpop.f32.mrf.mxu1 }
 0x313   : > { %v5610_v60 = vadd.f32 %v6961_v19, %v9402_v5 }
 0x314   : > { %v5601_v55 = vpop.f32.mrf.mxu1 }
 0x315   : > { %v6399_v56 = vpack.c.bf16 %v5610_v60, %v5607_v21  ;;  %v5602_v7 = vadd.f32 %v9402_v5, %v5601_v55 }
 0x316   : > { %v6964_v37 = vpop.f32.mrf.mxu1 }
 0x317   : > { %6463 = vst [vmem:[%s9411_s30 + $0x18] sm:$0xff] %v6399_v56   ;;  %v6394_v1 = vpack.c.bf16 %v5602_v7, %v5599_v29  ;;  %v5623_v57 = vadd.f32 %v6964_v37, %v9402_v5 }
 0x318   : > { %v5614_v12 = vpop.f32.mrf.mxu1 }
 0x319   : > { %6462 = vst [vmem:[%s9411_s30 + $0x10] sm:$0xff] %v6394_v1   ;;  %v5615_v47 = vadd.f32 %v9402_v5, %v5614_v12 }
 0x31a   : > { %v6965_v35 = vpop.f32.mrf.mxu1 }
 0x31b   : > { %v5626_v63 = vadd.f32 %v6965_v35, %v9402_v5 }
 0x31c   : > { %v5617_v23 = vpop.f32.mrf.mxu1 }
 0x31d   : > { %v6409_v50 = vpack.c.bf16 %v5626_v63, %v5623_v57  ;;  %v5618_v33 = vadd.f32 %v9402_v5, %v5617_v23 }
 0x31e   : > { %v6968_v53 = vpop.f32.mrf.mxu1 }
 0x31f   : > { %6465 = vst [vmem:[%s9411_s30 + $0x28] sm:$0xff] %v6409_v50   ;;  %v6404_v51 = vpack.c.bf16 %v5618_v33, %v5615_v47  ;;  %v5639_v17 = vadd.f32 %v6968_v53, %v9402_v5 }
 0x320   : > { %v5630_v25 = vpop.f32.mrf.mxu1 }
 0x321   : > { %6464 = vst [vmem:[%s9411_s30 + $0x20] sm:$0xff] %v6404_v51   ;;  %v5631_v44 = vadd.f32 %v9402_v5, %v5630_v25 }
 0x322   : > { %v6969_v3 = vpop.f32.mrf.mxu1 }
 0x323   : > { %v5642_v0 = vadd.f32 %v6969_v3, %v9402_v5 }
 0x324   : > { %v5633_v39 = vpop.f32.mrf.mxu1 }
 0x325   : > { %v6419_v34 = vpack.c.bf16 %v5642_v0, %v5639_v17  ;;  %v5634_v11 = vadd.f32 %v9402_v5, %v5633_v39 }
 0x326   : > { %v6972_v40 = vpop.f32.mrf.mxu1 }
 0x327   : > { %6467 = vst [vmem:[%s9411_s30 + $0x38] sm:$0xff] %v6419_v34   ;;  %v6414_v14 = vpack.c.bf16 %v5634_v11, %v5631_v44  ;;  %v5655_v10 = vadd.f32 %v6972_v40, %v9402_v5 }
 0x328   : > { %v5646_v18 = vpop.f32.mrf.mxu1 }
 0x329   : > { %6466 = vst [vmem:[%s9411_s30 + $0x30] sm:$0xff] %v6414_v14   ;;  %v5647_v59 = vadd.f32 %v9402_v5, %v5646_v18 }
 0x32a   : > { %v6973_v32 = vpop.f32.mrf.mxu1 }
 0x32b   : > { %v5658_v15 = vadd.f32 %v6973_v32, %v9402_v5 }
 0x32c   : > { %v5649_v62 = vpop.f32.mrf.mxu1 }
 0x32d   : > { %v6429_v13 = vpack.c.bf16 %v5658_v15, %v5655_v10  ;;  %v5650_v54 = vadd.f32 %v9402_v5, %v5649_v62 }
 0x32e   : > { %v6976_v8 = vpop.f32.mrf.mxu1 }
 0x32f   : > { %6469 = vst [vmem:[%s9411_s30 + $0x48] sm:$0xff] %v6429_v13   ;;  %v6424_v24 = vpack.c.bf16 %v5650_v54, %v5647_v59  ;;  %v5671_v46 = vadd.f32 %v6976_v8, %v9402_v5 }
 0x330   : > { %v5662_v27 = vpop.f32.mrf.mxu1 }
 0x331   : > { %6468 = vst [vmem:[%s9411_s30 + $0x40] sm:$0xff] %v6424_v24   ;;  %v5663_v22 = vadd.f32 %v9402_v5, %v5662_v27 }
 0x332   : > { %v6977_v6 = vpop.f32.mrf.mxu1 }
 0x333   : > { %v5674_v36 = vadd.f32 %v6977_v6, %v9402_v5 }
 0x334   : > { %v5665_v20 = vpop.f32.mrf.mxu1 }
 0x335   : > { %v6439_v38 = vpack.c.bf16 %v5674_v36, %v5671_v46  ;;  %v5666_v42 = vadd.f32 %v9402_v5, %v5665_v20 }
 0x336   : > { %v6980_v4 = vpop.f32.mrf.mxu1 }
 0x337   : > { %6471 = vst [vmem:[%s9411_s30 + $0x58] sm:$0xff] %v6439_v38   ;;  %v6434_v45 = vpack.c.bf16 %v5666_v42, %v5663_v22  ;;  %v5687_v49 = vadd.f32 %v6980_v4, %v9402_v5 }
 0x338   : > { %v5678_v2 = vpop.f32.mrf.mxu1 }
 0x339   : > { %6470 = vst [vmem:[%s9411_s30 + $0x50] sm:$0xff] %v6434_v45   ;;  %v5679_v30 = vadd.f32 %v9402_v5, %v5678_v2 }
 0x33a   : > { %v6981_v31 = vpop.f32.mrf.mxu1 }
 0x33b   : > { %v5690_v26 = vadd.f32 %v6981_v31, %v9402_v5 }
 0x33c   : > { %v5681_v61 = vpop.f32.mrf.mxu1 }
 0x33d   : > { %v6449_v48 = vpack.c.bf16 %v5690_v26, %v5687_v49  ;;  %v5682_v28 = vadd.f32 %v9402_v5, %v5681_v61 }
 0x33e   : > { %v6984_v52 = vpop.f32.mrf.mxu1 }
 0x33f   : > { %6473 = vst [vmem:[%s9411_s30 + $0x68] sm:$0xff] %v6449_v48   ;;  %v6444_v58 = vpack.c.bf16 %v5682_v28, %v5679_v30  ;;  %v5703_v16 = vadd.f32 %v6984_v52, %v9402_v5 }
 0x340   : > { %v5694_v41 = vpop.f32.mrf.mxu1 }
 0x341   : > { %6472 = vst [vmem:[%s9411_s30 + $0x60] sm:$0xff] %v6444_v58   ;;  %v5695_v21 = vadd.f32 %v9402_v5, %v5694_v41 }
 0x342   : > { %v6985_v43 = vpop.f32.mrf.mxu1 }
 0x343   : > { %v5706_v9 = vadd.f32 %v6985_v43, %v9402_v5 }
 0x344   : > { %v5697_v19 = vpop.f32.mrf.mxu1 }
 0x345   : > { %v6459_v60 = vpack.c.bf16 %v5706_v9, %v5703_v16  ;;  %v5698_v55 = vadd.f32 %v9402_v5, %v5697_v19 }
 0x347   : > { %6475 = vst [vmem:[%s9411_s30 + $0x78] sm:$0xff] %v6459_v60   ;;  %v6454_v29 = vpack.c.bf16 %v5698_v55, %v5695_v21 }
 0x349   : > { %6474 = vst [vmem:[%s9411_s30 + $0x70] sm:$0xff] %v6454_v29  }
 0x34a PF: > { %s15_s18 = sadd.s32 1, %s7071_s18  }
 0x34b   : > { %p12_p4 = scmp.ge.s32.totalorder %s15_s18, 4  }
 0x34d   :  { %14 = sbr.rel (!%p12_p4) target bundleno = 1 (0x1), region = 81 }

</bundles_post_ra>
